<compile_context>
chip_gen: v6e
topology: v6e:2x2x1
jax: 0.10.0
libtpu: 0.0.40
codegen_flags: <defaults>
</compile_context>

<pallas_src>
import functools

import jax
import jax.numpy as jnp
from jax import lax
from jax.experimental import pallas as pl
from jax.experimental.pallas import tpu as pltpu


def _init_layer_kernel(noise_ref, wa_ref, wb_ref, par_ref, pool_ref, exp_ref,
                       out_ref, *, eps, inv_n):
    """Fused (convT-as-matmul) -> BatchNorm2d (train stats) -> GLU for one channel tile.

    Shapes inside the kernel (L = TC * S, TC = GLU channel-pairs per tile, S = sz*sz):
      noise_ref : (B, nz)  bf16   noise, already scaled by 1/sigma
      wa_ref    : (nz, L)  bf16   weight window for the GLU 'a' channels
      wb_ref    : (nz, L)  bf16   weight window for the GLU 'b' channels
      par_ref   : (4, L)   f32    [gamma_a, gamma_b, beta_a, beta_b], per-lane expanded
      pool_ref  : (L, TC)  f32    0/1 matrix: lane l -> channel l // S
      exp_ref   : (TC, L)  f32    its transpose (channel -> its S lanes)
      out_ref   : (B, L)   f32
    """
    n = noise_ref[...]
    # ConvTranspose2d on a 1x1 input == plain matmul on the MXU (bf16 in, f32 accumulate).
    xa = jnp.dot(n, wa_ref[...], preferred_element_type=jnp.float32)   # (B, L)
    xb = jnp.dot(n, wb_ref[...], preferred_element_type=jnp.float32)   # (B, L)

    par = par_ref[...]
    pool = pool_ref[...]
    expand = exp_ref[...]

    def batch_norm(x, gamma_e, beta_e):
        # One-pass stats: reduce over batch (sublanes) first, then pool the S spatial
        # lanes of every channel with a tiny 0/1 matmul -- keeps the hot path lane-dense.
        s1 = jnp.sum(x, axis=0, keepdims=True)            # (1, L)
        s2 = jnp.sum(x * x, axis=0, keepdims=True)        # (1, L)
        mean = jnp.dot(s1, pool, precision=lax.Precision.HIGHEST,
                       preferred_element_type=jnp.float32) * inv_n      # (1, TC)
        ex2 = jnp.dot(s2, pool, precision=lax.Precision.HIGHEST,
                      preferred_element_type=jnp.float32) * inv_n       # (1, TC)
        var = ex2 - mean * mean                            # biased variance (train mode)
        inv_std = lax.rsqrt(var + eps)                     # (1, TC)
        # Expand per-channel stats back to per-lane and fold in the affine params.
        inv_e = jnp.dot(inv_std, expand, precision=lax.Precision.HIGHEST,
                        preferred_element_type=jnp.float32)              # (1, L)
        mean_e = jnp.dot(mean, expand, precision=lax.Precision.HIGHEST,
                         preferred_element_type=jnp.float32)             # (1, L)
        scale = gamma_e * inv_e
        shift = beta_e - mean_e * scale
        return x * scale + shift                           # broadcast over batch rows

    a_n = batch_norm(xa, par[0:1, :], par[2:3, :])
    b_n = batch_norm(xb, par[1:2, :], par[3:4, :])
    out_ref[...] = a_n * jax.nn.sigmoid(b_n)               # GLU


def _spectral_sigma(weight, n_iter=12, eps=1e-12):
    """Largest singular value of the spectral-norm weight matrix.

    PyTorch's spectral_norm on ConvTranspose2d reshapes with dim=1, i.e. the matrix is
    (2C, nz*sz*sz).  We power-iterate on its (2C, 2C) Gram matrix (quadratic convergence,
    and no transpose materialization of the big weight).
    """
    # TODO(synk): PyTorch runs ONE power iteration per forward from a persistent random
    # `u` buffer; that stateful behaviour has no clean functional equivalent, so we use a
    # converged deterministic estimate instead (host-side XLA glue, not in the kernel).
    nz, c2, kh, kw = weight.shape
    w = weight.reshape(nz, c2, kh * kw).astype(jnp.float32)
    gram = jnp.einsum('ncs,nds->cd', w, w)                 # (2C, 2C) = w_mat @ w_mat.T
    v0 = jnp.ones((c2,), jnp.float32) / jnp.sqrt(jnp.float32(c2))

    def body(_, v):
        u = gram @ v
        return u / (jnp.linalg.norm(u) + eps)

    v = lax.fori_loop(0, n_iter, body, v0)
    lam = v @ (gram @ v)                                   # Rayleigh quotient = sigma^2
    return jnp.sqrt(jnp.maximum(lam, 0.0))


def _choose_tile(C, nz, S, weight_block_bytes, pool_block_bytes=1 << 20):
    """Largest channel-pair tile TC with C % TC == 0, TC*S lane-aligned (mult of 128),
    per-half bf16 weight block <= weight_block_bytes and small pooling matrices.
    Returns None if no lane-aligned tile exists (degenerate tiny shapes)."""
    divisors = [d for d in range(1, C + 1) if C % d == 0 and (d * S) % 128 == 0]
    if not divisors:
        return None
    fitting = [d for d in divisors
               if nz * d * S * 2 <= weight_block_bytes and d * d * S * 4 <= pool_block_bytes]
    return max(fitting) if fitting else min(divisors)


def init_layer_forward(noise, weight, gamma, beta, eps=1e-5,
                       weight_block_bytes=1 << 20):
    """InitLayer forward.

    noise : (B, nz) or (B, nz, 1, 1)
    weight: (nz, 2C, sz, sz)   ConvTranspose2d weight (in, out, kH, kW)
    gamma : (2C,)              BatchNorm2d weight
    beta  : (2C,)              BatchNorm2d bias
    returns (B, C, sz, sz) float32
    """
    nz, c2, sz, sz2 = weight.shape
    assert sz == sz2 and c2 % 2 == 0
    C = c2 // 2
    S = sz * sz
    B = noise.shape[0]

    # ----- host-side glue (everything tiny except one read of the weight for sigma) ----
    sigma = _spectral_sigma(weight)
    # Fold 1/sigma into the (B, nz) noise: mathematically identical to scaling the weight
    # (x is linear in the noise), but avoids a full HBM rewrite pass over the big weight.
    noise2 = (noise.reshape(B, -1).astype(jnp.float32) * (1.0 / sigma)).astype(jnp.bfloat16)
    assert noise2.shape == (B, nz)

    # Contiguous (free) reshape to the lane-dense layout + bf16 for the DMA / MXU.
    w2 = weight.reshape(nz, c2 * S).astype(jnp.bfloat16)

    # BN affine params, split into GLU halves and expanded to one value per output lane
    # (channel-major, each value repeated S times) -- matches the weight lane layout.
    g32 = gamma.astype(jnp.float32)
    b32 = beta.astype(jnp.float32)
    params = jnp.stack([jnp.repeat(g32[:C], S), jnp.repeat(g32[C:], S),
                        jnp.repeat(b32[:C], S), jnp.repeat(b32[C:], S)], axis=0)  # (4, C*S)

    # ----- tiling ----------------------------------------------------------------------
    tc = _choose_tile(C, nz, S, weight_block_bytes)
    if tc is None:
        # Degenerate / misaligned small shapes: a single full-size tile (full-dim blocks
        # always satisfy the (8,128) BlockSpec constraint).  Halves pre-sliced on host;
        # the weight is tiny in this regime so the extra slice copy is irrelevant.
        tc = C
        num_tiles = 1
        wa_arr, wb_arr = w2[:, :C * S], w2[:, C * S:]
        wa_spec = pl.BlockSpec((nz, C * S), lambda i: (0, 0))
        wb_spec = pl.BlockSpec((nz, C * S), lambda i: (0, 0))
    else:
        num_tiles = C // tc
        # Both GLU halves are windows into the SAME (unmodified) weight buffer.
        wa_arr = wb_arr = w2
        wa_spec = pl.BlockSpec((nz, tc * S), lambda i: (0, i))
        wb_spec = pl.BlockSpec((nz, tc * S), lambda i: (0, i + num_tiles))
    L = tc * S

    # 0/1 pooling / expansion matrices for the per-channel BN reduction (lane l of a tile
    # belongs to local channel l // S).  Constant index_map => fetched once, stays resident.
    eye = jnp.eye(tc, dtype=jnp.float32)
    pool = jnp.repeat(eye, S, axis=0)        # (L, tc)
    expand = jnp.repeat(eye, S, axis=1)      # (tc, L)

    kernel = functools.partial(_init_layer_kernel, eps=float(eps),
                               inv_n=1.0 / float(B * S))

    out = pl.pallas_call(
        kernel,
        out_shape=jax.ShapeDtypeStruct((B, C * S), jnp.float32),
        grid=(num_tiles,),
        in_specs=[
            pl.BlockSpec((B, nz), lambda i: (0, 0)),        # noise   (resident)
            wa_spec,                                         # weight window, GLU 'a'
            wb_spec,                                         # weight window, GLU 'b'
            pl.BlockSpec((4, L), lambda i: (0, i)),          # per-lane gamma/beta
            pl.BlockSpec((L, tc), lambda i: (0, 0)),         # pool    (resident)
            pl.BlockSpec((tc, L), lambda i: (0, 0)),         # expand  (resident)
        ],
        out_specs=pl.BlockSpec((B, L), lambda i: (0, i)),
        compiler_params=pltpu.CompilerParams(
            dimension_semantics=("parallel",),               # BN stats live inside a tile
            vmem_limit_bytes=32 * 1024 * 1024,
        ),
    )(noise2, wa_arr, wb_arr, params, pool, expand)

    return out.reshape(B, C, sz, sz)


def init_layer_reference(noise, weight, gamma, beta, eps=1e-5):
    """Plain-JAX reference (same math, same bf16 matmul inputs) for validation."""
    B = noise.shape[0]
    nz, c2, sz, _ = weight.shape
    C = c2 // 2
    sigma = _spectral_sigma(weight)
    n2 = (noise.reshape(B, -1).astype(jnp.float32) * (1.0 / sigma)).astype(jnp.bfloat16)
    w = weight.astype(jnp.bfloat16)
    x = jnp.einsum('bn,nchw->bchw', n2, w, preferred_element_type=jnp.float32)
    mean = jnp.mean(x, axis=(0, 2, 3), keepdims=True)
    var = jnp.mean((x - mean) ** 2, axis=(0, 2, 3), keepdims=True)
    xn = (x - mean) * lax.rsqrt(var + eps)
    xn = xn * gamma.reshape(1, c2, 1, 1).astype(jnp.float32) \
        + beta.reshape(1, c2, 1, 1).astype(jnp.float32)
    return xn[:, :C] * jax.nn.sigmoid(xn[:, C:])


if __name__ == "__main__":
    # Small deterministic config; weight_block_bytes is lowered so the multi-tile,
    # pipelined path (grid of 4 channel-pair tiles) is what actually runs.
    B, nz, channel, sz = 8, 64, 64, 4
    c2 = channel * 2

    key = jax.random.PRNGKey(0)
    k_noise, k_w, k_g, k_b = jax.random.split(key, 4)

    noise = jax.random.normal(k_noise, (B, nz, 1, 1), dtype=jnp.float32)
    # ConvTranspose2d weight: (in_channels=nz, out_channels=2C, kH=sz, kW=sz)
    weight = 0.05 * jax.random.normal(k_w, (nz, c2, sz, sz), dtype=jnp.float32)
    gamma = 1.0 + 0.1 * jax.random.normal(k_g, (c2,), dtype=jnp.float32)
    beta = 0.02 * jax.random.normal(k_b, (c2,), dtype=jnp.float32)

    fwd = jax.jit(functools.partial(init_layer_forward, weight_block_bytes=32 * 1024))
    out = jax.block_until_ready(fwd(noise, weight, gamma, beta))

    ref = jax.block_until_ready(init_layer_reference(noise, weight, gamma, beta))

    assert out.shape == (B, channel, sz, sz), out.shape
    max_err = float(jnp.max(jnp.abs(out - ref)))
    assert jnp.allclose(out, ref, rtol=1e-3, atol=1e-3), max_err
    print("KERNEL_OK")
</pallas_src>

<mosaic_0001>
module attributes {stable_mosaic.version = 11 : i64} {
  func.func @_init_layer_kernel(%arg0: i32, %arg1: memref<8x64xbf16, #tpu.memory_space<vmem>>, %arg2: memref<64x256xbf16, #tpu.memory_space<vmem>>, %arg3: memref<64x256xbf16, #tpu.memory_space<vmem>>, %arg4: memref<4x256xf32, #tpu.memory_space<vmem>>, %arg5: memref<256x16xf32, #tpu.memory_space<vmem>>, %arg6: memref<16x256xf32, #tpu.memory_space<vmem>>, %arg7: memref<8x256xf32, #tpu.memory_space<vmem>>) attributes {dimension_semantics = [#tpu.dimension_semantics<parallel>], iteration_bounds = array<i64: 4>, scalar_prefetch = 0 : i64, scratch_operands = 0 : i64, tpu.core_type = #tpu.core_type<tc>, window_params = [{pipeline_mode = #tpu.pipeline_mode<synchronous>, transform_indices = @transform_0, window_bounds = array<i64: 8, 64>}, {transform_indices = @transform_1, window_bounds = array<i64: 64, 256>}, {transform_indices = @transform_2, window_bounds = array<i64: 64, 256>}, {transform_indices = @transform_3, window_bounds = array<i64: 4, 256>}, {pipeline_mode = #tpu.pipeline_mode<synchronous>, transform_indices = @transform_4, window_bounds = array<i64: 256, 16>}, {pipeline_mode = #tpu.pipeline_mode<synchronous>, transform_indices = @transform_5, window_bounds = array<i64: 16, 256>}, {transform_indices = @transform_6, window_bounds = array<i64: 8, 256>}]} {
    %c0 = arith.constant 0 : index
    %c0_0 = arith.constant 0 : index
    %0 = vector.load %arg1[%c0, %c0_0] : memref<8x64xbf16, #tpu.memory_space<vmem>>, vector<8x64xbf16>
    %c0_1 = arith.constant 0 : index
    %c0_2 = arith.constant 0 : index
    %1 = vector.load %arg2[%c0_1, %c0_2] : memref<64x256xbf16, #tpu.memory_space<vmem>>, vector<64x256xbf16>
    %cst = arith.constant dense<0.000000e+00> : vector<8x256xf32>
    %2 = tpu.matmul %0, %1, %cst {dimension_numbers = #tpu.dot_dimension_numbers<[1], [0], [0], [1], [0, 0, 1, 1], [], []>} : vector<8x64xbf16>, vector<64x256xbf16>, vector<8x256xf32> -> vector<8x256xf32>
    %c0_3 = arith.constant 0 : index
    %c0_4 = arith.constant 0 : index
    %3 = vector.load %arg3[%c0_3, %c0_4] : memref<64x256xbf16, #tpu.memory_space<vmem>>, vector<64x256xbf16>
    %cst_5 = arith.constant dense<0.000000e+00> : vector<8x256xf32>
    %4 = tpu.matmul %0, %3, %cst_5 {dimension_numbers = #tpu.dot_dimension_numbers<[1], [0], [0], [1], [0, 0, 1, 1], [], []>} : vector<8x64xbf16>, vector<64x256xbf16>, vector<8x256xf32> -> vector<8x256xf32>
    %c0_6 = arith.constant 0 : index
    %c0_7 = arith.constant 0 : index
    %5 = vector.load %arg4[%c0_6, %c0_7] : memref<4x256xf32, #tpu.memory_space<vmem>>, vector<4x256xf32>
    %c0_8 = arith.constant 0 : index
    %c0_9 = arith.constant 0 : index
    %6 = vector.load %arg5[%c0_8, %c0_9] : memref<256x16xf32, #tpu.memory_space<vmem>>, vector<256x16xf32>
    %c0_10 = arith.constant 0 : index
    %c0_11 = arith.constant 0 : index
    %7 = vector.load %arg6[%c0_10, %c0_11] : memref<16x256xf32, #tpu.memory_space<vmem>>, vector<16x256xf32>
    %8 = vector.extract_strided_slice %5 {offsets = [0, 0], sizes = [1, 256], strides = [1, 1]} : vector<4x256xf32> to vector<1x256xf32>
    %9 = vector.extract_strided_slice %5 {offsets = [2, 0], sizes = [1, 256], strides = [1, 1]} : vector<4x256xf32> to vector<1x256xf32>
    %cst_12 = arith.constant dense<0.000000e+00> : vector<256xf32>
    %10 = vector.multi_reduction <add>, %2, %cst_12 [0] : vector<8x256xf32> to vector<256xf32>
    %11 = vector.shape_cast %10 : vector<256xf32> to vector<1x256xf32>
    %12 = arith.mulf %2, %2 : vector<8x256xf32>
    %cst_13 = arith.constant dense<0.000000e+00> : vector<256xf32>
    %13 = vector.multi_reduction <add>, %12, %cst_13 [0] : vector<8x256xf32> to vector<256xf32>
    %14 = vector.shape_cast %13 : vector<256xf32> to vector<1x256xf32>
    %cst_14 = arith.constant dense<0.000000e+00> : vector<1x16xf32>
    %15 = tpu.matmul %11, %6, %cst_14 {dimension_numbers = #tpu.dot_dimension_numbers<[1], [0], [0], [1], [0, 0, 1, 1], [], []>, precision = #tpu.contract_precision<fp32>} : vector<1x256xf32>, vector<256x16xf32>, vector<1x16xf32> -> vector<1x16xf32>
    %cst_15 = arith.constant 7.812500e-03 : f32
    %16 = vector.broadcast %cst_15 : f32 to vector<1x16xf32>
    %17 = arith.mulf %15, %16 : vector<1x16xf32>
    %cst_16 = arith.constant dense<0.000000e+00> : vector<1x16xf32>
    %18 = tpu.matmul %14, %6, %cst_16 {dimension_numbers = #tpu.dot_dimension_numbers<[1], [0], [0], [1], [0, 0, 1, 1], [], []>, precision = #tpu.contract_precision<fp32>} : vector<1x256xf32>, vector<256x16xf32>, vector<1x16xf32> -> vector<1x16xf32>
    %cst_17 = arith.constant 7.812500e-03 : f32
    %19 = vector.broadcast %cst_17 : f32 to vector<1x16xf32>
    %20 = arith.mulf %18, %19 : vector<1x16xf32>
    %21 = arith.mulf %17, %17 : vector<1x16xf32>
    %22 = arith.subf %20, %21 : vector<1x16xf32>
    %cst_18 = arith.constant 9.99999974E-6 : f32
    %23 = vector.broadcast %cst_18 : f32 to vector<1x16xf32>
    %24 = arith.addf %22, %23 : vector<1x16xf32>
    %25 = math.rsqrt %24 : vector<1x16xf32>
    %cst_19 = arith.constant dense<0.000000e+00> : vector<1x256xf32>
    %26 = tpu.matmul %25, %7, %cst_19 {dimension_numbers = #tpu.dot_dimension_numbers<[1], [0], [0], [1], [0, 0, 1, 1], [], []>, precision = #tpu.contract_precision<fp32>} : vector<1x16xf32>, vector<16x256xf32>, vector<1x256xf32> -> vector<1x256xf32>
    %cst_20 = arith.constant dense<0.000000e+00> : vector<1x256xf32>
    %27 = tpu.matmul %17, %7, %cst_20 {dimension_numbers = #tpu.dot_dimension_numbers<[1], [0], [0], [1], [0, 0, 1, 1], [], []>, precision = #tpu.contract_precision<fp32>} : vector<1x16xf32>, vector<16x256xf32>, vector<1x256xf32> -> vector<1x256xf32>
    %28 = arith.mulf %8, %26 : vector<1x256xf32>
    %29 = arith.mulf %27, %28 : vector<1x256xf32>
    %30 = arith.subf %9, %29 : vector<1x256xf32>
    %31 = vector.broadcast %28 : vector<1x256xf32> to vector<8x256xf32>
    %32 = arith.mulf %2, %31 : vector<8x256xf32>
    %33 = vector.broadcast %30 : vector<1x256xf32> to vector<8x256xf32>
    %34 = arith.addf %32, %33 : vector<8x256xf32>
    %35 = vector.extract_strided_slice %5 {offsets = [1, 0], sizes = [1, 256], strides = [1, 1]} : vector<4x256xf32> to vector<1x256xf32>
    %36 = vector.extract_strided_slice %5 {offsets = [3, 0], sizes = [1, 256], strides = [1, 1]} : vector<4x256xf32> to vector<1x256xf32>
    %cst_21 = arith.constant dense<0.000000e+00> : vector<256xf32>
    %37 = vector.multi_reduction <add>, %4, %cst_21 [0] : vector<8x256xf32> to vector<256xf32>
    %38 = vector.shape_cast %37 : vector<256xf32> to vector<1x256xf32>
    %39 = arith.mulf %4, %4 : vector<8x256xf32>
    %cst_22 = arith.constant dense<0.000000e+00> : vector<256xf32>
    %40 = vector.multi_reduction <add>, %39, %cst_22 [0] : vector<8x256xf32> to vector<256xf32>
    %41 = vector.shape_cast %40 : vector<256xf32> to vector<1x256xf32>
    %cst_23 = arith.constant dense<0.000000e+00> : vector<1x16xf32>
    %42 = tpu.matmul %38, %6, %cst_23 {dimension_numbers = #tpu.dot_dimension_numbers<[1], [0], [0], [1], [0, 0, 1, 1], [], []>, precision = #tpu.contract_precision<fp32>} : vector<1x256xf32>, vector<256x16xf32>, vector<1x16xf32> -> vector<1x16xf32>
    %cst_24 = arith.constant 7.812500e-03 : f32
    %43 = vector.broadcast %cst_24 : f32 to vector<1x16xf32>
    %44 = arith.mulf %42, %43 : vector<1x16xf32>
    %cst_25 = arith.constant dense<0.000000e+00> : vector<1x16xf32>
    %45 = tpu.matmul %41, %6, %cst_25 {dimension_numbers = #tpu.dot_dimension_numbers<[1], [0], [0], [1], [0, 0, 1, 1], [], []>, precision = #tpu.contract_precision<fp32>} : vector<1x256xf32>, vector<256x16xf32>, vector<1x16xf32> -> vector<1x16xf32>
    %cst_26 = arith.constant 7.812500e-03 : f32
    %46 = vector.broadcast %cst_26 : f32 to vector<1x16xf32>
    %47 = arith.mulf %45, %46 : vector<1x16xf32>
    %48 = arith.mulf %44, %44 : vector<1x16xf32>
    %49 = arith.subf %47, %48 : vector<1x16xf32>
    %cst_27 = arith.constant 9.99999974E-6 : f32
    %50 = vector.broadcast %cst_27 : f32 to vector<1x16xf32>
    %51 = arith.addf %49, %50 : vector<1x16xf32>
    %52 = math.rsqrt %51 : vector<1x16xf32>
    %cst_28 = arith.constant dense<0.000000e+00> : vector<1x256xf32>
    %53 = tpu.matmul %52, %7, %cst_28 {dimension_numbers = #tpu.dot_dimension_numbers<[1], [0], [0], [1], [0, 0, 1, 1], [], []>, precision = #tpu.contract_precision<fp32>} : vector<1x16xf32>, vector<16x256xf32>, vector<1x256xf32> -> vector<1x256xf32>
    %cst_29 = arith.constant dense<0.000000e+00> : vector<1x256xf32>
    %54 = tpu.matmul %44, %7, %cst_29 {dimension_numbers = #tpu.dot_dimension_numbers<[1], [0], [0], [1], [0, 0, 1, 1], [], []>, precision = #tpu.contract_precision<fp32>} : vector<1x16xf32>, vector<16x256xf32>, vector<1x256xf32> -> vector<1x256xf32>
    %55 = arith.mulf %35, %53 : vector<1x256xf32>
    %56 = arith.mulf %54, %55 : vector<1x256xf32>
    %57 = arith.subf %36, %56 : vector<1x256xf32>
    %58 = vector.broadcast %55 : vector<1x256xf32> to vector<8x256xf32>
    %59 = arith.mulf %4, %58 : vector<8x256xf32>
    %60 = vector.broadcast %57 : vector<1x256xf32> to vector<8x256xf32>
    %61 = arith.addf %59, %60 : vector<8x256xf32>
    %62 = arith.negf %61 : vector<8x256xf32>
    %63 = math.exp %62 : vector<8x256xf32>
    %cst_30 = arith.constant 1.000000e+00 : f32
    %64 = vector.broadcast %cst_30 : f32 to vector<8x256xf32>
    %65 = arith.addf %64, %63 : vector<8x256xf32>
    %66 = arith.divf %64, %65 : vector<8x256xf32>
    %67 = arith.mulf %34, %66 : vector<8x256xf32>
    %c0_31 = arith.constant 0 : index
    %c0_32 = arith.constant 0 : index
    %68 = vector.load %arg7[%c0_31, %c0_32] : memref<8x256xf32, #tpu.memory_space<vmem>>, vector<8x256xf32>
    tpu.vector_store %arg7[%c0_31, %c0_32], %67 {strides = array<i32>} : memref<8x256xf32, #tpu.memory_space<vmem>>, vector<8x256xf32>,
    return
  }
  func.func @transform_0(%arg0: i32) -> (i32, i32) {
    %c0_i32 = arith.constant 0 : i32
    %c0_i32_0 = arith.constant 0 : i32
    %c0_i32_1 = arith.constant 0 : i32
    return %c0_i32, %c0_i32_0 : i32, i32
  }
  func.func @transform_1(%arg0: i32) -> (i32, i32) {
    %c0_i32 = arith.constant 0 : i32
    %c0_i32_0 = arith.constant 0 : i32
    return %c0_i32, %arg0 : i32, i32
  }
  func.func @transform_2(%arg0: i32) -> (i32, i32) {
    %c4_i32 = arith.constant 4 : i32
    %0 = arith.addi %arg0, %c4_i32 : i32
    %c0_i32 = arith.constant 0 : i32
    %c0_i32_0 = arith.constant 0 : i32
    return %c0_i32, %0 : i32, i32
  }
  func.func @transform_3(%arg0: i32) -> (i32, i32) {
    %c0_i32 = arith.constant 0 : i32
    %c0_i32_0 = arith.constant 0 : i32
    return %c0_i32, %arg0 : i32, i32
  }
  func.func @transform_4(%arg0: i32) -> (i32, i32) {
    %c0_i32 = arith.constant 0 : i32
    %c0_i32_0 = arith.constant 0 : i32
    %c0_i32_1 = arith.constant 0 : i32
    return %c0_i32, %c0_i32_0 : i32, i32
  }
  func.func @transform_5(%arg0: i32) -> (i32, i32) {
    %c0_i32 = arith.constant 0 : i32
    %c0_i32_0 = arith.constant 0 : i32
    %c0_i32_1 = arith.constant 0 : i32
    return %c0_i32, %c0_i32_0 : i32, i32
  }
  func.func @transform_6(%arg0: i32) -> (i32, i32) {
    %c0_i32 = arith.constant 0 : i32
    %c0_i32_0 = arith.constant 0 : i32
    return %c0_i32, %arg0 : i32, i32
  }
}

</mosaic_0001>

<bundles_post_ra>
// kernel: custom-call
= control target key start
LH: loop header
LB: loop body
LE: loop exit
PB: predicated region body
PF: predicated region fallthrough
CT: control target
= control target key end

     0   :  { %s6_s0 = inlined_call_operand.vmem [shape: f32[128], index: 0, kind: output, shape index: {}]  }

// kernel: init_layer_forward.1
= control target key start
LH: loop header
LB: loop body
LE: loop exit
PB: predicated region body
PF: predicated region fallthrough
CT: control target
= control target key end

     0   :  { %s7401_s21 = smov 0   ;;  %s7403_s22 = smov 0   ;;  %s9111_s0 = inlined_call_operand.vmem [shape: bf16[8,64], index: 0, kind: input, shape index: {}]   ;;  %s9112_s1 = inlined_call_operand.vmem [shape: bf16[64,2048], index: 1, kind: input, shape index: {}, may-alias: {1,2}]   ;;  %s9113_s2 = inlined_call_operand.vmem [shape: bf16[64,2048], index: 2, kind: input, shape index: {}, may-alias: {1,2}]   ;;  %s9114_s3 = inlined_call_operand.vmem [shape: f32[4,1024], index: 3, kind: input, shape index: {}]   ;;  %s9115_s4 = inlined_call_operand.vmem [shape: f32[256,16], index: 4, kind: input, shape index: {}]   ;;  %s9116_s5 = inlined_call_operand.vmem [shape: f32[16,256], index: 5, kind: input, shape index: {}]   ;;  %s9117_s6 = inlined_call_operand.vmem [shape: f32[8,1024], index: 6, kind: output, shape index: {}]  }
   0x1   :  { %s7405_s23 = smov 0   ;;  %s7407_s24 = smov 0  }
   0x2   :  { %s7409_s25 = smov 0  }
   0x3 LB: > { %s6359_s26 = sadd.s32 4294967295, %s7362_s25   ;;  %s7428_s27 = sadd.s32 1, %s7362_s25   ;;  %s7362_s25 = sphi %s7409_s25, %s9883_s25   ;;  %s7358_s24 = sphi %s7407_s24, %s9882_s24   ;;  %s7354_s23 = sphi %s7405_s23, %s9881_s23   ;;  %s7350_s22 = sphi %s7403_s22, %s9880_s22   ;;  %s7346_s21 = sphi %s7401_s21, %s9879_s21  }
   0x4   : > { %s41_s28 = ssub.s32 %s7362_s25, %s7428_s27  ;;  %s44_s29 = sadd.s32 1, %s7358_s24 }
   0x5   : > { %p42_p0 = scmp.eq.s32.totalorder %s41_s28, 0  ;;  %p51_p1 = scmp.ne.s32.totalorder %s7358_s24, %s7354_s23 }
   0x6   : > { %p52_p2 = scmp.eq.s32.totalorder %s7362_s25, 0  ;;  %s67_s30 = sadd.s32 4, %s7362_s25 }
   0x7   : > { %s7438_s7 = scalar_select %p42_p0, %s7358_s24, %s44_s29  }
   0x8   : > { %p53_p3 = por %p52_p2, %p51_p1  ;;  %s68_s8 = sadd.s32 4, %s7428_s27 }
   0x9   : > { %s69_s9 = ssub.s32 %s67_s30, %s68_s8  ;;  %s72_s10 = sadd.s32 1, %s7350_s22 }
   0xa   : > { %p70_p4 = scmp.eq.s32.totalorder %s69_s9, 0  ;;  %p79_p5 = scmp.ne.s32.totalorder %s7350_s22, %s7346_s21 }
   0xb   : > { %p6362_p7 = scmp.ge.s32.totalorder %s7362_s25, 4 }
   0xc   : > { %s7445_s11 = scalar_select %p70_p4, %s7350_s22, %s72_s10  }
   0xd   : > { %p7447_p6 = por %p79_p5, %p52_p2  ;;  %208 = sbr.rel (%p6362_p7) target bundleno = 42 (0x2a), region = 28 }
  0x12   : > { %211 = sbr.rel (!%p53_p3) target bundleno = 30 (0x1e), region = 32  ;;  %s213_s13 = sand.u32 (%p53_p3), 1, %s7358_s24  }
  0x13   : > { %s6405_s14 = sshll.u32 (%p53_p3), %s7362_s25, 3  ;;  %s6363_s15 = sshll.u32 (%p53_p3), %s213_s13, 6 }
  0x14   : > { %s218_s18 = scalar_lea.vmem (%p53_p3), %s9112_s1, %s6405_s14  ;;  %s215_s19 = scalar_lea.vmem (%p53_p3), [#allocation2], %s6363_s15 }
  0x15   : > { %v261_v0 = vld [vmem:[%s218_s18] sm:$0xff] (%p53_p3) }
  0x16   : > { %v263_v1 = vld [vmem:[%s218_s18 + $0x40] sm:$0xff] (%p53_p3)  ;;  %262 = vst [vmem:[%s215_s19] sm:$0xff] (%p53_p3), %v261_v0 }
  0x17   : > { %v265_v2 = vld [vmem:[%s218_s18 + $0x80] sm:$0xff]  ;;  %264 = vst [vmem:[%s215_s19 + $0x8] sm:$0xff] %v263_v1 }
  0x18   : > { %266 = vst [vmem:[%s215_s19 + $0x10] sm:$0xff] %v265_v2  ;;  %v267_v3 = vld [vmem:[%s218_s18 + $0xc0] sm:$0xff] }
  0x19   : > { %v269_v4 = vld [vmem:[%s218_s18 + $0x100] sm:$0xff]  ;;  %268 = vst [vmem:[%s215_s19 + $0x18] sm:$0xff] %v267_v3 }
  0x1a   : > { %v271_v5 = vld [vmem:[%s218_s18 + $0x140] sm:$0xff]  ;;  %270 = vst [vmem:[%s215_s19 + $0x20] sm:$0xff] %v269_v4 }
  0x1b   : > { %272 = vst [vmem:[%s215_s19 + $0x28] sm:$0xff] %v271_v5  ;;  %v273_v6 = vld [vmem:[%s218_s18 + $0x180] sm:$0xff] }
  0x1c   : > { %v275_v7 = vld [vmem:[%s218_s18 + $0x1c0] sm:$0xff]  ;;  %274 = vst [vmem:[%s215_s19 + $0x30] sm:$0xff] %v273_v6 }
  0x1d   : > { %276 = vst [vmem:[%s215_s19 + $0x38] sm:$0xff] %v275_v7 }
  0x1e PF: > { %282 = sbr.rel (!%p7447_p6) target bundleno = 42 (0x2a), region = 70  ;;  %s284_s20 = sand.u32 (%p7447_p6), 1, %s7350_s22  }
  0x1f   : > { %s6367_s28 = sshll.u32 (%p7447_p6), %s7362_s25, 3  ;;  %s6366_s29 = sshll.u32 (%p7447_p6), %s284_s20, 6 }
  0x20   : > { %s6295_s9 = scalar_lea.vmem (%p7447_p6), %s9113_s2, %s6367_s28  ;;  %s286_s10 = scalar_lea.vmem (%p7447_p6), [#allocation3], %s6366_s29 }
  0x21   : > { %v6368_v8 = vld [vmem:[%s6295_s9 + $0x20] sm:$0xff] (%p7447_p6) }
  0x22   : > { %v6369_v9 = vld [vmem:[%s6295_s9 + $0x60] sm:$0xff] (%p7447_p6)  ;;  %334 = vst [vmem:[%s286_s10] sm:$0xff] (%p7447_p6), %v6368_v8 }
  0x23   : > { %v6370_v10 = vld [vmem:[%s6295_s9 + $0xa0] sm:$0xff]  ;;  %336 = vst [vmem:[%s286_s10 + $0x8] sm:$0xff] %v6369_v9 }
  0x24   : > { %338 = vst [vmem:[%s286_s10 + $0x10] sm:$0xff] %v6370_v10  ;;  %v6371_v11 = vld [vmem:[%s6295_s9 + $0xe0] sm:$0xff] }
  0x25   : > { %v6372_v12 = vld [vmem:[%s6295_s9 + $0x120] sm:$0xff]  ;;  %340 = vst [vmem:[%s286_s10 + $0x18] sm:$0xff] %v6371_v11 }
  0x26   : > { %v6373_v13 = vld [vmem:[%s6295_s9 + $0x160] sm:$0xff]  ;;  %342 = vst [vmem:[%s286_s10 + $0x20] sm:$0xff] %v6372_v12 }
  0x27   : > { %344 = vst [vmem:[%s286_s10 + $0x28] sm:$0xff] %v6373_v13  ;;  %v6374_v14 = vld [vmem:[%s6295_s9 + $0x1a0] sm:$0xff] }
  0x28   : > { %v6375_v15 = vld [vmem:[%s6295_s9 + $0x1e0] sm:$0xff]  ;;  %346 = vst [vmem:[%s286_s10 + $0x30] sm:$0xff] %v6374_v14 }
  0x29   : > { %348 = vst [vmem:[%s286_s10 + $0x38] sm:$0xff] %v6375_v15 }
  0x2a PF: > { %p6376_p8 = scmp.ge.s32.totalorder %s7362_s25, 1  ;;  %p362_p9 = scmp.lt.s32.totalorder %s7362_s25, 5 }
  0x2c   : > { %p363_p10 = pnand %p6376_p8, %p362_p9 }
  0x2e   : > { %366 = sbr.rel (%p363_p10) target bundleno = 1427 (0x593), region = 112 }
  0x33   : > { %s369_s12 = sand.u32 1, %s7354_s23   ;;  %s376_s13 = sand.u32 1, %s7346_s21   ;;  %v7364_v16 = vmov 0   ;;  %v645_v17 = vld [vmem:[%s9115_s4 + $0xf8] sm:$0xff]  ;;  %v644_v23 = vld [vmem:[%s9115_s4 + $0xf0] sm:$0xff]  ;;  %v643_v42 = vld [vmem:[%s9115_s4 + $0xe8] sm:$0xff] }
  0x34   : > { %s6377_s14 = sshll.u32 %s369_s12, 6  ;;  %515 = vmatprep.mubr.bf16.mxu0 %v7364_v16  ;;  %604 = vmatprep.mubr.bf16.mxu1 %v7364_v16  ;;  %v629_v18 = vld [vmem:[%s9115_s4 + $0x78] sm:$0xff]  ;;  %s6378_s20 = sshll.u32 %s376_s13, 6  ;;  %v7474_v22 = vand.u32 4294901760, %v645_v17  ;;  %v628_v26 = vld [vmem:[%s9115_s4 + $0x70] sm:$0xff]  ;;  %v7486_v28 = vand.u32 4294901760, %v644_v23 }
  0x35   : > { %s371_s19 = scalar_lea.vmem [#allocation2], %s6377_s14  ;;  %v7479_v25 = vand.u32 4294901760, %v629_v18  ;;  %s7484_s30 = scalar_lea.vmem [#allocation3], %s6378_s20  ;;  %v7497_v35 = vand.u32 4294901760, %v628_v26  ;;  %v7516_v45 = vand.u32 4294901760, %v643_v42  ;;  %v627_v46 = vld [vmem:[%s9115_s4 + $0x68] sm:$0xff] }
  0x36   : > { %v7288_v19 = vld [vmem:[%s371_s19 + $0x34] ss:$8 sps:$4 sm:$0xff]   ;;  %v7290_v20 = vld [vmem:[%s371_s19 + $0x30] ss:$8 sps:$4 sm:$0xff]   ;;  %v7291_v21 = vld [vmem:[%s371_s19 + $0x24] ss:$8 sps:$4 sm:$0xff]   ;;  %v7491_v31 = vsub.f32 %v645_v17, %v7474_v22  ;;  %v7501_v38 = vsub.f32 %v644_v23, %v7486_v28 }
  0x37   : > { %491 = vmatprep.subr.bf16.mxu0 %v7288_v19  ;;  %v7293_v24 = vld [vmem:[%s371_s19 + $0x20] ss:$8 sps:$4 sm:$0xff]   ;;  %v7294_v27 = vld [vmem:[%s371_s19 + $0x14] ss:$8 sps:$4 sm:$0xff]   ;;  %v7302_v30 = vld [vmem:[%s7484_s30 + $0x30] ss:$8 sps:$4 sm:$0xff]   ;;  %v7495_v34 = vsub.f32 %v629_v18, %v7479_v25  ;;  %v7514_v44 = vsub.f32 %v628_v26, %v7497_v35  ;;  %v7547_v57 = vsub.f32 %v643_v42, %v7516_v45 }
  0x38   : > { %492 = vmatpush1.bf16.msra.mxu0 %v7290_v20  ;;  %v7300_v29 = vld [vmem:[%s7484_s30 + $0x34] ss:$8 sps:$4 sm:$0xff]   ;;  %9406 = vst [vmem:[#allocation4_spill] sm:$0xff] %v7491_v31  ;;  %v7296_v32 = vld [vmem:[%s371_s19 + $0x10] ss:$8 sps:$4 sm:$0xff]   ;;  %9408 = vst [vmem:[#allocation6_spill] sm:$0xff] %v7501_v38 }
  0x39   : > { %493 = vmatprep.subr.bf16.mxu0 %v7291_v21  ;;  %v7303_v33 = vld [vmem:[%s7484_s30 + $0x24] ss:$8 sps:$4 sm:$0xff]   ;;  %9407 = vst [vmem:[#allocation5_spill] sm:$0xff] %v7495_v34  ;;  %580 = vmatprep.subr.bf16.mxu1 %v7300_v29  ;;  %v7305_v37 = vld [vmem:[%s7484_s30 + $0x20] ss:$8 sps:$4 sm:$0xff]   ;;  %v7505_v41 = vand.u32 4294901760, %v7491_v31 }
  0x3a   : > { %v7297_v36 = vld [vmem:[%s371_s19 + $0x4] ss:$8 sps:$4 sm:$0xff]   ;;  %581 = vmatpush1.bf16.msra.mxu1 %v7302_v30  ;;  %v7299_v39 = vld [vmem:[%s371_s19] ss:$8 sps:$4 sm:$0xff]   ;;  %v7306_v40 = vld [vmem:[%s7484_s30 + $0x14] ss:$8 sps:$4 sm:$0xff]  }
  0x3b   : > { %582 = vmatprep.subr.bf16.mxu1 %v7303_v33  ;;  %9409 = vst [vmem:[#allocation7_spill] sm:$0xff] %v7505_v41  ;;  %v7511_v43 = vand.u32 4294901760, %v7495_v34  ;;  %9411 = vst [vmem:[#allocation9_spill] sm:$0xff] %v7514_v44  ;;  %v642_v47 = vld [vmem:[%s9115_s4 + $0xe0] sm:$0xff]  ;;  %v7527_v49 = vand.u32 4294901760, %v627_v46  ;;  %v641_v52 = vld [vmem:[%s9115_s4 + $0xd8] sm:$0xff]  ;;  %v904_v62 = vsub.f32 %v7491_v31, %v7505_v41 }
  0x3c   : > { %494 = vmatpush1.bf16.msra.mxu0 %v7293_v24  ;;  %v626_v48 = vld [vmem:[%s9115_s4 + $0x60] sm:$0xff]  ;;  %v7529_v50 = vand.u32 4294901760, %v642_v47  ;;  %v625_v53 = vld [vmem:[%s9115_s4 + $0x58] sm:$0xff]  ;;  %v640_v54 = vld [vmem:[%s9115_s4 + $0xd0] sm:$0xff]  ;;  %v7544_v56 = vand.u32 4294901760, %v7501_v38  ;;  %9413 = vst [vmem:[#allocation11_spill] sm:$0xff] %v7547_v57 }
  0x3d   : > { %495 = vmatprep.subr.bf16.mxu0 %v7294_v27  ;;  %9410 = vst [vmem:[#allocation8_spill] sm:$0xff] %v7511_v43  ;;  %v7531_v51 = vand.u32 4294901760, %v626_v48  ;;  %v7308_v55 = vld [vmem:[%s7484_s30 + $0x10] ss:$8 sps:$4 sm:$0xff]   ;;  %v7549_v58 = vand.u32 4294901760, %v641_v52  ;;  %v7551_v59 = vand.u32 4294901760, %v625_v53  ;;  %v7560_v63 = vsub.f32 %v627_v46, %v7527_v49 }
  0x3e   : > { %583 = vmatpush1.bf16.msra.mxu1 %v7305_v37  ;;  %9412 = vst [vmem:[#allocation10_spill] sm:$0xff] %v7544_v56  ;;  %v624_v60 = vld [vmem:[%s9115_s4 + $0x50] sm:$0xff]  ;;  %v7309_v61 = vld [vmem:[%s7484_s30 + $0x4] ss:$8 sps:$4 sm:$0xff]   ;;  %v7563_v0 = vsub.f32 %v642_v47, %v7529_v50  ;;  %v7565_v1 = vand.u32 4294901760, %v640_v54  ;;  %vm479_vm0 = vcmask 523264   ;;  %v792_v6 = vsub.f32 %v7495_v34, %v7511_v43 }
  0x3f   : > { %584 = vmatprep.subr.bf16.mxu1 %v7306_v40  ;;  %9414 = vst [vmem:[#allocation12_spill] sm:$0xff] %v7560_v63  ;;  %v430_v2 = vld [vmem:[%s9111_s0] sm:$0xf]  ;;  %v7571_v3 = vand.u32 4294901760, %v7514_v44  ;;  %v7574_v4 = vsub.f32 %v626_v48, %v7531_v51  ;;  %v7576_v5 = vand.u32 4294901760, %v624_v60  ;;  %v7581_v7 = vand.u32 4294901760, %v7547_v57 }
  0x40   : > { %496 = vmatpush1.bf16.msra.mxu0 %v7296_v32  ;;  %9415 = vst [vmem:[#allocation13_spill] sm:$0xff] %v7563_v0  ;;  %v7585_v8 = vsub.f32 %v641_v52, %v7549_v58  ;;  %v7311_v9 = vld [vmem:[%s7484_s30] ss:$8 sps:$4 sm:$0xff]   ;;  %v911_v10 = vsub.f32 %v7501_v38, %v7544_v56  ;;  %v7591_v11 = vand.u32 4294901760, %v7560_v63  ;;  %v7594_v12 = vsub.f32 %v625_v53, %v7551_v59  ;;  %v616_v56 = vld [vmem:[%s9115_s4 + $0x10] sm:$0xff]  ;;  %s6379_s29 = sshll.u32 %s6359_s26, 1 }
  0x41   : > { %497 = vmatprep.subr.bf16.mxu0 %v7297_v36  ;;  %9416 = vst [vmem:[#allocation14_spill] sm:$0xff] %v7571_v3  ;;  %9417 = vst [vmem:[#allocation15_spill] sm:$0xff] %v7574_v4  ;;  %v7597_v13 = vand.u32 4294901760, %v904_v62  ;;  %v7600_v14 = vand.u32 4294901760, %v7563_v0  ;;  %v7603_v15 = vsub.f32 %v640_v54, %v7565_v1  ;;  %v639_v16 = vld [vmem:[%s9115_s4 + $0xc8] sm:$0xff]  ;;  %v799_v17 = vsub.f32 %v7514_v44, %v7571_v3  ;;  %v638_v21 = vld [vmem:[%s9115_s4 + $0xc0] sm:$0xff] }
  0x42   : > { %9418 = vst [vmem:[#allocation16_spill] sm:$0xff] %v7581_v7  ;;  %9419 = vst [vmem:[#allocation17_spill] sm:$0xff] %v7585_v8  ;;  %585 = vmatpush1.bf16.msra.mxu1 %v7308_v55  ;;  %v7611_v18 = vand.u32 4294901760, %v7574_v4  ;;  %v7615_v19 = vsub.f32 %v624_v60, %v7576_v5  ;;  %v623_v20 = vld [vmem:[%s9115_s4 + $0x48] sm:$0xff]  ;;  %v7623_v23 = vand.u32 4294901760, %v792_v6  ;;  %v918_v24 = vsub.f32 %v7547_v57, %v7581_v7  ;;  %p418_p11 = scmp.lt.s32.totalorder %s6379_s29, 7 }
  0x43   : > { %9420 = vst [vmem:[#allocation18_spill] sm:$0xff] %v7591_v11  ;;  %9421 = vst [vmem:[#allocation19_spill] sm:$0xff] %v7594_v12  ;;  %586 = vmatprep.subr.bf16.mxu1 %v7309_v61  ;;  %v7628_v26 = vand.u32 4294901760, %v7585_v8  ;;  %v7631_v27 = vand.u32 4294901760, %v911_v10  ;;  %v806_v29 = vsub.f32 %v7560_v63, %v7591_v11  ;;  %v7636_v30 = vand.u32 4294901760, %v7594_v12  ;;  %v631_v41 = vld [vmem:[%s9115_s4 + $0x88] sm:$0xff] }
  0x44   : > { %498 = vmatpush1.bf16.msra.mxu0 %v7299_v39  ;;  %9422 = vst [vmem:[#allocation20_spill] sm:$0xff] %v7597_v13  ;;  %9423 = vst [vmem:[#allocation21_spill] sm:$0xff] %v7600_v14  ;;  %v7639_v32 = vand.u32 4294901760, %v639_v16  ;;  %v925_v33 = vsub.f32 %v7563_v0, %v7600_v14  ;;  %v7645_v36 = vand.u32 4294901760, %v7603_v15  ;;  %v7648_v37 = vand.u32 4294901760, %v623_v20  ;;  %s9885_s29 = smov (!%p418_p11, %s6379_s29), 7 }
  0x45   : > { %6406 = vmatprep.subr.mxu0 %v7474_v22  ;;  %9424 = vst [vmem:[#allocation22_spill] sm:$0xff] %v7603_v15  ;;  %9425 = vst [vmem:[#allocation23_spill] sm:$0xff] %v7611_v18  ;;  %v7650_v39 = vand.u32 4294901760, %v638_v21  ;;  %v7652_v40 = vand.u32 4294901760, %v799_v17  ;;  %v813_v42 = vsub.f32 %v7574_v4, %v7611_v18  ;;  %v7657_v46 = vand.u32 4294901760, %v7615_v19  ;;  %s6380_s25 = sshll.u32 %s9885_s29, 2 }
  0x46   : > { %9426 = vst [vmem:[#allocation24_spill] sm:$0xff] %v7615_v19  ;;  %9427 = vst [vmem:[#allocation25_spill] sm:$0xff] %v7623_v23  ;;  %587 = vmatpush1.bf16.msra.mxu1 %v7311_v9  ;;  %v7660_v47 = vsub.f32 %v639_v16, %v7639_v32  ;;  %v7664_v48 = vand.u32 4294901760, %v918_v24  ;;  %v932_v52 = vsub.f32 %v7585_v8, %v7628_v26  ;;  %v7676_v55 = vand.u32 4294901760, %v806_v29  ;;  %s421_s9 = scalar_lea.vmem %s9114_s3, %s6380_s25  ;;  %s6382_s30 = sshll.u32 %s9885_s29, 3 }
  0x47   : > { %6391 = vmatmul.mubr.msk.bf16.vlgmr.msra.gmra.mxu0 %vm479_vm0, %v430_v2  ;;  %9428 = vst [vmem:[#allocation26_spill] sm:$0xff] %v7628_v26  ;;  %9429 = vst [vmem:[#allocation27_spill] sm:$0xff] %v7631_v27  ;;  %6441 = vmatprep.subr.mxu1 %v7597_v13  ;;  %v7669_v53 = vsub.f32 %v623_v20, %v7648_v37  ;;  %v7673_v54 = vsub.f32 %v638_v21, %v7650_v39  ;;  %v7685_v62 = vand.u32 4294901760, %v925_v33  ;;  %vm2406_vm1 = vcmask 130048   ;;  %s427_s13 = scalar_lea.vmem %s9117_s6, %s6382_s30 }
  0x48   : > { %6407 = vmatpush3.msra.mxu0 %v7479_v25  ;;  %9430 = vst [vmem:[#allocation28_spill] sm:$0xff] %v7636_v30  ;;  %9431 = vst [vmem:[#allocation29_spill] sm:$0xff] %v7639_v32  ;;  %v820_v60 = vsub.f32 %v7594_v12, %v7636_v30  ;;  %v7681_v61 = vand.u32 4294901760, %v7660_v47  ;;  %v7697_v10 = vand.u32 4294901760, %v813_v42  ;;  %v827_v16 = vsub.f32 %v7615_v19, %v7657_v46 }
  0x49   : > { %6408 = vmatprep.subr.mxu0 %v7486_v28  ;;  %9432 = vst [vmem:[#allocation30_spill] sm:$0xff] %v7645_v36  ;;  %9433 = vst [vmem:[#allocation31_spill] sm:$0xff] %v7648_v37  ;;  %6400 = vmatmul.mubr.msk.bf16.vlgmr.msra.gmra.mxu1 %vm479_vm0, %v430_v2  ;;  %v939_v2 = vsub.f32 %v7603_v15, %v7645_v36  ;;  %v7690_v6 = vand.u32 4294901760, %v7669_v53  ;;  %v7693_v9 = vand.u32 4294901760, %v7673_v54  ;;  %v7703_v17 = vand.u32 4294901760, %v932_v52 }
  0x4a   : > { %6409 = vmatpush3.msra.mxu0 %v7497_v35  ;;  %9434 = vst [vmem:[#allocation32_spill] sm:$0xff] %v7650_v39  ;;  %9435 = vst [vmem:[#allocation33_spill] sm:$0xff] %v7652_v40  ;;  %6442 = vmatpush3.msra.mxu1 %v7623_v23  ;;  %v946_v20 = vsub.f32 %v7660_v47, %v7681_v61  ;;  %v7709_v21 = vand.u32 4294901760, %v820_v60  ;;  %v7721_v42 = vand.u32 4294901760, %v827_v16  ;;  %v622_v16 = vld [vmem:[%s9115_s4 + $0x40] sm:$0xff] }
  0x4b   : > { %6410 = vmatprep.subr.mxu0 %v7516_v45  ;;  %9436 = vst [vmem:[#allocation34_spill] sm:$0xff] %v7657_v46  ;;  %9437 = vst [vmem:[#allocation35_spill] sm:$0xff] %v7660_v47  ;;  %6443 = vmatprep.subr.mxu1 %v7631_v27  ;;  %v834_v24 = vsub.f32 %v7669_v53, %v7690_v6  ;;  %v7715_v29 = vand.u32 4294901760, %v939_v2  ;;  %v953_v33 = vsub.f32 %v7673_v54, %v7693_v9 }
  0x4c   : > { %6411 = vmatpush3.msra.mxu0 %v7527_v49  ;;  %9438 = vst [vmem:[#allocation36_spill] sm:$0xff] %v7664_v48  ;;  %9439 = vst [vmem:[#allocation37_spill] sm:$0xff] %v7669_v53  ;;  %6444 = vmatpush3.msra.mxu1 %v7652_v40  ;;  %v7725_v52 = vand.u32 4294901760, %v946_v20  ;;  %v7741_v20 = vand.u32 4294901760, %v622_v16 }
  0x4d   : > { %6412 = vmatprep.subr.mxu0 %v7529_v50  ;;  %9440 = vst [vmem:[#allocation38_spill] sm:$0xff] %v7673_v54  ;;  %9441 = vst [vmem:[#allocation39_spill] sm:$0xff] %v7676_v55  ;;  %6445 = vmatprep.subr.mxu1 %v7664_v48  ;;  %v7729_v60 = vand.u32 4294901760, %v834_v24  ;;  %v7732_v2 = vand.u32 4294901760, %v953_v33  ;;  %v637_v24 = vld [vmem:[%s9115_s4 + $0xb8] sm:$0xff] }
  0x4e   : > { %9442 = vst [vmem:[#allocation40_spill] sm:$0xff] %v7681_v61  ;;  %6413 = vmatpush3.msra.mxu0 %v7531_v51  ;;  %9443 = vst [vmem:[#allocation41_spill] sm:$0xff] %v7685_v62  ;;  %6446 = vmatpush3.msra.mxu1 %v7676_v55  ;;  %v7746_v33 = vand.u32 4294901760, %v637_v24 }
  0x4f   : > { %9444 = vst [vmem:[#allocation42_spill] sm:$0xff] %v7690_v6  ;;  %9445 = vst [vmem:[#allocation43_spill] sm:$0xff] %v7693_v9  ;;  %6414 = vmatprep.subr.mxu0 %v7549_v58  ;;  %6447 = vmatprep.subr.mxu1 %v7685_v62 }
  0x50   : > { %9446 = vst [vmem:[#allocation44_spill] sm:$0xff] %v7697_v10  ;;  %6415 = vmatpush3.msra.mxu0 %v7551_v59  ;;  %9447 = vst [vmem:[#allocation45_spill] sm:$0xff] %v7703_v17  ;;  %6448 = vmatpush3.msra.mxu1 %v7697_v10 }
  0x51   : > { %6416 = vmatprep.subr.mxu0 %v7565_v1  ;;  %9448 = vst [vmem:[#allocation46_spill] sm:$0xff] %v7709_v21  ;;  %9449 = vst [vmem:[#allocation47_spill] sm:$0xff] %v7715_v29  ;;  %6449 = vmatprep.subr.mxu1 %v7703_v17  ;;  %v620_v17 = vld [vmem:[%s9115_s4 + $0x30] sm:$0xff] }
  0x52   : > { %6417 = vmatpush3.msra.mxu0 %v7576_v5  ;;  %9450 = vst [vmem:[#allocation48_spill] sm:$0xff] %v7721_v42  ;;  %9451 = vst [vmem:[#allocation49_spill] sm:$0xff] %v7725_v52  ;;  %6450 = vmatpush3.msra.mxu1 %v7709_v21  ;;  %v7775_v62 = vand.u32 4294901760, %v620_v17 }
  0x53   : > { %6418 = vmatprep.subr.mxu0 %v7639_v32  ;;  %9452 = vst [vmem:[#allocation50_spill] sm:$0xff] %v7729_v60  ;;  %6451 = vmatprep.subr.mxu1 %v7715_v29  ;;  %9453 = vst [vmem:[#allocation51_spill] sm:$0xff] %v7732_v2  ;;  %v7761_v29 = vsub.f32 %v637_v24, %v7746_v33  ;;  %v635_v24 = vld [vmem:[%s9115_s4 + $0xa8] sm:$0xff] }
  0x54   : > { %6419 = vmatpush3.msra.mxu0 %v7648_v37  ;;  %6452 = vmatpush3.msra.mxu1 %v7721_v42  ;;  %9454 = vst [vmem:[#allocation52_spill] sm:$0xff] %v7741_v20  ;;  %9455 = vst [vmem:[#allocation53_spill] sm:$0xff] %v7746_v33  ;;  %v636_v42 = vld [vmem:[%s9115_s4 + $0xb0] sm:$0xff]  ;;  %v7787_v40 = vand.u32 4294901760, %v635_v24  ;;  %v7799_v13 = vsub.f32 %v620_v17, %v7775_v62  ;;  %v618_v17 = vld [vmem:[%s9115_s4 + $0x20] sm:$0xff] }
  0x55   : > { %6420 = vmatprep.subr.mxu0 %v7650_v39  ;;  %6453 = vmatprep.subr.mxu1 %v7725_v52  ;;  %v621_v52 = vld [vmem:[%s9115_s4 + $0x38] sm:$0xff]  ;;  %9458 = vst [vmem:[#allocation56_spill] sm:$0xff] %v7761_v29  ;;  %v7763_v21 = vand.u32 4294901760, %v636_v42  ;;  %9462 = vst [vmem:[#allocation60_spill] sm:$0xff] %v7775_v62  ;;  %v7782_v55 = vand.u32 4294901760, %v7761_v29  ;;  %v7857_v7 = vand.u32 4294901760, %v618_v17 }
  0x56   : > { %6454 = vmatpush3.msra.mxu1 %v7729_v60  ;;  %v7752_v60 = vsub.f32 %v622_v16, %v7741_v20  ;;  %6421 = vmatpush3.msra.mxu0 %v7741_v20  ;;  %9465 = vst [vmem:[#allocation63_spill] sm:$0xff] %v7787_v40  ;;  %9467 = vst [vmem:[#allocation65_spill] sm:$0xff] %v7799_v13 }
  0x57   : > { %6455 = vmatprep.subr.mxu1 %v7732_v2  ;;  %v7754_v2 = vand.u32 4294901760, %v621_v52  ;;  %9459 = vst [vmem:[#allocation57_spill] sm:$0xff] %v7763_v21  ;;  %6422 = vmatprep.subr.mxu0 %v7746_v33  ;;  %9463 = vst [vmem:[#allocation61_spill] sm:$0xff] %v7782_v55  ;;  %v7785_v48 = vsub.f32 %v636_v42, %v7763_v21  ;;  %v634_v42 = vld [vmem:[%s9115_s4 + $0xa0] sm:$0xff]  ;;  %v960_v6 = vsub.f32 %v7761_v29, %v7782_v55 }
  0x58   : > { %9456 = vst [vmem:[#allocation54_spill] sm:$0xff] %v7752_v60  ;;  %v7770_v16 = vand.u32 4294901760, %v7752_v60  ;;  %v7815_v46 = vand.u32 4294901760, %v634_v42  ;;  %v7826_v55 = vand.u32 4294901760, %v7799_v13  ;;  %9480 = vst [vmem:[#allocation78_spill] sm:$0xff] %v7857_v7 }
  0x59   : > { %9457 = vst [vmem:[#allocation55_spill] sm:$0xff] %v7754_v2  ;;  %v7773_v10 = vsub.f32 %v621_v52, %v7754_v2  ;;  %6423 = vmatpush3.msra.mxu0 %v7754_v2  ;;  %9464 = vst [vmem:[#allocation62_spill] sm:$0xff] %v7785_v48  ;;  %v619_v52 = vld [vmem:[%s9115_s4 + $0x28] sm:$0xff]  ;;  %v7810_v61 = vand.u32 4294901760, %v7785_v48  ;;  %v7835_v18 = vand.u32 4294901760, %v960_v6 }
  0x5a   : > { %9460 = vst [vmem:[#allocation58_spill] sm:$0xff] %v7770_v16  ;;  %6424 = vmatprep.subr.mxu0 %v7763_v21  ;;  %v841_v27 = vsub.f32 %v7752_v60, %v7770_v16  ;;  %v7801_v9 = vand.u32 4294901760, %v619_v52  ;;  %v7813_v16 = vsub.f32 %v635_v24, %v7787_v40  ;;  %9471 = vst [vmem:[#allocation69_spill] sm:$0xff] %v7815_v46  ;;  %v633_v24 = vld [vmem:[%s9115_s4 + $0x98] sm:$0xff] }
  0x5b   : > { %9461 = vst [vmem:[#allocation59_spill] sm:$0xff] %v7773_v10  ;;  %v7796_v23 = vand.u32 4294901760, %v7773_v10  ;;  %6425 = vmatpush3.msra.mxu0 %v7775_v62  ;;  %9469 = vst [vmem:[#allocation67_spill] sm:$0xff] %v7810_v61  ;;  %v855_v6 = vsub.f32 %v7799_v13, %v7826_v55 }
  0x5c   : > { %9468 = vst [vmem:[#allocation66_spill] sm:$0xff] %v7801_v9  ;;  %9470 = vst [vmem:[#allocation68_spill] sm:$0xff] %v7813_v16  ;;  %6426 = vmatprep.subr.mxu0 %v7787_v40  ;;  %v7821_v36 = vand.u32 4294901760, %v841_v27  ;;  %v7829_v26 = vsub.f32 %v619_v52, %v7801_v9  ;;  %v967_v27 = vsub.f32 %v7785_v48, %v7810_v61  ;;  %v7840_v14 = vand.u32 4294901760, %v7813_v16  ;;  %v617_v52 = vld [vmem:[%s9115_s4 + $0x18] sm:$0xff] }
  0x5d   : > { %9466 = vst [vmem:[#allocation64_spill] sm:$0xff] %v7796_v23  ;;  %v848_v30 = vsub.f32 %v7773_v10, %v7796_v23  ;;  %9473 = vst [vmem:[#allocation71_spill] sm:$0xff] %v7826_v55  ;;  %6427 = vmatpush3.msra.mxu0 %v7801_v9  ;;  %v7843_v23 = vsub.f32 %v634_v42, %v7815_v46  ;;  %v632_v42 = vld [vmem:[%s9115_s4 + $0x90] sm:$0xff]  ;;  %v7870_v55 = vand.u32 4294901760, %v633_v24  ;;  %v7876_v43 = vand.u32 4294901760, %v855_v6 }
  0x5e   : > { %9472 = vst [vmem:[#allocation70_spill] sm:$0xff] %v7821_v36  ;;  %9474 = vst [vmem:[#allocation72_spill] sm:$0xff] %v7829_v26  ;;  %6428 = vmatprep.subr.mxu0 %v7815_v46  ;;  %6456 = vmatpush3.msra.mxu1 %v7821_v36  ;;  %v7855_v61 = vand.u32 4294901760, %v7829_v26  ;;  %v7863_v3 = vand.u32 4294901760, %v967_v27 }
  0x5f   : > { %9475 = vst [vmem:[#allocation73_spill] sm:$0xff] %v7835_v18  ;;  %9476 = vst [vmem:[#allocation74_spill] sm:$0xff] %v7840_v14  ;;  %v7850_v11 = vand.u32 4294901760, %v848_v30  ;;  %6457 = vmatprep.subr.mxu1 %v7835_v18  ;;  %v974_v30 = vsub.f32 %v7813_v16, %v7840_v14  ;;  %v7868_v36 = vand.u32 4294901760, %v7843_v23  ;;  %v7881_v18 = vsub.f32 %v618_v17, %v7857_v7 }
  0x60   : > { %9477 = vst [vmem:[#allocation75_spill] sm:$0xff] %v7843_v23  ;;  %9479 = vst [vmem:[#allocation77_spill] sm:$0xff] %v7855_v61  ;;  %v862_v27 = vsub.f32 %v7829_v26, %v7855_v61  ;;  %v7883_v14 = vand.u32 4294901760, %v617_v52  ;;  %6429 = vmatpush3.msra.mxu0 %v7857_v7  ;;  %v7897_v17 = vand.u32 4294901760, %v632_v42  ;;  %v615_v61 = vld [vmem:[%s9115_s4 + $0x8] sm:$0xff] }
  0x61   : > { %9478 = vst [vmem:[#allocation76_spill] sm:$0xff] %v7850_v11  ;;  %9481 = vst [vmem:[#allocation79_spill] sm:$0xff] %v7863_v3  ;;  %6458 = vmatpush3.msra.mxu1 %v7850_v11  ;;  %v7890_v16 = vand.u32 4294901760, %v974_v30  ;;  %v981_v6 = vsub.f32 %v7843_v23, %v7868_v36  ;;  %v7895_v11 = vsub.f32 %v633_v24, %v7870_v55  ;;  %6430 = vmatprep.subr.mxu0 %v7870_v55 }
  0x62   : > { %9482 = vst [vmem:[#allocation80_spill] sm:$0xff] %v7868_v36  ;;  %9483 = vst [vmem:[#allocation81_spill] sm:$0xff] %v7870_v55  ;;  %6459 = vmatprep.subr.mxu1 %v7863_v3  ;;  %v7904_v26 = vand.u32 4294901760, %v862_v27  ;;  %v7907_v30 = vand.u32 4294901760, %v7881_v18  ;;  %v7910_v3 = vsub.f32 %v617_v52, %v7883_v14  ;;  %v7912_v24 = vand.u32 4294901760, %v616_v56  ;;  %v630_v36 = vld [vmem:[%s9115_s4 + $0x80] sm:$0xff]  ;;  %6431 = vmatpush3.msra.mxu0 %v7883_v14 }
  0x63   : > { %9484 = vst [vmem:[#allocation82_spill] sm:$0xff] %v7876_v43  ;;  %9485 = vst [vmem:[#allocation83_spill] sm:$0xff] %v7881_v18  ;;  %6460 = vmatpush3.msra.mxu1 %v7876_v43  ;;  %v7919_v23 = vand.u32 4294901760, %v981_v6  ;;  %v7922_v27 = vand.u32 4294901760, %v7895_v11  ;;  %v7925_v43 = vsub.f32 %v632_v42, %v7897_v17  ;;  %v7927_v52 = vand.u32 4294901760, %v631_v41  ;;  %6432 = vmatprep.subr.mxu0 %v7897_v17 }
  0x64   : > { %9486 = vst [vmem:[#allocation84_spill] sm:$0xff] %v7883_v14  ;;  %9487 = vst [vmem:[#allocation85_spill] sm:$0xff] %v7890_v16  ;;  %6461 = vmatprep.subr.mxu1 %v7890_v16  ;;  %v869_v13 = vsub.f32 %v7881_v18, %v7907_v30  ;;  %v7934_v48 = vand.u32 4294901760, %v7910_v3  ;;  %v7937_v6 = vsub.f32 %v616_v56, %v7912_v24  ;;  %v7939_v16 = vand.u32 4294901760, %v615_v61  ;;  %v614_v56 = vld [vmem:[%s9115_s4] sm:$0xff] }
  0x65   : > { %9488 = vst [vmem:[#allocation86_spill] sm:$0xff] %v7895_v11  ;;  %9489 = vst [vmem:[#allocation87_spill] sm:$0xff] %v7897_v17  ;;  %6462 = vmatpush3.msra.mxu1 %v7904_v26  ;;  %6433 = vmatpush3.msra.mxu0 %v7912_v24  ;;  %v988_v42 = vsub.f32 %v7895_v11, %v7922_v27  ;;  %v7951_v18 = vand.u32 4294901760, %v630_v36 }
  0x66   : > { %9490 = vst [vmem:[#allocation88_spill] sm:$0xff] %v7904_v26  ;;  %9491 = vst [vmem:[#allocation89_spill] sm:$0xff] %v7907_v30  ;;  %6463 = vmatprep.subr.mxu1 %v7919_v23  ;;  %v7946_v26 = vand.u32 4294901760, %v7925_v43  ;;  %v7949_v30 = vsub.f32 %v631_v41, %v7927_v52  ;;  %6434 = vmatprep.subr.mxu0 %v7927_v52  ;;  %v7965_v11 = vsub.f32 %v615_v61, %v7939_v16 }
  0x67   : > { %9492 = vst [vmem:[#allocation90_spill] sm:$0xff] %v7910_v3  ;;  %9493 = vst [vmem:[#allocation91_spill] sm:$0xff] %v7912_v24  ;;  %v7957_v24 = vand.u32 4294901760, %v869_v13  ;;  %6435 = vmatpush3.msra.mxu0 %v7939_v16  ;;  %v7968_v41 = vand.u32 4294901760, %v988_v42  ;;  %v7976_v13 = vsub.f32 %v630_v36, %v7951_v18 }
  0x68   : > { %9494 = vst [vmem:[#allocation92_spill] sm:$0xff] %v7919_v23  ;;  %9495 = vst [vmem:[#allocation93_spill] sm:$0xff] %v7922_v27  ;;  %v876_v23 = vsub.f32 %v7910_v3, %v7934_v48  ;;  %v7962_v27 = vand.u32 4294901760, %v7937_v6  ;;  %v995_v17 = vsub.f32 %v7925_v43, %v7946_v26  ;;  %6436 = vmatprep.subr.mxu0 %v7951_v18  ;;  %v7985_v42 = vand.u32 4294901760, %v7965_v11 }
  0x69   : > { %9496 = vst [vmem:[#allocation94_spill] sm:$0xff] %v7925_v43  ;;  %9497 = vst [vmem:[#allocation95_spill] sm:$0xff] %v7927_v52  ;;  %v7973_v52 = vand.u32 4294901760, %v7949_v30  ;;  %6464 = vmatpush3.msra.mxu1 %v7957_v24  ;;  %v7987_v3 = vand.u32 4294901760, %v614_v56  ;;  %v7995_v43 = vand.u32 4294901760, %v7976_v13 }
  0x6a   : > { %9498 = vst [vmem:[#allocation96_spill] sm:$0xff] %v7934_v48  ;;  %9499 = vst [vmem:[#allocation97_spill] sm:$0xff] %v7937_v6  ;;  %v7980_v48 = vand.u32 4294901760, %v876_v23  ;;  %v883_v61 = vsub.f32 %v7937_v6, %v7962_v27  ;;  %6465 = vmatprep.subr.mxu1 %v7968_v41 }
  0x6b   : > { %9500 = vst [vmem:[#allocation98_spill] sm:$0xff] %v7939_v16  ;;  %9501 = vst [vmem:[#allocation99_spill] sm:$0xff] %v7946_v26  ;;  %v7990_v26 = vand.u32 4294901760, %v995_v17  ;;  %v1002_v36 = vsub.f32 %v7949_v30, %v7973_v52  ;;  %6437 = vmatpush3.msra.mxu0 %v7987_v3 }
  0x6c   : > { %9502 = vst [vmem:[#allocation100_spill] sm:$0xff] %v7949_v30  ;;  %9503 = vst [vmem:[#allocation101_spill] sm:$0xff] %v7951_v18  ;;  %6466 = vmatpush3.msra.mxu1 %v7980_v48  ;;  %v7998_v23 = vand.u32 4294901760, %v883_v61  ;;  %6476 = vmatprep.subr.mxu0 %v7491_v31 }
  0x6d   : > { %9504 = vst [vmem:[#allocation102_spill] sm:$0xff] %v7957_v24  ;;  %9505 = vst [vmem:[#allocation103_spill] sm:$0xff] %v7962_v27  ;;  %v890_v24 = vsub.f32 %v7965_v11, %v7985_v42  ;;  %v8003_v27 = vsub.f32 %v614_v56, %v7987_v3  ;;  %6467 = vmatprep.subr.mxu1 %v7990_v26  ;;  %v8007_v17 = vand.u32 4294901760, %v1002_v36 }
  0x6e   : > { %9506 = vst [vmem:[#allocation104_spill] sm:$0xff] %v7965_v11  ;;  %9507 = vst [vmem:[#allocation105_spill] sm:$0xff] %v7968_v41  ;;  %v1009_v41 = vsub.f32 %v7976_v13, %v7995_v43  ;;  %6468 = vmatpush3.msra.mxu1 %v7998_v23 }
  0x6f   : > { %9508 = vst [vmem:[#allocation106_spill] sm:$0xff] %v7973_v52  ;;  %9509 = vst [vmem:[#allocation107_spill] sm:$0xff] %v7976_v13  ;;  %v8013_v61 = vand.u32 4294901760, %v890_v24  ;;  %6469 = vmatprep.subr.mxu1 %v8007_v17 }
  0x70   : > { %9510 = vst [vmem:[#allocation108_spill] sm:$0xff] %v7980_v48  ;;  %9511 = vst [vmem:[#allocation109_spill] sm:$0xff] %v7985_v42  ;;  %v8016_v48 = vand.u32 4294901760, %v8003_v27  ;;  %v8019_v56 = vand.u32 4294901760, %v1009_v41 }
  0x71   : > { %9512 = vst [vmem:[#allocation110_spill] sm:$0xff] %v7987_v3  ;;  %9513 = vst [vmem:[#allocation111_spill] sm:$0xff] %v7990_v26  ;;  %6470 = vmatpush3.msra.mxu1 %v8013_v61 }
  0x72   : > { %9514 = vst [vmem:[#allocation112_spill] sm:$0xff] %v7995_v43  ;;  %9515 = vst [vmem:[#allocation113_spill] sm:$0xff] %v7998_v23  ;;  %v897_v36 = vsub.f32 %v8003_v27, %v8016_v48  ;;  %6471 = vmatprep.subr.mxu1 %v8019_v56 }
  0x73   : > { %9516 = vst [vmem:[#allocation114_spill] sm:$0xff] %v8003_v27  ;;  %9517 = vst [vmem:[#allocation115_spill] sm:$0xff] %v8007_v17 }
  0x74   : > { %9518 = vst [vmem:[#allocation116_spill] sm:$0xff] %v8013_v61  ;;  %9519 = vst [vmem:[#allocation117_spill] sm:$0xff] %v8016_v48  ;;  %v8025_v26 = vand.u32 4294901760, %v897_v36 }
  0x75   : > { %9520 = vst [vmem:[#allocation118_spill] sm:$0xff] %v8019_v56 }
  0x76   : > { %9521 = vst [vmem:[#allocation119_spill] sm:$0xff] %v8025_v26  ;;  %6472 = vmatpush3.msra.mxu1 %v8025_v26 }
  0x77   : > { %6511 = vmatprep.subr.mxu1 %v7474_v22 }
 0x107   : > { %v8029_v24 = vpop.f32.mrf.mxu0 }
 0x108   : > { %9522 = vst [vmem:[#allocation120_spill] sm:$0xff] %v8029_v24  ;;  %v650_v31 = vrot.slane %v8029_v24, 4 }
 0x109   : > { %v8032_v17 = vpop.f32.mrf.mxu0 }
 0x10a   : > { %9523 = vst [vmem:[#allocation121_spill] sm:$0xff] %v8032_v17  ;;  %v651_v41 = vadd.f32 %v650_v31, %v8029_v24  ;;  %v656_v61 = vrot.slane %v8032_v17, 4 }
 0x10b   : > { %v521_v23 = vpop.f32.mrf.mxu0 }
 0x10c   : > { %v652_v48 = vrot.slane %v651_v41, 2  ;;  %v657_v56 = vadd.f32 %v656_v61, %v8032_v17 }
 0x10d   : > { %v522_v36 = vpop.f32.mrf.mxu0 }
 0x10e   : > { %v653_v43 = vadd.f32 %v652_v48, %v651_v41  ;;  %v658_v42 = vrot.slane %v657_v56, 2  ;;  %v9528_v41 = vld [vmem:[#allocation68_spill] sm:$0xff]  ;;  %v9529_v36 = vld [vmem:[#allocation95_spill] sm:$0xff] }
 0x110   : > { %v654_v26 = vrot.slane %v653_v43, 1  ;;  %v659_v52 = vadd.f32 %v658_v42, %v657_v56  ;;  %v9526_v42 = vld [vmem:[#allocation65_spill] sm:$0xff]  ;;  %v9527_v56 = vld [vmem:[#allocation91_spill] sm:$0xff] }
 0x112   : > { %v660_v27 = vrot.slane %v659_v52, 1  ;;  %v655_v13 = vadd.f32 %v654_v26, %v653_v43 }
 0x114   : > { %v661_v11 = vadd.f32 %v660_v27, %v659_v52  ;;  %v8037_v30 = vand.u32 4294901760, %v655_v13  ;;  %v9524_v52 = vld [vmem:[#allocation62_spill] sm:$0xff] }
 0x116   : > { %v8039_v6 = vand.u32 4294901760, %v661_v11  ;;  %v8042_v31 = vsub.f32 %v655_v13, %v8037_v30  ;;  %v9525_v13 = vld [vmem:[#allocation87_spill] sm:$0xff] }
 0x118   : > { %1013 = vmatprep.mubr.f32.mxu1 %v8039_v6  ;;  %v773_v23 = vsub.f32 %v661_v11, %v8039_v6  ;;  %v780_v61 = vand.u32 4294901760, %v8042_v31 }
 0x119   : > { %1015 = vmatmul.mubr.f32.vlgmr.msra.gmra.mxu1 %v8037_v30 }
 0x11a   : > { %6512 = vmatpush3.msra.mxu1 %v7479_v25  ;;  %v774_v48 = vand.u32 4294901760, %v773_v23  ;;  %v781_v43 = vsub.f32 %v8042_v31, %v780_v61 }
 0x11b   : > { %6513 = vmatprep.subr.mxu1 %v7486_v28 }
 0x11c   : > { %6514 = vmatpush3.msra.mxu1 %v7497_v35  ;;  %1257 = vmatprep.mubr.f32.mxu1 %v774_v48  ;;  %v775_v26 = vsub.f32 %v773_v23, %v774_v48  ;;  %v782_v27 = vand.u32 4294901760, %v781_v43  ;;  %v9531_v48 = vld [vmem:[#allocation75_spill] sm:$0xff]  ;;  %v663_v43 = vmul.f32 %v8032_v17, %v8032_v17  ;;  %v9535_v17 = vld [vmem:[#allocation94_spill] sm:$0xff] }
 0x11d   : > { %6515 = vmatprep.subr.mxu1 %v7516_v45 }
 0x11e   : > { %6516 = vmatpush3.msra.mxu1 %v7527_v49  ;;  %v776_v11 = vand.u32 4294901760, %v775_v26  ;;  %v9532_v26 = vld [vmem:[#allocation83_spill] sm:$0xff] }
 0x11f   : > { %6517 = vmatprep.subr.mxu1 %v7529_v50 }
 0x120   : > { %6518 = vmatpush3.msra.mxu1 %v7531_v51  ;;  %777 = vmatprep.mubr.f32.mxu0 %v776_v11  ;;  %v9533_v11 = vld [vmem:[#allocation86_spill] sm:$0xff] }
 0x121   : > { %6519 = vmatprep.subr.mxu1 %v7549_v58  ;;  %783 = vmatmul.mubr.f32.vlgmr.msra.gmra.mxu0 %v782_v27  ;;  %v9534_v27 = vld [vmem:[#allocation90_spill] sm:$0xff] }
 0x122   : > { %6477 = vmatpush3.msra.mxu0 %v7495_v34  ;;  %6520 = vmatpush3.msra.mxu1 %v7551_v59 }
 0x123   : > { %6478 = vmatprep.subr.mxu0 %v7501_v38  ;;  %1150 = vmatprep.mubr.f32.mxu0 %v773_v23  ;;  %v9530_v23 = vld [vmem:[#allocation72_spill] sm:$0xff] }
 0x124   : > { %6521 = vmatprep.subr.mxu1 %v7565_v1  ;;  %6479 = vmatpush3.msra.mxu0 %v7514_v44 }
 0x125   : > { %6522 = vmatpush3.msra.mxu1 %v7576_v5  ;;  %6480 = vmatprep.subr.mxu0 %v7547_v57 }
 0x126   : > { %6523 = vmatprep.subr.mxu1 %v7639_v32  ;;  %6481 = vmatpush3.msra.mxu0 %v7560_v63 }
 0x127   : > { %6524 = vmatpush3.msra.mxu1 %v7648_v37  ;;  %6482 = vmatprep.subr.mxu0 %v7563_v0 }
 0x128   : > { %6525 = vmatprep.subr.mxu1 %v7650_v39  ;;  %6483 = vmatpush3.msra.mxu0 %v7574_v4 }
 0x129   : > { %6526 = vmatpush3.msra.mxu1 %v7741_v20  ;;  %6484 = vmatprep.subr.mxu0 %v7585_v8 }
 0x12a   : > { %6527 = vmatprep.subr.mxu1 %v7746_v33  ;;  %6485 = vmatpush3.msra.mxu0 %v7594_v12 }
 0x12b   : > { %6528 = vmatpush3.msra.mxu1 %v7754_v2  ;;  %6486 = vmatprep.subr.mxu0 %v7603_v15 }
 0x12c   : > { %6529 = vmatprep.subr.mxu1 %v7763_v21  ;;  %6487 = vmatpush3.msra.mxu0 %v7615_v19 }
 0x12d   : > { %6530 = vmatpush3.msra.mxu1 %v7775_v62  ;;  %6488 = vmatprep.subr.mxu0 %v7660_v47 }
 0x12e   : > { %6531 = vmatprep.subr.mxu1 %v7787_v40  ;;  %6489 = vmatpush3.msra.mxu0 %v7669_v53 }
 0x12f   : > { %6532 = vmatpush3.msra.mxu1 %v7801_v9  ;;  %6490 = vmatprep.subr.mxu0 %v7673_v54 }
 0x130   : > { %6533 = vmatprep.subr.mxu1 %v7815_v46  ;;  %6491 = vmatpush3.msra.mxu0 %v7752_v60 }
 0x131   : > { %6534 = vmatpush3.msra.mxu1 %v7857_v7  ;;  %6492 = vmatprep.subr.mxu0 %v7761_v29 }
 0x132   : > { %6535 = vmatprep.subr.mxu1 %v7870_v55  ;;  %6493 = vmatpush3.msra.mxu0 %v7773_v10 }
 0x133   : > { %6536 = vmatpush3.msra.mxu1 %v7883_v14  ;;  %6494 = vmatprep.subr.mxu0 %v9524_v52  ;;  %v9576_v52 = vld [vmem:[#allocation106_spill] sm:$0xff] }
 0x134   : > { %6537 = vmatprep.subr.mxu1 %v9525_v13  ;;  %6495 = vmatpush3.msra.mxu0 %v9526_v42  ;;  %v9575_v42 = vld [vmem:[#allocation33_spill] sm:$0xff] }
 0x135   : > { %6538 = vmatpush3.msra.mxu1 %v9527_v56  ;;  %6496 = vmatprep.subr.mxu0 %v9528_v41  ;;  %v8123_v41 = vpop.f32.mrf.mxu1 }
 0x136   : > { %6539 = vmatprep.subr.mxu1 %v9529_v36  ;;  %6497 = vmatpush3.msra.mxu0 %v9530_v23  ;;  %v9539_v23 = vld [vmem:[#allocation107_spill] sm:$0xff]  ;;  %9540 = vst [vmem:[#allocation122_spill] sm:$0xff] %v8123_v41 }
 0x137   : > { %6540 = vmatpush3.msra.mxu1 %v7939_v16  ;;  %6498 = vmatprep.subr.mxu0 %v9531_v48  ;;  %v670_v48 = vrot.slane %v663_v43, 4 }
 0x138   : > { %6541 = vmatprep.subr.mxu1 %v7951_v18  ;;  %6499 = vmatpush3.msra.mxu0 %v9532_v26  ;;  %v9536_v26 = vld [vmem:[#allocation97_spill] sm:$0xff] }
 0x139   : > { %6542 = vmatpush3.msra.mxu1 %v7987_v3  ;;  %6500 = vmatprep.subr.mxu0 %v9533_v11  ;;  %v9537_v11 = vld [vmem:[#allocation100_spill] sm:$0xff] }
 0x13a   : > { %1261 = vmatmul.mubr.f32.vlgmr.msra.gmra.mxu1 %v780_v61  ;;  %6581 = vmatprep.subr.mxu1 %v7474_v22  ;;  %v9538_v61 = vld [vmem:[#allocation104_spill] sm:$0xff] }
 0x13b   : > { %6501 = vmatpush3.msra.mxu0 %v9534_v27  ;;  %6582 = vmatpush3.msra.mxu1 %v7479_v25  ;;  %v671_v27 = vadd.f32 %v670_v48, %v663_v43  ;;  %v9544_v43 = vld [vmem:[#allocation8_spill] sm:$0xff] }
 0x13c   : > { %1531 = vmatprep.mubr.f32.mxu1 %v8039_v6  ;;  %6502 = vmatprep.subr.mxu0 %v9535_v17  ;;  %v9541_v17 = vld [vmem:[#allocation114_spill] sm:$0xff] }
 0x13d   : > { %6583 = vmatprep.subr.mxu1 %v7486_v28  ;;  %6503 = vmatpush3.msra.mxu0 %v9536_v26  ;;  %v9543_v26 = vld [vmem:[#allocation7_spill] sm:$0xff]  ;;  %v672_v48 = vrot.slane %v671_v27, 2 }
 0x13e   : > { %6584 = vmatpush3.msra.mxu1 %v7497_v35  ;;  %6504 = vmatprep.subr.mxu0 %v9537_v11  ;;  %v8129_v11 = vpop.f32.mrf.mxu1 }
 0x13f   : > { %6585 = vmatprep.subr.mxu1 %v7516_v45  ;;  %6505 = vmatpush3.msra.mxu0 %v9538_v61  ;;  %9542 = vst [vmem:[#allocation123_spill] sm:$0xff] %v8129_v11  ;;  %v9547_v11 = vld [vmem:[#allocation16_spill] sm:$0xff]  ;;  %v9574_v61 = vld [vmem:[#allocation103_spill] sm:$0xff] }
 0x140   : > { %6586 = vmatpush3.msra.mxu1 %v7527_v49  ;;  %6506 = vmatprep.subr.mxu0 %v9539_v23  ;;  %v610_v41 = vpop.f32.mrf.mxu1  ;;  %v9545_v23 = vld [vmem:[#allocation10_spill] sm:$0xff] }
 0x141   : > { %6587 = vmatprep.subr.mxu1 %v7529_v50  ;;  %6507 = vmatpush3.msra.mxu0 %v9541_v17  ;;  %v9546_v17 = vld [vmem:[#allocation14_spill] sm:$0xff]  ;;  %v9550_v41 = vld [vmem:[#allocation23_spill] sm:$0xff] }
 0x142   : > { %6588 = vmatpush3.msra.mxu1 %v7531_v51  ;;  %1153 = vmatmul.mubr.f32.vlgmr.msra.gmra.mxu0 %v8042_v31  ;;  %v611_v31 = vpop.f32.mrf.mxu1 }
 0x143   : > { %6546 = vmatprep.subr.mxu0 %v9543_v26  ;;  %6589 = vmatprep.subr.mxu1 %v7549_v58  ;;  %v673_v26 = vadd.f32 %v672_v48, %v671_v27  ;;  %v9551_v31 = vld [vmem:[#allocation26_spill] sm:$0xff] }
 0x144   : > { %6547 = vmatpush3.msra.mxu0 %v9544_v43  ;;  %1427 = vmatprep.mubr.f32.mxu0 %v8039_v6  ;;  %v9548_v43 = vld [vmem:[#allocation18_spill] sm:$0xff]  ;;  %v9549_v6 = vld [vmem:[#allocation21_spill] sm:$0xff] }
 0x145   : > { %6590 = vmatpush3.msra.mxu1 %v7551_v59  ;;  %6548 = vmatprep.subr.mxu0 %v9545_v23  ;;  %v674_v27 = vrot.slane %v673_v26, 1  ;;  %v9553_v48 = vld [vmem:[#allocation30_spill] sm:$0xff]  ;;  %v9571_v23 = vld [vmem:[#allocation25_spill] sm:$0xff] }
 0x146   : > { %6591 = vmatprep.subr.mxu1 %v7565_v1  ;;  %6549 = vmatpush3.msra.mxu0 %v9546_v17 }
 0x147   : > { %6592 = vmatpush3.msra.mxu1 %v7576_v5  ;;  %6550 = vmatprep.subr.mxu0 %v9547_v11  ;;  %v9552_v11 = vld [vmem:[#allocation28_spill] sm:$0xff] }
 0x148   : > { %6593 = vmatprep.subr.mxu1 %v7639_v32  ;;  %6551 = vmatpush3.msra.mxu0 %v9548_v43  ;;  %v675_v43 = vadd.f32 %v674_v27, %v673_v26  ;;  %v9562_v26 = vld [vmem:[#allocation67_spill] sm:$0xff] }
 0x149   : > { %6594 = vmatpush3.msra.mxu1 %v7648_v37  ;;  %6552 = vmatprep.subr.mxu0 %v9549_v6  ;;  %v9554_v6 = vld [vmem:[#allocation34_spill] sm:$0xff]  ;;  %v9563_v27 = vld [vmem:[#allocation71_spill] sm:$0xff] }
 0x14a   : > { %6595 = vmatprep.subr.mxu1 %v7650_v39  ;;  %6553 = vmatpush3.msra.mxu0 %v9550_v41  ;;  %v9555_v41 = vld [vmem:[#allocation40_spill] sm:$0xff]  ;;  %v8167_v17 = vand.u32 4294901760, %v675_v43 }
 0x14b   : > { %6596 = vmatpush3.msra.mxu1 %v7741_v20  ;;  %6554 = vmatprep.subr.mxu0 %v9551_v31  ;;  %v9556_v31 = vld [vmem:[#allocation42_spill] sm:$0xff] }
 0x14c   : > { %6597 = vmatprep.subr.mxu1 %v7746_v33  ;;  %6555 = vmatpush3.msra.mxu0 %v9552_v11  ;;  %v9557_v11 = vld [vmem:[#allocation43_spill] sm:$0xff]  ;;  %9561 = vst [vmem:[#allocation124_spill] sm:$0xff] %v8167_v17 }
 0x14d   : > { %6598 = vmatpush3.msra.mxu1 %v7754_v2  ;;  %6556 = vmatprep.subr.mxu0 %v9553_v48  ;;  %v9558_v48 = vld [vmem:[#allocation58_spill] sm:$0xff] }
 0x14e   : > { %6599 = vmatprep.subr.mxu1 %v7763_v21  ;;  %6557 = vmatpush3.msra.mxu0 %v9554_v6  ;;  %v9559_v6 = vld [vmem:[#allocation61_spill] sm:$0xff] }
 0x14f   : > { %6600 = vmatpush3.msra.mxu1 %v7775_v62  ;;  %6558 = vmatprep.subr.mxu0 %v9555_v41  ;;  %v9560_v41 = vld [vmem:[#allocation64_spill] sm:$0xff] }
 0x150   : > { %6601 = vmatprep.subr.mxu1 %v7787_v40  ;;  %6559 = vmatpush3.msra.mxu0 %v9556_v31  ;;  %v9569_v31 = vld [vmem:[#allocation20_spill] sm:$0xff] }
 0x151   : > { %6602 = vmatpush3.msra.mxu1 %v7801_v9  ;;  %6560 = vmatprep.subr.mxu0 %v9557_v11  ;;  %v8180_v11 = vsub.f32 %v675_v43, %v8167_v17 }
 0x152   : > { %6603 = vmatprep.subr.mxu1 %v7815_v46  ;;  %6561 = vmatpush3.msra.mxu0 %v9558_v48  ;;  %v9564_v48 = vld [vmem:[#allocation74_spill] sm:$0xff] }
 0x153   : > { %6604 = vmatpush3.msra.mxu1 %v7857_v7  ;;  %6562 = vmatprep.subr.mxu0 %v9559_v6  ;;  %v662_v6 = vmul.f32 %v8029_v24, %v8029_v24  ;;  %v9288_v43 = vand.u32 4294901760, %v8180_v11 }
 0x154   : > { %6605 = vmatprep.subr.mxu1 %v7870_v55  ;;  %6563 = vmatpush3.msra.mxu0 %v9560_v41  ;;  %v9565_v41 = vld [vmem:[#allocation77_spill] sm:$0xff] }
 0x155   : > { %6606 = vmatpush3.msra.mxu1 %v7883_v14  ;;  %6564 = vmatprep.subr.mxu0 %v9562_v26  ;;  %v9566_v26 = vld [vmem:[#allocation80_spill] sm:$0xff]  ;;  %v664_v24 = vrot.slane %v662_v6, 4 }
 0x156   : > { %6607 = vmatprep.subr.mxu1 %v9525_v13  ;;  %6565 = vmatpush3.msra.mxu0 %v9563_v27  ;;  %v9567_v27 = vld [vmem:[#allocation89_spill] sm:$0xff] }
 0x157   : > { %6608 = vmatpush3.msra.mxu1 %v9527_v56  ;;  %6566 = vmatprep.subr.mxu0 %v9564_v48  ;;  %v9568_v48 = vld [vmem:[#allocation93_spill] sm:$0xff] }
 0x158   : > { %6609 = vmatprep.subr.mxu1 %v9529_v36  ;;  %6567 = vmatpush3.msra.mxu0 %v9565_v41  ;;  %v9570_v41 = vld [vmem:[#allocation96_spill] sm:$0xff] }
 0x159   : > { %6610 = vmatpush3.msra.mxu1 %v7939_v16  ;;  %6568 = vmatprep.subr.mxu0 %v9566_v26  ;;  %v9572_v26 = vld [vmem:[#allocation99_spill] sm:$0xff] }
 0x15a   : > { %6611 = vmatprep.subr.mxu1 %v7951_v18  ;;  %6569 = vmatpush3.msra.mxu0 %v9567_v27  ;;  %v9573_v27 = vld [vmem:[#allocation27_spill] sm:$0xff] }
 0x15b   : > { %6612 = vmatpush3.msra.mxu1 %v7987_v3  ;;  %6570 = vmatprep.subr.mxu0 %v9568_v48  ;;  %v665_v48 = vadd.f32 %v664_v24, %v662_v6  ;;  %v9583_v6 = vld [vmem:[#allocation44_spill] sm:$0xff] }
 0x15c   : > { %1533 = vmatmul.mubr.f32.vlgmr.msra.gmra.mxu1 %v8037_v30  ;;  %6651 = vmatprep.subr.mxu1 %v9569_v31  ;;  %v1638_v31 = vsub.f32 %v8180_v11, %v9288_v43  ;;  %v9584_v43 = vld [vmem:[#allocation45_spill] sm:$0xff] }
 0x15d   : > { %6571 = vmatpush3.msra.mxu0 %v9570_v41  ;;  %6652 = vmatpush3.msra.mxu1 %v9571_v23  ;;  %v9577_v41 = vld [vmem:[#allocation36_spill] sm:$0xff]  ;;  %v9578_v23 = vld [vmem:[#allocation109_spill] sm:$0xff]  ;;  %v666_v24 = vrot.slane %v665_v48, 2 }
 0x15e   : > { %1876 = vmatprep.mubr.f32.mxu1 %v8167_v17  ;;  %6572 = vmatprep.subr.mxu0 %v9572_v26  ;;  %v9579_v17 = vld [vmem:[#allocation39_spill] sm:$0xff]  ;;  %v9580_v26 = vld [vmem:[#allocation112_spill] sm:$0xff] }
 0x15f   : > { %6653 = vmatprep.subr.mxu1 %v9573_v27  ;;  %6573 = vmatpush3.msra.mxu0 %v9574_v61  ;;  %v9581_v27 = vld [vmem:[#allocation41_spill] sm:$0xff] }
 0x160   : > { %6654 = vmatpush3.msra.mxu1 %v9575_v42  ;;  %6574 = vmatprep.subr.mxu0 %v9576_v52  ;;  %v9582_v61 = vld [vmem:[#allocation117_spill] sm:$0xff]  ;;  %v1639_v42 = vand.u32 4294901760, %v1638_v31  ;;  %v9589_v31 = vld [vmem:[#allocation50_spill] sm:$0xff] }
 0x161   : > { %6655 = vmatprep.subr.mxu1 %v9577_v41  ;;  %6575 = vmatpush3.msra.mxu0 %v9578_v23  ;;  %v9586_v41 = vld [vmem:[#allocation47_spill] sm:$0xff] }
 0x162   : > { %6656 = vmatpush3.msra.mxu1 %v9579_v17  ;;  %6576 = vmatprep.subr.mxu0 %v9580_v26  ;;  %v9585_v17 = vld [vmem:[#allocation46_spill] sm:$0xff] }
 0x163   : > { %6657 = vmatprep.subr.mxu1 %v9581_v27  ;;  %6577 = vmatpush3.msra.mxu0 %v9582_v61  ;;  %v667_v27 = vadd.f32 %v666_v24, %v665_v48  ;;  %v9591_v24 = vld [vmem:[#allocation70_spill] sm:$0xff] }
 0x164   : > { %6658 = vmatpush3.msra.mxu1 %v9583_v6  ;;  %1429 = vmatmul.mubr.f32.vlgmr.msra.gmra.mxu0 %v8037_v30  ;;  %v9587_v6 = vld [vmem:[#allocation48_spill] sm:$0xff]  ;;  %v9588_v30 = vld [vmem:[#allocation49_spill] sm:$0xff] }
 0x165   : > { %6616 = vmatprep.subr.mxu0 %v7474_v22  ;;  %6659 = vmatprep.subr.mxu1 %v9584_v43  ;;  %v668_v48 = vrot.slane %v667_v27, 1 }
 0x166   : > { %6617 = vmatpush3.msra.mxu0 %v7479_v25  ;;  %1640 = vmatprep.mubr.f32.mxu0 %v1639_v42  ;;  %v9590_v42 = vld [vmem:[#allocation51_spill] sm:$0xff] }
 0x167   : > { %6660 = vmatpush3.msra.mxu1 %v9585_v17  ;;  %6618 = vmatprep.subr.mxu0 %v7486_v28  ;;  %v9599_v17 = vld [vmem:[#allocation102_spill] sm:$0xff] }
 0x168   : > { %6661 = vmatprep.subr.mxu1 %v9586_v41  ;;  %6619 = vmatpush3.msra.mxu0 %v7497_v35  ;;  %v9595_v41 = vld [vmem:[#allocation82_spill] sm:$0xff] }
 0x169   : > { %6662 = vmatpush3.msra.mxu1 %v9587_v6  ;;  %6620 = vmatprep.subr.mxu0 %v7516_v45  ;;  %v9592_v6 = vld [vmem:[#allocation73_spill] sm:$0xff] }
 0x16a   : > { %6663 = vmatprep.subr.mxu1 %v9588_v30  ;;  %6621 = vmatpush3.msra.mxu0 %v7527_v49  ;;  %v9593_v30 = vld [vmem:[#allocation76_spill] sm:$0xff] }
 0x16b   : > { %6664 = vmatpush3.msra.mxu1 %v9589_v31  ;;  %6622 = vmatprep.subr.mxu0 %v7529_v50  ;;  %v9594_v31 = vld [vmem:[#allocation79_spill] sm:$0xff] }
 0x16c   : > { %6665 = vmatprep.subr.mxu1 %v9590_v42  ;;  %6623 = vmatpush3.msra.mxu0 %v7531_v51  ;;  %v669_v42 = vadd.f32 %v668_v48, %v667_v27  ;;  %v9600_v27 = vld [vmem:[#allocation105_spill] sm:$0xff]  ;;  %v9601_v48 = vld [vmem:[#allocation108_spill] sm:$0xff] }
 0x16d   : > { %6666 = vmatpush3.msra.mxu1 %v9591_v24  ;;  %6624 = vmatprep.subr.mxu0 %v7549_v58  ;;  %v9596_v24 = vld [vmem:[#allocation85_spill] sm:$0xff] }
 0x16e   : > { %6667 = vmatprep.subr.mxu1 %v9592_v6  ;;  %6625 = vmatpush3.msra.mxu0 %v7551_v59  ;;  %v9597_v6 = vld [vmem:[#allocation88_spill] sm:$0xff] }
 0x16f   : > { %6668 = vmatpush3.msra.mxu1 %v9593_v30  ;;  %6626 = vmatprep.subr.mxu0 %v7565_v1  ;;  %v9598_v30 = vld [vmem:[#allocation92_spill] sm:$0xff] }
 0x170   : > { %6669 = vmatprep.subr.mxu1 %v9594_v31  ;;  %6627 = vmatpush3.msra.mxu0 %v7576_v5  ;;  %v8241_v31 = vand.u32 4294901760, %v669_v42 }
 0x171   : > { %6670 = vmatpush3.msra.mxu1 %v9595_v41  ;;  %6628 = vmatprep.subr.mxu0 %v7639_v32 }
 0x172   : > { %6671 = vmatprep.subr.mxu1 %v9596_v24  ;;  %6629 = vmatpush3.msra.mxu0 %v7648_v37  ;;  %v9603_v24 = vld [vmem:[#allocation113_spill] sm:$0xff] }
 0x173   : > { %6672 = vmatpush3.msra.mxu1 %v9597_v6  ;;  %6630 = vmatprep.subr.mxu0 %v7650_v39  ;;  %v9602_v6 = vld [vmem:[#allocation111_spill] sm:$0xff] }
 0x174   : > { %6673 = vmatprep.subr.mxu1 %v9598_v30  ;;  %6631 = vmatpush3.msra.mxu0 %v7741_v20  ;;  %v8252_v30 = vsub.f32 %v669_v42, %v8241_v31  ;;  %v9607_v42 = vld [vmem:[#allocation119_spill] sm:$0xff] }
 0x175   : > { %6674 = vmatpush3.msra.mxu1 %v9599_v17  ;;  %6632 = vmatprep.subr.mxu0 %v7746_v33  ;;  %v9604_v17 = vld [vmem:[#allocation115_spill] sm:$0xff] }
 0x176   : > { %6675 = vmatprep.subr.mxu1 %v9600_v27  ;;  %6633 = vmatpush3.msra.mxu0 %v7754_v2  ;;  %v9605_v27 = vld [vmem:[#allocation116_spill] sm:$0xff] }
 0x177   : > { %6676 = vmatpush3.msra.mxu1 %v9601_v48  ;;  %6634 = vmatprep.subr.mxu0 %v7763_v21  ;;  %v9606_v48 = vld [vmem:[#allocation118_spill] sm:$0xff] }
 0x178   : > { %6677 = vmatprep.subr.mxu1 %v9602_v6  ;;  %6635 = vmatpush3.msra.mxu0 %v7775_v62  ;;  %v9289_v6 = vand.u32 4294901760, %v8252_v30 }
 0x179   : > { %6678 = vmatpush3.msra.mxu1 %v9603_v24  ;;  %6636 = vmatprep.subr.mxu0 %v7787_v40 }
 0x17a   : > { %6679 = vmatprep.subr.mxu1 %v9604_v17  ;;  %6637 = vmatpush3.msra.mxu0 %v7801_v9 }
 0x17b   : > { %6680 = vmatpush3.msra.mxu1 %v9605_v27  ;;  %6638 = vmatprep.subr.mxu0 %v7815_v46  ;;  %v9608_v27 = vand.u32 4294901760, %v8180_v11 }
 0x17c   : > { %6681 = vmatprep.subr.mxu1 %v9606_v48  ;;  %6639 = vmatpush3.msra.mxu0 %v7857_v7  ;;  %v1644_v48 = vsub.f32 %v8252_v30, %v9289_v6  ;;  %v9609_v6 = vld [vmem:[#allocation4_spill] sm:$0xff] }
 0x17d   : > { %6682 = vmatpush3.msra.mxu1 %v9607_v42  ;;  %6640 = vmatprep.subr.mxu0 %v7870_v55 }
 0x17e   : > { %1878 = vmatmul.mubr.f32.vlgmr.msra.gmra.mxu1 %v8241_v31  ;;  %6721 = vmatprep.subr.mxu1 %v7474_v22 }
 0x17f   : > { %6641 = vmatpush3.msra.mxu0 %v7883_v14  ;;  %6722 = vmatpush3.msra.mxu1 %v7479_v25 }
 0x180   : > { %2120 = vmatprep.mubr.f32.mxu1 %v9608_v27  ;;  %6642 = vmatprep.subr.mxu0 %v9525_v13  ;;  %v1645_v27 = vand.u32 4294901760, %v1644_v48  ;;  %v9611_v48 = vld [vmem:[#allocation65_spill] sm:$0xff] }
 0x181   : > { %6723 = vmatprep.subr.mxu1 %v7486_v28  ;;  %6643 = vmatpush3.msra.mxu0 %v9527_v56 }
 0x182   : > { %6724 = vmatpush3.msra.mxu1 %v7497_v35  ;;  %6644 = vmatprep.subr.mxu0 %v9529_v36 }
 0x183   : > { %6725 = vmatprep.subr.mxu1 %v7516_v45  ;;  %6645 = vmatpush3.msra.mxu0 %v7939_v16 }
 0x184   : > { %6726 = vmatpush3.msra.mxu1 %v7527_v49  ;;  %6646 = vmatprep.subr.mxu0 %v7951_v18 }
 0x185   : > { %6727 = vmatprep.subr.mxu1 %v7529_v50  ;;  %6647 = vmatpush3.msra.mxu0 %v7987_v3 }
 0x186   : > { %6728 = vmatpush3.msra.mxu1 %v7531_v51  ;;  %1646 = vmatmul.mubr.f32.vlgmr.msra.gmra.mxu0 %v1645_v27  ;;  %v9612_v27 = vld [vmem:[#allocation68_spill] sm:$0xff] }
 0x187   : > { %6686 = vmatprep.subr.mxu0 %v9609_v6  ;;  %6729 = vmatprep.subr.mxu1 %v7549_v58 }
 0x188   : > { %6687 = vmatpush3.msra.mxu0 %v7495_v34  ;;  %2013 = vmatprep.mubr.f32.mxu0 %v8180_v11  ;;  %v9610_v11 = vld [vmem:[#allocation62_spill] sm:$0xff] }
 0x189   : > { %6730 = vmatpush3.msra.mxu1 %v7551_v59  ;;  %6688 = vmatprep.subr.mxu0 %v7501_v38 }
 0x18a   : > { %6731 = vmatprep.subr.mxu1 %v7565_v1  ;;  %6689 = vmatpush3.msra.mxu0 %v7514_v44 }
 0x18b   : > { %6732 = vmatpush3.msra.mxu1 %v7576_v5  ;;  %6690 = vmatprep.subr.mxu0 %v7547_v57 }
 0x18c   : > { %6733 = vmatprep.subr.mxu1 %v7639_v32  ;;  %6691 = vmatpush3.msra.mxu0 %v7560_v63 }
 0x18d   : > { %6734 = vmatpush3.msra.mxu1 %v7648_v37  ;;  %6692 = vmatprep.subr.mxu0 %v7563_v0 }
 0x18e   : > { %6735 = vmatprep.subr.mxu1 %v7650_v39  ;;  %6693 = vmatpush3.msra.mxu0 %v7574_v4 }
 0x18f   : > { %6736 = vmatpush3.msra.mxu1 %v7741_v20  ;;  %6694 = vmatprep.subr.mxu0 %v7585_v8 }
 0x190   : > { %6737 = vmatprep.subr.mxu1 %v7746_v33  ;;  %6695 = vmatpush3.msra.mxu0 %v7594_v12 }
 0x191   : > { %6738 = vmatpush3.msra.mxu1 %v7754_v2  ;;  %6696 = vmatprep.subr.mxu0 %v7603_v15 }
 0x192   : > { %6739 = vmatprep.subr.mxu1 %v7763_v21  ;;  %6697 = vmatpush3.msra.mxu0 %v7615_v19 }
 0x193   : > { %6740 = vmatpush3.msra.mxu1 %v7775_v62  ;;  %6698 = vmatprep.subr.mxu0 %v7660_v47 }
 0x194   : > { %6741 = vmatprep.subr.mxu1 %v7787_v40  ;;  %6699 = vmatpush3.msra.mxu0 %v7669_v53 }
 0x195   : > { %6742 = vmatpush3.msra.mxu1 %v7801_v9  ;;  %6700 = vmatprep.subr.mxu0 %v7673_v54  ;;  %v9625_v54 = vld [vmem:[#allocation114_spill] sm:$0xff] }
 0x196   : > { %6743 = vmatprep.subr.mxu1 %v7815_v46  ;;  %6701 = vmatpush3.msra.mxu0 %v7752_v60  ;;  %v9613_v60 = vld [vmem:[#allocation72_spill] sm:$0xff] }
 0x197   : > { %6744 = vmatpush3.msra.mxu1 %v7857_v7  ;;  %6702 = vmatprep.subr.mxu0 %v7761_v29  ;;  %v9614_v29 = vld [vmem:[#allocation75_spill] sm:$0xff] }
 0x198   : > { %6745 = vmatprep.subr.mxu1 %v7870_v55  ;;  %6703 = vmatpush3.msra.mxu0 %v7773_v10  ;;  %v9615_v10 = vld [vmem:[#allocation83_spill] sm:$0xff] }
 0x199   : > { %6746 = vmatpush3.msra.mxu1 %v7883_v14  ;;  %6704 = vmatprep.subr.mxu0 %v9610_v11  ;;  %v9616_v11 = vld [vmem:[#allocation86_spill] sm:$0xff] }
 0x19a   : > { %6747 = vmatprep.subr.mxu1 %v9525_v13  ;;  %6705 = vmatpush3.msra.mxu0 %v9611_v48  ;;  %v9617_v48 = vand.u32 4294901760, %v8252_v30 }
 0x19b   : > { %6748 = vmatpush3.msra.mxu1 %v9527_v56  ;;  %6706 = vmatprep.subr.mxu0 %v9612_v27  ;;  %v9618_v27 = vld [vmem:[#allocation90_spill] sm:$0xff] }
 0x19c   : > { %6749 = vmatprep.subr.mxu1 %v9529_v36  ;;  %6707 = vmatpush3.msra.mxu0 %v9613_v60  ;;  %v9619_v60 = vld [vmem:[#allocation124_spill] sm:$0xff] }
 0x19d   : > { %6750 = vmatpush3.msra.mxu1 %v7939_v16  ;;  %6708 = vmatprep.subr.mxu0 %v9614_v29  ;;  %v9620_v29 = vld [vmem:[#allocation94_spill] sm:$0xff] }
 0x19e   : > { %6751 = vmatprep.subr.mxu1 %v7951_v18  ;;  %6709 = vmatpush3.msra.mxu0 %v9615_v10  ;;  %v9621_v10 = vld [vmem:[#allocation97_spill] sm:$0xff] }
 0x19f   : > { %6752 = vmatpush3.msra.mxu1 %v7987_v3  ;;  %6710 = vmatprep.subr.mxu0 %v9616_v11  ;;  %v9622_v11 = vld [vmem:[#allocation100_spill] sm:$0xff] }
 0x1a0   : > { %2124 = vmatmul.mubr.f32.vlgmr.msra.gmra.mxu1 %v9617_v48  ;;  %6791 = vmatprep.subr.mxu1 %v7474_v22  ;;  %v9623_v48 = vld [vmem:[#allocation104_spill] sm:$0xff] }
 0x1a1   : > { %6711 = vmatpush3.msra.mxu0 %v9618_v27  ;;  %6792 = vmatpush3.msra.mxu1 %v7479_v25  ;;  %v9624_v27 = vld [vmem:[#allocation107_spill] sm:$0xff] }
 0x1a2   : > { %2394 = vmatprep.mubr.f32.mxu1 %v9619_v60  ;;  %6712 = vmatprep.subr.mxu0 %v9620_v29 }
 0x1a3   : > { %6793 = vmatprep.subr.mxu1 %v7486_v28  ;;  %6713 = vmatpush3.msra.mxu0 %v9621_v10  ;;  %v9626_v10 = vld [vmem:[#allocation7_spill] sm:$0xff] }
 0x1a4   : > { %6794 = vmatpush3.msra.mxu1 %v7497_v35  ;;  %6714 = vmatprep.subr.mxu0 %v9622_v11  ;;  %v9627_v11 = vld [vmem:[#allocation8_spill] sm:$0xff] }
 0x1a5   : > { %6795 = vmatprep.subr.mxu1 %v7516_v45  ;;  %6715 = vmatpush3.msra.mxu0 %v9623_v48  ;;  %v9628_v48 = vld [vmem:[#allocation10_spill] sm:$0xff] }
 0x1a6   : > { %6796 = vmatpush3.msra.mxu1 %v7527_v49  ;;  %6716 = vmatprep.subr.mxu0 %v9624_v27  ;;  %v9629_v27 = vld [vmem:[#allocation14_spill] sm:$0xff] }
 0x1a7   : > { %6797 = vmatprep.subr.mxu1 %v7529_v50  ;;  %6717 = vmatpush3.msra.mxu0 %v9625_v54  ;;  %v9630_v54 = vld [vmem:[#allocation16_spill] sm:$0xff] }
 0x1a8   : > { %6798 = vmatpush3.msra.mxu1 %v7531_v51  ;;  %2016 = vmatmul.mubr.f32.vlgmr.msra.gmra.mxu0 %v8252_v30  ;;  %v9631_v30 = vld [vmem:[#allocation18_spill] sm:$0xff] }
 0x1a9   : > { %6756 = vmatprep.subr.mxu0 %v9626_v10  ;;  %6799 = vmatprep.subr.mxu1 %v7549_v58  ;;  %v9653_v10 = vld [vmem:[#allocation103_spill] sm:$0xff] }
 0x1aa   : > { %6757 = vmatpush3.msra.mxu0 %v9627_v11  ;;  %2290 = vmatprep.mubr.f32.mxu0 %v9619_v60  ;;  %v9632_v11 = vld [vmem:[#allocation21_spill] sm:$0xff]  ;;  %v9633_v60 = vld [vmem:[#allocation23_spill] sm:$0xff] }
 0x1ab   : > { %6800 = vmatpush3.msra.mxu1 %v7551_v59  ;;  %6758 = vmatprep.subr.mxu0 %v9628_v48  ;;  %v9634_v48 = vld [vmem:[#allocation26_spill] sm:$0xff] }
 0x1ac   : > { %6801 = vmatprep.subr.mxu1 %v7565_v1  ;;  %6759 = vmatpush3.msra.mxu0 %v9629_v27  ;;  %v9635_v27 = vld [vmem:[#allocation28_spill] sm:$0xff] }
 0x1ad   : > { %6802 = vmatpush3.msra.mxu1 %v7576_v5  ;;  %6760 = vmatprep.subr.mxu0 %v9630_v54  ;;  %v9636_v54 = vld [vmem:[#allocation30_spill] sm:$0xff] }
 0x1ae   : > { %6803 = vmatprep.subr.mxu1 %v7639_v32  ;;  %6761 = vmatpush3.msra.mxu0 %v9631_v30  ;;  %v9637_v30 = vld [vmem:[#allocation34_spill] sm:$0xff] }
 0x1af   : > { %6804 = vmatpush3.msra.mxu1 %v7648_v37  ;;  %6762 = vmatprep.subr.mxu0 %v9632_v11  ;;  %v9638_v11 = vld [vmem:[#allocation40_spill] sm:$0xff] }
 0x1b0   : > { %6805 = vmatprep.subr.mxu1 %v7650_v39  ;;  %6763 = vmatpush3.msra.mxu0 %v9633_v60  ;;  %v9639_v60 = vld [vmem:[#allocation42_spill] sm:$0xff] }
 0x1b1   : > { %6806 = vmatpush3.msra.mxu1 %v7741_v20  ;;  %6764 = vmatprep.subr.mxu0 %v9634_v48  ;;  %v9640_v48 = vld [vmem:[#allocation43_spill] sm:$0xff] }
 0x1b2   : > { %6807 = vmatprep.subr.mxu1 %v7746_v33  ;;  %6765 = vmatpush3.msra.mxu0 %v9635_v27  ;;  %v9641_v27 = vld [vmem:[#allocation58_spill] sm:$0xff] }
 0x1b3   : > { %6808 = vmatpush3.msra.mxu1 %v7754_v2  ;;  %6766 = vmatprep.subr.mxu0 %v9636_v54  ;;  %v9642_v54 = vld [vmem:[#allocation61_spill] sm:$0xff] }
 0x1b4   : > { %6809 = vmatprep.subr.mxu1 %v7763_v21  ;;  %6767 = vmatpush3.msra.mxu0 %v9637_v30  ;;  %v9643_v30 = vld [vmem:[#allocation64_spill] sm:$0xff] }
 0x1b5   : > { %6810 = vmatpush3.msra.mxu1 %v7775_v62  ;;  %6768 = vmatprep.subr.mxu0 %v9638_v11  ;;  %v9644_v11 = vld [vmem:[#allocation67_spill] sm:$0xff] }
 0x1b6   : > { %6811 = vmatprep.subr.mxu1 %v7787_v40  ;;  %6769 = vmatpush3.msra.mxu0 %v9639_v60  ;;  %v9645_v60 = vld [vmem:[#allocation71_spill] sm:$0xff] }
 0x1b7   : > { %6812 = vmatpush3.msra.mxu1 %v7801_v9  ;;  %6770 = vmatprep.subr.mxu0 %v9640_v48  ;;  %v9646_v48 = vld [vmem:[#allocation74_spill] sm:$0xff] }
 0x1b8   : > { %6813 = vmatprep.subr.mxu1 %v7815_v46  ;;  %6771 = vmatpush3.msra.mxu0 %v9641_v27  ;;  %v9647_v27 = vld [vmem:[#allocation77_spill] sm:$0xff] }
 0x1b9   : > { %6814 = vmatpush3.msra.mxu1 %v7857_v7  ;;  %6772 = vmatprep.subr.mxu0 %v9642_v54  ;;  %v9648_v54 = vld [vmem:[#allocation80_spill] sm:$0xff] }
 0x1ba   : > { %6815 = vmatprep.subr.mxu1 %v7870_v55  ;;  %6773 = vmatpush3.msra.mxu0 %v9643_v30  ;;  %v9649_v30 = vld [vmem:[#allocation89_spill] sm:$0xff] }
 0x1bb   : > { %6816 = vmatpush3.msra.mxu1 %v7883_v14  ;;  %6774 = vmatprep.subr.mxu0 %v9644_v11  ;;  %v9650_v11 = vld [vmem:[#allocation93_spill] sm:$0xff] }
 0x1bc   : > { %6817 = vmatprep.subr.mxu1 %v9525_v13  ;;  %6775 = vmatpush3.msra.mxu0 %v9645_v60  ;;  %v9651_v60 = vld [vmem:[#allocation96_spill] sm:$0xff] }
 0x1bd   : > { %6818 = vmatpush3.msra.mxu1 %v9527_v56  ;;  %6776 = vmatprep.subr.mxu0 %v9646_v48  ;;  %v9652_v48 = vld [vmem:[#allocation99_spill] sm:$0xff] }
 0x1be   : > { %6819 = vmatprep.subr.mxu1 %v9529_v36  ;;  %6777 = vmatpush3.msra.mxu0 %v9647_v27 }
 0x1bf   : > { %6820 = vmatpush3.msra.mxu1 %v7939_v16  ;;  %6778 = vmatprep.subr.mxu0 %v9648_v54 }
 0x1c0   : > { %6821 = vmatprep.subr.mxu1 %v7951_v18  ;;  %6779 = vmatpush3.msra.mxu0 %v9649_v30 }
 0x1c1   : > { %6822 = vmatpush3.msra.mxu1 %v7987_v3  ;;  %6780 = vmatprep.subr.mxu0 %v9650_v11  ;;  %v649_v11 = vld [vmem:[%s9116_s5 + $0x18] sm:$0xff] }
 0x1c2   : > { %2396 = vmatmul.mubr.f32.vlgmr.msra.gmra.mxu1 %v8241_v31  ;;  %6781 = vmatpush3.msra.mxu0 %v9651_v60 }
 0x1c3   : > { %6782 = vmatprep.subr.mxu0 %v9652_v48  ;;  %v648_v48 = vld [vmem:[%s9116_s5 + $0x10] sm:$0xff] }
 0x1c4   : > { %6783 = vmatpush3.msra.mxu0 %v9653_v10  ;;  %v8423_v10 = vand.u32 4294901760, %v649_v11 }
 0x1c5   : > { %6784 = vmatprep.subr.mxu0 %v9576_v52  ;;  %v647_v52 = vld [vmem:[%s9116_s5 + $0x8] sm:$0xff] }
 0x1c6   : > { %6785 = vmatpush3.msra.mxu0 %v9578_v23  ;;  %9654 = vst [vmem:[#allocation45_spill] sm:$0xff] %v8423_v10  ;;  %v8425_v23 = vand.u32 4294901760, %v648_v48  ;;  %v8437_v30 = vsub.f32 %v649_v11, %v8423_v10 }
 0x1c7   : > { %6786 = vmatprep.subr.mxu0 %v9580_v26  ;;  %v8427_v26 = vand.u32 4294901760, %v647_v52 }
 0x1c8   : > { %6787 = vmatpush3.msra.mxu0 %v9582_v61  ;;  %9655 = vst [vmem:[#allocation124_spill] sm:$0xff] %v8425_v23  ;;  %v9302_v61 = vmov 0.0   ;;  %9658 = vst [vmem:[#allocation127_spill] sm:$0xff] %v8437_v30  ;;  %v8440_v54 = vsub.f32 %v648_v48, %v8425_v23 }
 0x1c9   : > { %2292 = vmatmul.mubr.f32.vlgmr.msra.gmra.mxu0 %v8241_v31  ;;  %9656 = vst [vmem:[#allocation125_spill] sm:$0xff] %v8427_v26  ;;  %v646_v31 = vld [vmem:[%s9116_s5] sm:$0xff]  ;;  %2574 = vmatprep.mubr.f32.mxu1 %v9302_v61  ;;  %v8443_v27 = vsub.f32 %v647_v52, %v8427_v26 }
 0x1ca   : > { %2478 = vmatprep.mubr.f32.mxu0 %v9302_v61  ;;  %v8434_v60 = vand.u32 4294901760, %v646_v31  ;;  %9659 = vst [vmem:[#allocation128_spill] sm:$0xff] %v8440_v54  ;;  %2439 = vmatprep.subr.mxu0 %v8423_v10  ;;  %v8451_v61 = vand.u32 4294901760, %v8437_v30  ;;  %v8454_v53 = vand.u32 4294901760, %v8440_v54 }
 0x1cb   : > { %9660 = vst [vmem:[#allocation129_spill] sm:$0xff] %v8443_v27  ;;  %2441 = vmatpush1.msra.mxu0 %v8425_v23  ;;  %v8457_v11 = vand.u32 4294901760, %v8443_v27 }
 0x1cc   : > { %9657 = vst [vmem:[#allocation126_spill] sm:$0xff] %v8434_v60  ;;  %v8447_v29 = vsub.f32 %v646_v31, %v8434_v60  ;;  %9662 = vst [vmem:[#allocation131_spill] sm:$0xff] %v8451_v61  ;;  %2443 = vmatprep.subr.mxu0 %v8427_v26  ;;  %v2521_v48 = vsub.f32 %v8437_v30, %v8451_v61  ;;  %v2527_v31 = vsub.f32 %v8440_v54, %v8454_v53 }
 0x1cd   : > { %9663 = vst [vmem:[#allocation132_spill] sm:$0xff] %v8454_v53  ;;  %9664 = vst [vmem:[#allocation133_spill] sm:$0xff] %v8457_v11  ;;  %2445 = vmatpush1.msra.mxu0 %v8434_v60  ;;  %v2533_v47 = vsub.f32 %v8443_v27, %v8457_v11 }
 0x1ce   : > { %9661 = vst [vmem:[#allocation130_spill] sm:$0xff] %v8447_v29  ;;  %v8461_v52 = vand.u32 4294901760, %v8447_v29  ;;  %2612 = vmatprep.subr.mxu0 %v8437_v30  ;;  %v8473_v15 = vand.u32 4294901760, %v2521_v48  ;;  %v8475_v12 = vand.u32 4294901760, %v2527_v31 }
 0x1cf   : > { %v8477_v8 = vand.u32 4294901760, %v2533_v47 }
 0x1d0   : > { %9665 = vst [vmem:[#allocation134_spill] sm:$0xff] %v8461_v52  ;;  %v2539_v19 = vsub.f32 %v8447_v29, %v8461_v52  ;;  %9666 = vst [vmem:[#allocation135_spill] sm:$0xff] %v8473_v15  ;;  %2523 = vmatprep.subr.mxu1 %v8473_v15 }
 0x1d1   : > { %9667 = vst [vmem:[#allocation136_spill] sm:$0xff] %v8475_v12  ;;  %9668 = vst [vmem:[#allocation137_spill] sm:$0xff] %v8477_v8  ;;  %2529 = vmatpush1.msra.mxu1 %v8475_v12 }
 0x1d2   : > { %v8479_v4 = vand.u32 4294901760, %v2539_v19  ;;  %2535 = vmatprep.subr.mxu1 %v8477_v8 }
 0x1d4   : > { %9669 = vst [vmem:[#allocation138_spill] sm:$0xff] %v8479_v4  ;;  %2541 = vmatpush1.msra.mxu1 %v8479_v4 }
 0x1d5   : > { %2692 = vmatprep.subr.mxu1 %v8423_v10 }
 0x1d9   : > { %v6473_v63 = vpop.f32.mrf.mxu1 }
 0x1db   : > { %v6474_v31 = vpop.f32.mrf.mxu1 }
 0x1dc   : > { %v6475_v13 = vadd.f32 %v6474_v31, %v6473_v63 }
 0x1e1   : > { %v6438_v0 = vpop.f32.mrf.mxu0 }
 0x1e3   : > { %v6439_v48 = vpop.f32.mrf.mxu0 }
 0x1e4   : > { %v6440_v16 = vadd.f32 %v6439_v48, %v6438_v0 }
 0x1e6   : > { %v1017_v42 = vadd.f32 %v6475_v13, %v6440_v16 }
 0x1fa   : > { %v6543_v44 = vpop.f32.mrf.mxu1 }
 0x1fc   : > { %v6544_v19 = vpop.f32.mrf.mxu1 }
 0x1fd   : > { %v6545_v40 = vadd.f32 %v6544_v19, %v6543_v44 }
 0x202   : > { %v6508_v57 = vpop.f32.mrf.mxu0 }
 0x204   : > { %v6509_v47 = vpop.f32.mrf.mxu0 }
 0x205   : > { %v6510_v14 = vadd.f32 %v6509_v47, %v6508_v57 }
 0x207   : > { %v1155_v46 = vadd.f32 %v6510_v14, %v1017_v42 }
 0x209   : > { %v1263_v21 = vadd.f32 %v6545_v40, %v1155_v46 }
 0x21c   : > { %v6613_v34 = vpop.f32.mrf.mxu1 }
 0x21e   : > { %v6614_v18 = vpop.f32.mrf.mxu1 }
 0x21f   : > { %v6615_v48 = vadd.f32 %v6614_v18, %v6613_v34  ;;  %v9670_v34 = vld [vmem:[#allocation123_spill] sm:$0xff] }
 0x220   : > { %v3456_v18 = vrot.slane %v9670_v34, 4 }
 0x224   : > { %v6578_v38 = vpop.f32.mrf.mxu0 }
 0x226   : > { %v6579_v6 = vpop.f32.mrf.mxu0 }
 0x227   : > { %v6580_v24 = vadd.f32 %v6579_v6, %v6578_v38 }
 0x229   : > { %v1431_v39 = vadd.f32 %v6580_v24, %v1263_v21  ;;  %v9671_v21 = vmov 0.0  }
 0x22b   : > { %v1535_v57 = vadd.f32 %v6615_v48, %v1431_v39 }
 0x22d   : > { %v1538_v47 = vmul.f32 0.0078125, %v1535_v57 }
 0x22f   : > { %v2402_v40 = vmul.f32 %v1538_v47, %v1538_v47 }
 0x23e   : > { %v6683_v36 = vpop.f32.mrf.mxu1 }
 0x240   : > { %v6684_v7 = vpop.f32.mrf.mxu1 }
 0x241   : > { %v6685_v2 = vadd.f32 %v6684_v7, %v6683_v36 }
 0x246   : > { %v6648_v3 = vpop.f32.mrf.mxu0 }
 0x248   : > { %v6649_v56 = vpop.f32.mrf.mxu0 }
 0x249   : > { %v6650_v62 = vadd.f32 %v6649_v56, %v6648_v3 }
 0x24b   : > { %v1880_v37 = vadd.f32 %v6685_v2, %v6650_v62 }
 0x260   : > { %v6753_v9 = vpop.f32.mrf.mxu1 }
 0x262   : > { %v6754_v20 = vpop.f32.mrf.mxu1 }
 0x263   : > { %v6755_v31 = vadd.f32 %v6754_v20, %v6753_v9 }
 0x268   : > { %v6718_v55 = vpop.f32.mrf.mxu0 }
 0x26a   : > { %v6719_v17 = vpop.f32.mrf.mxu0 }
 0x26b   : > { %v6720_v33 = vadd.f32 %v6719_v17, %v6718_v55  ;;  %v2902_v17 = vsel %vm2406_vm1, %v1538_v47, 0  ;;  %v9674_v47 = vld [vmem:[#allocation25_spill] sm:$0xff] }
 0x26c   : > { %v8500_v36 = vand.u32 4294901760, %v2902_v17 }
 0x26d   : > { %v2018_v32 = vadd.f32 %v6720_v33, %v1880_v37 }
 0x26e   : > { %v2974_v24 = vsub.f32 %v2902_v17, %v8500_v36  ;;  %v9685_v17 = vld [vmem:[#allocation50_spill] sm:$0xff] }
 0x26f   : > { %v2126_v14 = vadd.f32 %v6755_v31, %v2018_v32  ;;  %v3457_v32 = vadd.f32 %v3456_v18, %v9670_v34  ;;  %v9680_v18 = vld [vmem:[#allocation44_spill] sm:$0xff] }
 0x271   : > { %v3458_v33 = vrot.slane %v3457_v32, 2 }
 0x273   : > { %v3459_v6 = vadd.f32 %v3458_v33, %v3457_v32  ;;  %v9684_v33 = vld [vmem:[#allocation49_spill] sm:$0xff] }
 0x275   : > { %v3460_v19 = vrot.slane %v3459_v6, 1 }
 0x277   : > { %v3461_v48 = vadd.f32 %v3460_v19, %v3459_v6  ;;  %v9687_v6 = vld [vmem:[#allocation70_spill] sm:$0xff]  ;;  %v9689_v19 = vld [vmem:[#allocation76_spill] sm:$0xff] }
 0x279   : > { %v8525_v57 = vand.u32 4294901760, %v3461_v48 }
 0x282   : > { %v6823_v0 = vpop.f32.mrf.mxu1 }
 0x284   : > { %v6824_v16 = vpop.f32.mrf.mxu1 }
 0x285   : > { %v6825_v44 = vadd.f32 %v6824_v16, %v6823_v0  ;;  %v2975_v0 = vand.u32 4294901760, %v2974_v24  ;;  %v8536_v16 = vsub.f32 %v3461_v48, %v8525_v57 }
 0x289   : > { %v6788_v63 = vpop.f32.mrf.mxu0 }
 0x28b   : > { %v6789_v13 = vpop.f32.mrf.mxu0 }
 0x28c   : > { %v6790_v42 = vadd.f32 %v6789_v13, %v6788_v63  ;;  %v2976_v63 = vsub.f32 %v2974_v24, %v2975_v0  ;;  %v9672_v13 = vld [vmem:[#allocation20_spill] sm:$0xff] }
 0x28e   : > { %v2294_v38 = vadd.f32 %v6790_v42, %v2126_v14  ;;  %v2977_v31 = vand.u32 4294901760, %v2976_v63  ;;  %v9673_v14 = vld [vmem:[#allocation122_spill] sm:$0xff]  ;;  %v9691_v63 = vld [vmem:[#allocation29_spill] sm:$0xff] }
 0x28f   : > { %v3450_v42 = vrot.slane %v9673_v14, 4 }
 0x290   : > { %v2398_v3 = vadd.f32 %v6825_v44, %v2294_v38  ;;  %v9675_v44 = vld [vmem:[#allocation27_spill] sm:$0xff]  ;;  %v9367_v38 = vand.u32 4294901760, %v8536_v16 }
 0x292   : > { %v2401_v7 = vmul.f32 0.0078125, %v2398_v3  ;;  %v9676_v3 = vld [vmem:[#allocation33_spill] sm:$0xff] }
 0x294   : > { %v2403_v46 = vsub.f32 %v2401_v7, %v2402_v40  ;;  %v3451_v40 = vadd.f32 %v3450_v42, %v9673_v14  ;;  %v9677_v7 = vld [vmem:[#allocation36_spill] sm:$0xff]  ;;  %v9693_v42 = vld [vmem:[#allocation31_spill] sm:$0xff] }
 0x296   : > { %v2404_v55 = vadd.f32 1e-05, %v2403_v46  ;;  %v9678_v46 = vld [vmem:[#allocation39_spill] sm:$0xff] }
 0x298   : > { %7312 = vrsqrt.f32 %v2404_v55  ;;  %v3575_v55 = vsub.f32 %v8536_v16, %v9367_v38 }
 0x2a5   : > { %v7313_v62 = vpop.eup %7312 }
 0x2a6   : > { %v2408_v37 = vsel %vm2406_vm1, %v7313_v62, 0  ;;  %v9679_v62 = vld [vmem:[#allocation41_spill] sm:$0xff] }
 0x2a7   : > { %v2479_v39 = vand.u32 4294901760, %v2408_v37 }
 0x2a9   : > { %v2480_v9 = vsub.f32 %v2408_v37, %v2479_v39  ;;  %2576 = vmatmul.mubr.f32.vlgmr.msra.gmra.mxu1 %v2479_v39  ;;  %v3452_v37 = vrot.slane %v3451_v40, 2 }
 0x2aa   : > { %2694 = vmatpush1.msra.mxu1 %v8425_v23  ;;  %2731 = vmatprep.mubr.f32.mxu1 %v9671_v21 }
 0x2ab   : > { %2696 = vmatprep.subr.mxu1 %v8427_v26  ;;  %v2481_v2 = vand.u32 4294901760, %v2480_v9  ;;  %v3453_v32 = vadd.f32 %v3452_v37, %v3451_v40  ;;  %v9694_v40 = vld [vmem:[#allocation88_spill] sm:$0xff] }
 0x2ac   : > { %2698 = vmatpush1.msra.mxu1 %v8434_v60  ;;  %v9696_v37 = vld [vmem:[#allocation92_spill] sm:$0xff] }
 0x2ad   : > { %2854 = vmatprep.subr.mxu1 %v8423_v10  ;;  %2735 = vmatmul.mubr.f32.vlgmr.msra.gmra.mxu1 %v2481_v2  ;;  %v2482_v20 = vsub.f32 %v2480_v9, %v2481_v2  ;;  %v9682_v2 = vld [vmem:[#allocation47_spill] sm:$0xff] }
 0x2ae   : > { %2856 = vmatpush1.msra.mxu1 %v8425_v23  ;;  %2893 = vmatprep.mubr.f32.mxu1 %v9671_v21 }
 0x2af   : > { %2858 = vmatprep.subr.mxu1 %v8427_v26  ;;  %v2483_v56 = vand.u32 4294901760, %v2482_v20  ;;  %v9683_v20 = vld [vmem:[#allocation48_spill] sm:$0xff] }
 0x2b0   : > { %2860 = vmatpush1.msra.mxu1 %v8434_v60 }
 0x2b1   : > { %3017 = vmatprep.subr.mxu1 %v8473_v15  ;;  %2484 = vmatmul.mubr.f32.vlgmr.msra.gmra.mxu0 %v2483_v56  ;;  %v3454_v56 = vrot.slane %v3453_v32, 1  ;;  %v9715_v15 = vld [vmem:[#allocation81_spill] sm:$0xff] }
 0x2b2   : > { %2615 = vmatpush1.msra.mxu0 %v8440_v54  ;;  %2895 = vmatmul.mubr.f32.vlgmr.msra.gmra.mxu1 %v2479_v39 }
 0x2b3   : > { %3023 = vmatpush1.msra.mxu1 %v8475_v12  ;;  %2618 = vmatprep.subr.mxu0 %v8443_v27  ;;  %v3455_v48 = vadd.f32 %v3454_v56, %v3453_v32  ;;  %v9699_v32 = vld [vmem:[#allocation53_spill] sm:$0xff] }
 0x2b4   : > { %3029 = vmatprep.subr.mxu1 %v8477_v8  ;;  %2621 = vmatpush1.msra.mxu0 %v8447_v29  ;;  %v9700_v56 = vld [vmem:[#allocation105_spill] sm:$0xff]  ;;  %v9713_v8 = vld [vmem:[#allocation78_spill] sm:$0xff] }
 0x2b5   : > { %3035 = vmatpush1.msra.mxu1 %v8479_v4  ;;  %2654 = vmatprep.mubr.f32.mxu0 %v9671_v21  ;;  %v8595_v38 = vand.u32 4294901760, %v3455_v48  ;;  %v9712_v4 = vld [vmem:[#allocation118_spill] sm:$0xff] }
 0x2b6   : > { %2772 = vmatprep.subr.mxu0 %v8451_v61  ;;  %3068 = vmatprep.mubr.f32.mxu1 %v9671_v21 }
 0x2b7   : > { %3186 = vmatprep.subr.mxu1 %v8423_v10  ;;  %2657 = vmatmul.mubr.f32.vlgmr.msra.gmra.mxu0 %v2480_v9  ;;  %v9681_v9 = vld [vmem:[#allocation46_spill] sm:$0xff] }
 0x2b8   : > { %2776 = vmatpush1.msra.mxu0 %v8454_v53  ;;  %3070 = vmatmul.mubr.f32.vlgmr.msra.gmra.mxu1 %v8500_v36 }
 0x2b9   : > { %3188 = vmatpush1.msra.mxu1 %v8425_v23  ;;  %2780 = vmatprep.subr.mxu0 %v8457_v11 }
 0x2ba   : > { %3190 = vmatprep.subr.mxu1 %v8427_v26  ;;  %2784 = vmatpush1.msra.mxu0 %v8461_v52 }
 0x2bb   : > { %3192 = vmatpush1.msra.mxu1 %v8434_v60  ;;  %2817 = vmatprep.mubr.f32.mxu0 %v9671_v21 }
 0x2bc   : > { %2933 = vmatprep.subr.mxu0 %v8423_v10  ;;  %3225 = vmatprep.mubr.f32.mxu1 %v9671_v21 }
 0x2bd   : > { %3348 = vmatprep.subr.mxu1 %v8423_v10  ;;  %2819 = vmatmul.mubr.f32.vlgmr.msra.gmra.mxu0 %v2479_v39  ;;  %v3576_v39 = vand.u32 4294901760, %v3575_v55  ;;  %v9695_v55 = vld [vmem:[#allocation32_spill] sm:$0xff] }
 0x2be   : > { %2935 = vmatpush1.msra.mxu0 %v8425_v23  ;;  %3229 = vmatmul.mubr.f32.vlgmr.msra.gmra.mxu1 %v2975_v0  ;;  %v9690_v0 = vld [vmem:[#allocation79_spill] sm:$0xff]  ;;  %v9710_v10 = vld [vmem:[#allocation116_spill] sm:$0xff] }
 0x2bf   : > { %3350 = vmatpush1.msra.mxu1 %v8425_v23  ;;  %2937 = vmatprep.subr.mxu0 %v8427_v26  ;;  %v9709_v23 = vld [vmem:[#allocation66_spill] sm:$0xff] }
 0x2c0   : > { %3352 = vmatprep.subr.mxu1 %v8427_v26  ;;  %2939 = vmatpush1.msra.mxu0 %v8434_v60  ;;  %v9708_v26 = vld [vmem:[#allocation115_spill] sm:$0xff] }
 0x2c1   : > { %3354 = vmatpush1.msra.mxu1 %v8434_v60  ;;  %2972 = vmatprep.mubr.f32.mxu0 %v9671_v21  ;;  %v9707_v60 = vld [vmem:[#allocation63_spill] sm:$0xff] }
 0x2c2   : > { %3106 = vmatprep.subr.mxu0 %v8437_v30  ;;  %3387 = vmatprep.mubr.f32.mxu1 %v9671_v21  ;;  %v9706_v30 = vld [vmem:[#allocation113_spill] sm:$0xff] }
 0x2c3   : > { %6861 = vmatprep.subr.mxu1 %v9672_v13  ;;  %2978 = vmatmul.mubr.f32.vlgmr.msra.gmra.mxu0 %v2977_v31  ;;  %v9692_v31 = vld [vmem:[#allocation85_spill] sm:$0xff] }
 0x2c4   : > { %3109 = vmatpush1.msra.mxu0 %v8440_v54  ;;  %3389 = vmatmul.mubr.f32.vlgmr.msra.gmra.mxu1 %v8500_v36  ;;  %v8606_v54 = vsub.f32 %v3455_v48, %v8595_v38  ;;  %v9714_v48 = vld [vmem:[#allocation119_spill] sm:$0xff] }
 0x2c5   : > { %6862 = vmatpush3.msra.mxu1 %v9674_v47  ;;  %3112 = vmatprep.subr.mxu0 %v8443_v27  ;;  %v9705_v27 = vld [vmem:[#allocation60_spill] sm:$0xff] }
 0x2c6   : > { %6863 = vmatprep.subr.mxu1 %v9675_v44  ;;  %3813 = vmatprep.mubr.f32.mxu1 %v8525_v57  ;;  %v9401_v12 = vand.u32 4294901760, %v8606_v54 }
 0x2c7   : > { %3115 = vmatpush1.msra.mxu0 %v8447_v29  ;;  %6864 = vmatpush3.msra.mxu1 %v9676_v3  ;;  %v9704_v29 = vld [vmem:[#allocation111_spill] sm:$0xff] }
 0x2c8   : > { %3148 = vmatprep.mubr.f32.mxu0 %v9671_v21  ;;  %3266 = vmatprep.subr.mxu0 %v8451_v61  ;;  %v9703_v61 = vld [vmem:[#allocation57_spill] sm:$0xff] }
 0x2c9   : > { %6865 = vmatprep.subr.mxu1 %v9677_v7  ;;  %3151 = vmatmul.mubr.f32.vlgmr.msra.gmra.mxu0 %v2974_v24  ;;  %v9688_v24 = vld [vmem:[#allocation73_spill] sm:$0xff] }
 0x2ca   : > { %3270 = vmatpush1.msra.mxu0 %v8454_v53  ;;  %6866 = vmatpush3.msra.mxu1 %v9678_v46  ;;  %v9702_v53 = vld [vmem:[#allocation108_spill] sm:$0xff] }
 0x2cb   : > { %3274 = vmatprep.subr.mxu0 %v8457_v11  ;;  %6867 = vmatprep.subr.mxu1 %v9679_v62  ;;  %v9701_v11 = vld [vmem:[#allocation55_spill] sm:$0xff] }
 0x2cc   : > { %3278 = vmatpush1.msra.mxu0 %v8461_v52  ;;  %6868 = vmatpush3.msra.mxu1 %v9680_v18  ;;  %v9698_v52 = vld [vmem:[#allocation102_spill] sm:$0xff] }
 0x2cd   : > { %3311 = vmatprep.mubr.f32.mxu0 %v9671_v21  ;;  %6826 = vmatprep.subr.mxu0 %v7474_v22  ;;  %v9711_v21 = vld [vmem:[#allocation69_spill] sm:$0xff] }
 0x2ce   : > { %6869 = vmatprep.subr.mxu1 %v9584_v43  ;;  %3313 = vmatmul.mubr.f32.vlgmr.msra.gmra.mxu0 %v8500_v36  ;;  %v9686_v36 = vld [vmem:[#allocation51_spill] sm:$0xff] }
 0x2cf   : > { %6827 = vmatpush3.msra.mxu0 %v7479_v25  ;;  %6870 = vmatpush3.msra.mxu1 %v9681_v9 }
 0x2d0   : > { %6828 = vmatprep.subr.mxu0 %v7486_v28  ;;  %3577 = vmatprep.mubr.f32.mxu0 %v3576_v39  ;;  %v9697_v39 = vld [vmem:[#allocation52_spill] sm:$0xff] }
 0x2d1   : > { %6871 = vmatprep.subr.mxu1 %v9682_v2  ;;  %6829 = vmatpush3.msra.mxu0 %v7497_v35 }
 0x2d2   : > { %6872 = vmatpush3.msra.mxu1 %v9683_v20  ;;  %6830 = vmatprep.subr.mxu0 %v7516_v45 }
 0x2d3   : > { %6873 = vmatprep.subr.mxu1 %v9684_v33  ;;  %6831 = vmatpush3.msra.mxu0 %v7527_v49 }
 0x2d4   : > { %6874 = vmatpush3.msra.mxu1 %v9685_v17  ;;  %6832 = vmatprep.subr.mxu0 %v7529_v50 }
 0x2d5   : > { %6875 = vmatprep.subr.mxu1 %v9686_v36  ;;  %6833 = vmatpush3.msra.mxu0 %v7531_v51 }
 0x2d6   : > { %6876 = vmatpush3.msra.mxu1 %v9687_v6  ;;  %6834 = vmatprep.subr.mxu0 %v7549_v58 }
 0x2d7   : > { %6877 = vmatprep.subr.mxu1 %v9688_v24  ;;  %6835 = vmatpush3.msra.mxu0 %v7551_v59 }
 0x2d8   : > { %6878 = vmatpush3.msra.mxu1 %v9689_v19  ;;  %6836 = vmatprep.subr.mxu0 %v7565_v1 }
 0x2d9   : > { %6879 = vmatprep.subr.mxu1 %v9690_v0  ;;  %6837 = vmatpush3.msra.mxu0 %v7576_v5 }
 0x2da   : > { %6880 = vmatpush3.msra.mxu1 %v9595_v41  ;;  %6838 = vmatprep.subr.mxu0 %v9691_v63  ;;  %v9758_v41 = vld [vmem:[#allocation8_spill] sm:$0xff] }
 0x2db   : > { %6881 = vmatprep.subr.mxu1 %v9692_v31  ;;  %6839 = vmatpush3.msra.mxu0 %v9693_v42  ;;  %v9728_v31 = vld [vmem:[#allocation11_spill] sm:$0xff] }
 0x2dc   : > { %6882 = vmatpush3.msra.mxu1 %v9694_v40  ;;  %6840 = vmatprep.subr.mxu0 %v9695_v55  ;;  %v9726_v40 = vld [vmem:[#allocation6_spill] sm:$0xff] }
 0x2dd   : > { %6883 = vmatprep.subr.mxu1 %v9696_v37  ;;  %6841 = vmatpush3.msra.mxu0 %v9697_v39  ;;  %v9725_v37 = vld [vmem:[#allocation5_spill] sm:$0xff] }
 0x2de   : > { %6884 = vmatpush3.msra.mxu1 %v9698_v52  ;;  %6842 = vmatprep.subr.mxu0 %v9699_v32  ;;  %v9724_v52 = vld [vmem:[#allocation4_spill] sm:$0xff] }
 0x2df   : > { %6885 = vmatprep.subr.mxu1 %v9700_v56  ;;  %6843 = vmatpush3.msra.mxu0 %v9701_v11 }
 0x2e0   : > { %6886 = vmatpush3.msra.mxu1 %v9702_v53  ;;  %6844 = vmatprep.subr.mxu0 %v9703_v61  ;;  %v9721_v53 = vld [vmem:[#allocation98_spill] sm:$0xff] }
 0x2e1   : > { %6887 = vmatprep.subr.mxu1 %v9704_v29  ;;  %6845 = vmatpush3.msra.mxu0 %v9705_v27  ;;  %v9720_v29 = vld [vmem:[#allocation95_spill] sm:$0xff] }
 0x2e2   : > { %6888 = vmatpush3.msra.mxu1 %v9706_v30  ;;  %6846 = vmatprep.subr.mxu0 %v9707_v60  ;;  %v3581_v30 = vsub.f32 %v8606_v54, %v9401_v12  ;;  %v9723_v12 = vld [vmem:[#allocation110_spill] sm:$0xff] }
 0x2e3   : > { %6889 = vmatprep.subr.mxu1 %v9708_v26  ;;  %6847 = vmatpush3.msra.mxu0 %v9709_v23  ;;  %v9716_v26 = vld [vmem:[#allocation84_spill] sm:$0xff] }
 0x2e4   : > { %6890 = vmatpush3.msra.mxu1 %v9710_v10  ;;  %6848 = vmatprep.subr.mxu0 %v9711_v21  ;;  %v9717_v10 = vand.u32 4294901760, %v8536_v16  ;;  %v3582_v56 = vand.u32 4294901760, %v3581_v30  ;;  %v9727_v30 = vld [vmem:[#allocation9_spill] sm:$0xff] }
 0x2e5   : > { %6891 = vmatprep.subr.mxu1 %v9712_v4  ;;  %6849 = vmatpush3.msra.mxu0 %v9713_v8  ;;  %v9718_v4 = vld [vmem:[#allocation87_spill] sm:$0xff] }
 0x2e6   : > { %6892 = vmatpush3.msra.mxu1 %v9714_v48  ;;  %6850 = vmatprep.subr.mxu0 %v9715_v15  ;;  %v9719_v48 = vld [vmem:[#allocation91_spill] sm:$0xff] }
 0x2e7   : > { %3815 = vmatmul.mubr.f32.vlgmr.msra.gmra.mxu1 %v8595_v38  ;;  %6931 = vmatprep.subr.mxu1 %v7474_v22 }
 0x2e8   : > { %6851 = vmatpush3.msra.mxu0 %v9716_v26  ;;  %6932 = vmatpush3.msra.mxu1 %v7479_v25 }
 0x2e9   : > { %4057 = vmatprep.mubr.f32.mxu1 %v9717_v10  ;;  %6852 = vmatprep.subr.mxu0 %v9718_v4  ;;  %v9722_v10 = vld [vmem:[#allocation101_spill] sm:$0xff] }
 0x2ea   : > { %6933 = vmatprep.subr.mxu1 %v7486_v28  ;;  %6853 = vmatpush3.msra.mxu0 %v9719_v48 }
 0x2eb   : > { %6934 = vmatpush3.msra.mxu1 %v7497_v35  ;;  %6854 = vmatprep.subr.mxu0 %v9720_v29 }
 0x2ec   : > { %6935 = vmatprep.subr.mxu1 %v7516_v45  ;;  %6855 = vmatpush3.msra.mxu0 %v9721_v53 }
 0x2ed   : > { %6936 = vmatpush3.msra.mxu1 %v7527_v49  ;;  %6856 = vmatprep.subr.mxu0 %v9722_v10 }
 0x2ee   : > { %6937 = vmatprep.subr.mxu1 %v7529_v50  ;;  %6857 = vmatpush3.msra.mxu0 %v9723_v12 }
 0x2ef   : > { %6938 = vmatpush3.msra.mxu1 %v7531_v51  ;;  %3583 = vmatmul.mubr.f32.vlgmr.msra.gmra.mxu0 %v3582_v56  ;;  %v9729_v56 = vld [vmem:[#allocation12_spill] sm:$0xff] }
 0x2f0   : > { %6896 = vmatprep.subr.mxu0 %v9724_v52  ;;  %6939 = vmatprep.subr.mxu1 %v7549_v58  ;;  %v9755_v52 = vld [vmem:[#allocation107_spill] sm:$0xff] }
 0x2f1   : > { %6897 = vmatpush3.msra.mxu0 %v9725_v37  ;;  %3950 = vmatprep.mubr.f32.mxu0 %v8536_v16  ;;  %v9730_v37 = vld [vmem:[#allocation13_spill] sm:$0xff]  ;;  %v9731_v16 = vld [vmem:[#allocation15_spill] sm:$0xff] }
 0x2f2   : > { %6940 = vmatpush3.msra.mxu1 %v7551_v59  ;;  %6898 = vmatprep.subr.mxu0 %v9726_v40  ;;  %v9732_v40 = vld [vmem:[#allocation17_spill] sm:$0xff] }
 0x2f3   : > { %6941 = vmatprep.subr.mxu1 %v7565_v1  ;;  %6899 = vmatpush3.msra.mxu0 %v9727_v30  ;;  %v9733_v30 = vld [vmem:[#allocation19_spill] sm:$0xff] }
 0x2f4   : > { %6942 = vmatpush3.msra.mxu1 %v7576_v5  ;;  %6900 = vmatprep.subr.mxu0 %v9728_v31  ;;  %v9734_v31 = vld [vmem:[#allocation22_spill] sm:$0xff] }
 0x2f5   : > { %6943 = vmatprep.subr.mxu1 %v9691_v63  ;;  %6901 = vmatpush3.msra.mxu0 %v9729_v56  ;;  %v9735_v56 = vld [vmem:[#allocation24_spill] sm:$0xff] }
 0x2f6   : > { %6944 = vmatpush3.msra.mxu1 %v9693_v42  ;;  %6902 = vmatprep.subr.mxu0 %v9730_v37  ;;  %v9736_v37 = vld [vmem:[#allocation35_spill] sm:$0xff] }
 0x2f7   : > { %6945 = vmatprep.subr.mxu1 %v9695_v55  ;;  %6903 = vmatpush3.msra.mxu0 %v9731_v16  ;;  %v9737_v16 = vld [vmem:[#allocation37_spill] sm:$0xff] }
 0x2f8   : > { %6946 = vmatpush3.msra.mxu1 %v9697_v39  ;;  %6904 = vmatprep.subr.mxu0 %v9732_v40  ;;  %v9738_v40 = vld [vmem:[#allocation38_spill] sm:$0xff] }
 0x2f9   : > { %6947 = vmatprep.subr.mxu1 %v9699_v32  ;;  %6905 = vmatpush3.msra.mxu0 %v9733_v30  ;;  %v9739_v30 = vld [vmem:[#allocation54_spill] sm:$0xff] }
 0x2fa   : > { %6948 = vmatpush3.msra.mxu1 %v9701_v11  ;;  %6906 = vmatprep.subr.mxu0 %v9734_v31  ;;  %v9740_v31 = vld [vmem:[#allocation56_spill] sm:$0xff] }
 0x2fb   : > { %6949 = vmatprep.subr.mxu1 %v9703_v61  ;;  %6907 = vmatpush3.msra.mxu0 %v9735_v56  ;;  %v9741_v56 = vld [vmem:[#allocation59_spill] sm:$0xff] }
 0x2fc   : > { %6950 = vmatpush3.msra.mxu1 %v9705_v27  ;;  %6908 = vmatprep.subr.mxu0 %v9736_v37  ;;  %v9742_v37 = vld [vmem:[#allocation62_spill] sm:$0xff] }
 0x2fd   : > { %6951 = vmatprep.subr.mxu1 %v9707_v60  ;;  %6909 = vmatpush3.msra.mxu0 %v9737_v16  ;;  %v9743_v16 = vld [vmem:[#allocation65_spill] sm:$0xff] }
 0x2fe   : > { %6952 = vmatpush3.msra.mxu1 %v9709_v23  ;;  %6910 = vmatprep.subr.mxu0 %v9738_v40  ;;  %v9744_v40 = vld [vmem:[#allocation68_spill] sm:$0xff] }
 0x2ff   : > { %6953 = vmatprep.subr.mxu1 %v9711_v21  ;;  %6911 = vmatpush3.msra.mxu0 %v9739_v30  ;;  %v9745_v30 = vld [vmem:[#allocation72_spill] sm:$0xff] }
 0x300   : > { %6954 = vmatpush3.msra.mxu1 %v9713_v8  ;;  %6912 = vmatprep.subr.mxu0 %v9740_v31  ;;  %v9746_v31 = vld [vmem:[#allocation75_spill] sm:$0xff] }
 0x301   : > { %6955 = vmatprep.subr.mxu1 %v9715_v15  ;;  %6913 = vmatpush3.msra.mxu0 %v9741_v56  ;;  %v3463_v56 = vmul.f32 %v9670_v34, %v9670_v34  ;;  %v9751_v34 = vld [vmem:[#allocation94_spill] sm:$0xff] }
 0x302   : > { %6956 = vmatpush3.msra.mxu1 %v9716_v26  ;;  %6914 = vmatprep.subr.mxu0 %v9742_v37  ;;  %v9747_v37 = vld [vmem:[#allocation83_spill] sm:$0xff] }
 0x303   : > { %6957 = vmatprep.subr.mxu1 %v9718_v4  ;;  %6915 = vmatpush3.msra.mxu0 %v9743_v16  ;;  %v9748_v16 = vld [vmem:[#allocation86_spill] sm:$0xff] }
 0x304   : > { %6958 = vmatpush3.msra.mxu1 %v9719_v48  ;;  %6916 = vmatprep.subr.mxu0 %v9744_v40  ;;  %v9749_v40 = vand.u32 4294901760, %v8606_v54 }
 0x305   : > { %6959 = vmatprep.subr.mxu1 %v9720_v29  ;;  %6917 = vmatpush3.msra.mxu0 %v9745_v30  ;;  %v9750_v30 = vld [vmem:[#allocation90_spill] sm:$0xff] }
 0x306   : > { %6960 = vmatpush3.msra.mxu1 %v9721_v53  ;;  %6918 = vmatprep.subr.mxu0 %v9746_v31  ;;  %v3470_v31 = vrot.slane %v3463_v56, 4 }
 0x307   : > { %6961 = vmatprep.subr.mxu1 %v9722_v10  ;;  %6919 = vmatpush3.msra.mxu0 %v9747_v37  ;;  %v9752_v37 = vld [vmem:[#allocation97_spill] sm:$0xff] }
 0x308   : > { %6962 = vmatpush3.msra.mxu1 %v9723_v12  ;;  %6920 = vmatprep.subr.mxu0 %v9748_v16  ;;  %v9753_v16 = vld [vmem:[#allocation100_spill] sm:$0xff] }
 0x309   : > { %4061 = vmatmul.mubr.f32.vlgmr.msra.gmra.mxu1 %v9749_v40  ;;  %7001 = vmatprep.subr.mxu1 %v7474_v22  ;;  %v9754_v40 = vld [vmem:[#allocation104_spill] sm:$0xff] }
 0x30a   : > { %6921 = vmatpush3.msra.mxu0 %v9750_v30  ;;  %7002 = vmatpush3.msra.mxu1 %v7479_v25  ;;  %v3471_v30 = vadd.f32 %v3470_v31, %v3463_v56  ;;  %v9759_v31 = vld [vmem:[#allocation10_spill] sm:$0xff] }
 0x30b   : > { %4331 = vmatprep.mubr.f32.mxu1 %v8525_v57  ;;  %6922 = vmatprep.subr.mxu0 %v9751_v34  ;;  %v9756_v34 = vld [vmem:[#allocation114_spill] sm:$0xff] }
 0x30c   : > { %7003 = vmatprep.subr.mxu1 %v7486_v28  ;;  %6923 = vmatpush3.msra.mxu0 %v9752_v37  ;;  %v9757_v37 = vld [vmem:[#allocation7_spill] sm:$0xff]  ;;  %v9760_v56 = vld [vmem:[#allocation14_spill] sm:$0xff] }
 0x30d   : > { %7004 = vmatpush3.msra.mxu1 %v7497_v35  ;;  %6924 = vmatprep.subr.mxu0 %v9753_v16  ;;  %v3472_v16 = vrot.slane %v3471_v30, 2 }
 0x30e   : > { %7005 = vmatprep.subr.mxu1 %v7516_v45  ;;  %6925 = vmatpush3.msra.mxu0 %v9754_v40 }
 0x30f   : > { %7006 = vmatpush3.msra.mxu1 %v7527_v49  ;;  %6926 = vmatprep.subr.mxu0 %v9755_v52 }
 0x310   : > { %7007 = vmatprep.subr.mxu1 %v7529_v50  ;;  %6927 = vmatpush3.msra.mxu0 %v9756_v34  ;;  %v9762_v34 = vld [vmem:[#allocation18_spill] sm:$0xff] }
 0x311   : > { %7008 = vmatpush3.msra.mxu1 %v7531_v51  ;;  %3953 = vmatmul.mubr.f32.vlgmr.msra.gmra.mxu0 %v8606_v54  ;;  %v9761_v54 = vld [vmem:[#allocation16_spill] sm:$0xff] }
 0x312   : > { %6966 = vmatprep.subr.mxu0 %v9757_v37  ;;  %7009 = vmatprep.subr.mxu1 %v7549_v58  ;;  %v3473_v37 = vadd.f32 %v3472_v16, %v3471_v30  ;;  %v9767_v16 = vld [vmem:[#allocation30_spill] sm:$0xff] }
 0x313   : > { %6967 = vmatpush3.msra.mxu0 %v9758_v41  ;;  %4227 = vmatprep.mubr.f32.mxu0 %v8525_v57  ;;  %v9763_v57 = vld [vmem:[#allocation21_spill] sm:$0xff] }
 0x314   : > { %7010 = vmatpush3.msra.mxu1 %v7551_v59  ;;  %6968 = vmatprep.subr.mxu0 %v9759_v31  ;;  %v9764_v31 = vld [vmem:[#allocation23_spill] sm:$0xff]  ;;  %v3474_v30 = vrot.slane %v3473_v37, 1 }
 0x315   : > { %7011 = vmatprep.subr.mxu1 %v7565_v1  ;;  %6969 = vmatpush3.msra.mxu0 %v9760_v56  ;;  %v9765_v56 = vld [vmem:[#allocation26_spill] sm:$0xff] }
 0x316   : > { %7012 = vmatpush3.msra.mxu1 %v7576_v5  ;;  %6970 = vmatprep.subr.mxu0 %v9761_v54  ;;  %v9766_v54 = vld [vmem:[#allocation28_spill] sm:$0xff] }
 0x317   : > { %7013 = vmatprep.subr.mxu1 %v9691_v63  ;;  %6971 = vmatpush3.msra.mxu0 %v9762_v34  ;;  %v3475_v34 = vadd.f32 %v3474_v30, %v3473_v37  ;;  %v9775_v37 = vld [vmem:[#allocation67_spill] sm:$0xff] }
 0x318   : > { %7014 = vmatpush3.msra.mxu1 %v9693_v42  ;;  %6972 = vmatprep.subr.mxu0 %v9763_v57  ;;  %v9768_v57 = vld [vmem:[#allocation34_spill] sm:$0xff]  ;;  %v9776_v30 = vld [vmem:[#allocation71_spill] sm:$0xff] }
 0x319   : > { %7015 = vmatprep.subr.mxu1 %v9695_v55  ;;  %6973 = vmatpush3.msra.mxu0 %v9764_v31  ;;  %v9769_v31 = vld [vmem:[#allocation40_spill] sm:$0xff]  ;;  %v8747_v41 = vand.u32 4294901760, %v3475_v34 }
 0x31a   : > { %7016 = vmatpush3.msra.mxu1 %v9697_v39  ;;  %6974 = vmatprep.subr.mxu0 %v9765_v56  ;;  %v9770_v56 = vld [vmem:[#allocation42_spill] sm:$0xff] }
 0x31b   : > { %7017 = vmatprep.subr.mxu1 %v9699_v32  ;;  %6975 = vmatpush3.msra.mxu0 %v9766_v54  ;;  %v9771_v54 = vld [vmem:[#allocation43_spill] sm:$0xff] }
 0x31c   : > { %7018 = vmatpush3.msra.mxu1 %v9701_v11  ;;  %6976 = vmatprep.subr.mxu0 %v9767_v16  ;;  %v9772_v16 = vld [vmem:[#allocation58_spill] sm:$0xff] }
 0x31d   : > { %7019 = vmatprep.subr.mxu1 %v9703_v61  ;;  %6977 = vmatpush3.msra.mxu0 %v9768_v57  ;;  %v9773_v57 = vld [vmem:[#allocation61_spill] sm:$0xff] }
 0x31e   : > { %7020 = vmatpush3.msra.mxu1 %v9705_v27  ;;  %6978 = vmatprep.subr.mxu0 %v9769_v31  ;;  %v9774_v31 = vld [vmem:[#allocation64_spill] sm:$0xff] }
 0x31f   : > { %7021 = vmatprep.subr.mxu1 %v9707_v60  ;;  %6979 = vmatpush3.msra.mxu0 %v9770_v56  ;;  %v9785_v56 = vld [vmem:[#allocation106_spill] sm:$0xff] }
 0x320   : > { %7022 = vmatpush3.msra.mxu1 %v9709_v23  ;;  %6980 = vmatprep.subr.mxu0 %v9771_v54  ;;  %v8760_v54 = vsub.f32 %v3475_v34, %v8747_v41 }
 0x321   : > { %7023 = vmatprep.subr.mxu1 %v9711_v21  ;;  %6981 = vmatpush3.msra.mxu0 %v9772_v16  ;;  %v9777_v16 = vld [vmem:[#allocation74_spill] sm:$0xff] }
 0x322   : > { %7024 = vmatpush3.msra.mxu1 %v9713_v8  ;;  %6982 = vmatprep.subr.mxu0 %v9773_v57  ;;  %v3462_v57 = vmul.f32 %v9673_v14, %v9673_v14  ;;  %v4437_v34 = vand.u32 4294901760, %v8760_v54 }
 0x323   : > { %7025 = vmatprep.subr.mxu1 %v9715_v15  ;;  %6983 = vmatpush3.msra.mxu0 %v9774_v31  ;;  %v9778_v31 = vld [vmem:[#allocation77_spill] sm:$0xff] }
 0x324   : > { %7026 = vmatpush3.msra.mxu1 %v9716_v26  ;;  %6984 = vmatprep.subr.mxu0 %v9775_v37  ;;  %v9779_v37 = vld [vmem:[#allocation80_spill] sm:$0xff]  ;;  %v3464_v14 = vrot.slane %v3462_v57, 4 }
 0x325   : > { %7027 = vmatprep.subr.mxu1 %v9718_v4  ;;  %6985 = vmatpush3.msra.mxu0 %v9776_v30  ;;  %v9780_v30 = vld [vmem:[#allocation89_spill] sm:$0xff] }
 0x326   : > { %7028 = vmatpush3.msra.mxu1 %v9719_v48  ;;  %6986 = vmatprep.subr.mxu0 %v9777_v16  ;;  %v9781_v16 = vld [vmem:[#allocation93_spill] sm:$0xff] }
 0x327   : > { %7029 = vmatprep.subr.mxu1 %v9720_v29  ;;  %6987 = vmatpush3.msra.mxu0 %v9778_v31  ;;  %v9782_v31 = vld [vmem:[#allocation96_spill] sm:$0xff] }
 0x328   : > { %7030 = vmatpush3.msra.mxu1 %v9721_v53  ;;  %6988 = vmatprep.subr.mxu0 %v9779_v37  ;;  %v9783_v37 = vld [vmem:[#allocation99_spill] sm:$0xff] }
 0x329   : > { %7031 = vmatprep.subr.mxu1 %v9722_v10  ;;  %6989 = vmatpush3.msra.mxu0 %v9780_v30  ;;  %v9784_v30 = vld [vmem:[#allocation103_spill] sm:$0xff] }
 0x32a   : > { %7032 = vmatpush3.msra.mxu1 %v9723_v12  ;;  %6990 = vmatprep.subr.mxu0 %v9781_v16  ;;  %v3465_v16 = vadd.f32 %v3464_v14, %v3462_v57  ;;  %v9800_v57 = vld [vmem:[#allocation118_spill] sm:$0xff] }
 0x32b   : > { %4333 = vmatmul.mubr.f32.vlgmr.msra.gmra.mxu1 %v8595_v38  ;;  %7071 = vmatprep.subr.mxu1 %v9672_v13  ;;  %v4438_v13 = vsub.f32 %v8760_v54, %v4437_v34 }
 0x32c   : > { %6991 = vmatpush3.msra.mxu0 %v9782_v31  ;;  %7072 = vmatpush3.msra.mxu1 %v9674_v47  ;;  %v9786_v47 = vld [vmem:[#allocation109_spill] sm:$0xff]  ;;  %v3466_v14 = vrot.slane %v3465_v16, 2 }
 0x32d   : > { %4676 = vmatprep.mubr.f32.mxu1 %v8747_v41  ;;  %6992 = vmatprep.subr.mxu0 %v9783_v37  ;;  %v9787_v37 = vld [vmem:[#allocation112_spill] sm:$0xff] }
 0x32e   : > { %7073 = vmatprep.subr.mxu1 %v9675_v44  ;;  %6993 = vmatpush3.msra.mxu0 %v9784_v30  ;;  %v9788_v44 = vld [vmem:[#allocation117_spill] sm:$0xff] }
 0x32f   : > { %7074 = vmatpush3.msra.mxu1 %v9676_v3  ;;  %6994 = vmatprep.subr.mxu0 %v9785_v56  ;;  %v4439_v3 = vand.u32 4294901760, %v4438_v13  ;;  %v9801_v13 = vld [vmem:[#allocation119_spill] sm:$0xff] }
 0x330   : > { %7075 = vmatprep.subr.mxu1 %v9677_v7  ;;  %6995 = vmatpush3.msra.mxu0 %v9786_v47  ;;  %v3467_v7 = vadd.f32 %v3466_v14, %v3465_v16 }
 0x331   : > { %7076 = vmatpush3.msra.mxu1 %v9678_v46  ;;  %6996 = vmatprep.subr.mxu0 %v9787_v37  ;;  %v9789_v46 = vld [vmem:[#allocation82_spill] sm:$0xff] }
 0x332   : > { %7077 = vmatprep.subr.mxu1 %v9679_v62  ;;  %6997 = vmatpush3.msra.mxu0 %v9788_v44  ;;  %v9790_v62 = vld [vmem:[#allocation85_spill] sm:$0xff] }
 0x333   : > { %7078 = vmatpush3.msra.mxu1 %v9680_v18  ;;  %4229 = vmatmul.mubr.f32.vlgmr.msra.gmra.mxu0 %v8595_v38  ;;  %v9791_v18 = vld [vmem:[#allocation88_spill] sm:$0xff] }
 0x334   : > { %7036 = vmatprep.subr.mxu0 %v7474_v22  ;;  %7079 = vmatprep.subr.mxu1 %v9584_v43  ;;  %v3468_v43 = vrot.slane %v3467_v7, 1 }
 0x335   : > { %7037 = vmatpush3.msra.mxu0 %v7479_v25  ;;  %4440 = vmatprep.mubr.f32.mxu0 %v4439_v3  ;;  %v9802_v3 = vld [vmem:[#allocation4_spill] sm:$0xff] }
 0x336   : > { %7080 = vmatpush3.msra.mxu1 %v9681_v9  ;;  %7038 = vmatprep.subr.mxu0 %v7486_v28  ;;  %v3469_v38 = vadd.f32 %v3468_v43, %v3467_v7  ;;  %v9792_v9 = vld [vmem:[#allocation92_spill] sm:$0xff]  ;;  %v9803_v7 = vld [vmem:[#allocation5_spill] sm:$0xff]  ;;  %v9804_v43 = vld [vmem:[#allocation6_spill] sm:$0xff] }
 0x337   : > { %7081 = vmatprep.subr.mxu1 %v9682_v2  ;;  %7039 = vmatpush3.msra.mxu0 %v7497_v35 }
 0x338   : > { %7082 = vmatpush3.msra.mxu1 %v9683_v20  ;;  %7040 = vmatprep.subr.mxu0 %v7516_v45  ;;  %v8821_v2 = vand.u32 4294901760, %v3469_v38  ;;  %v9793_v20 = vld [vmem:[#allocation102_spill] sm:$0xff] }
 0x339   : > { %7083 = vmatprep.subr.mxu1 %v9684_v33  ;;  %7041 = vmatpush3.msra.mxu0 %v7527_v49  ;;  %v9794_v33 = vld [vmem:[#allocation105_spill] sm:$0xff] }
 0x33a   : > { %7084 = vmatpush3.msra.mxu1 %v9685_v17  ;;  %7042 = vmatprep.subr.mxu0 %v7529_v50  ;;  %v9795_v17 = vld [vmem:[#allocation108_spill] sm:$0xff] }
 0x33b   : > { %7085 = vmatprep.subr.mxu1 %v9686_v36  ;;  %7043 = vmatpush3.msra.mxu0 %v7531_v51  ;;  %v9796_v36 = vld [vmem:[#allocation111_spill] sm:$0xff] }
 0x33c   : > { %7086 = vmatpush3.msra.mxu1 %v9687_v6  ;;  %7044 = vmatprep.subr.mxu0 %v7549_v58  ;;  %v8832_v6 = vsub.f32 %v3469_v38, %v8821_v2  ;;  %v9805_v38 = vld [vmem:[#allocation9_spill] sm:$0xff] }
 0x33d   : > { %7087 = vmatprep.subr.mxu1 %v9688_v24  ;;  %7045 = vmatpush3.msra.mxu0 %v7551_v59  ;;  %v9797_v24 = vld [vmem:[#allocation113_spill] sm:$0xff] }
 0x33e   : > { %7088 = vmatpush3.msra.mxu1 %v9689_v19  ;;  %7046 = vmatprep.subr.mxu0 %v7565_v1  ;;  %v9798_v19 = vld [vmem:[#allocation115_spill] sm:$0xff]  ;;  %v4443_v16 = vand.u32 4294901760, %v8832_v6 }
 0x33f   : > { %7089 = vmatprep.subr.mxu1 %v9690_v0  ;;  %7047 = vmatpush3.msra.mxu0 %v7576_v5  ;;  %v9799_v0 = vld [vmem:[#allocation116_spill] sm:$0xff] }
 0x340   : > { %7090 = vmatpush3.msra.mxu1 %v9789_v46  ;;  %7048 = vmatprep.subr.mxu0 %v9691_v63  ;;  %v4444_v14 = vsub.f32 %v8832_v6, %v4443_v16  ;;  %v9806_v46 = vld [vmem:[#allocation11_spill] sm:$0xff] }
 0x341   : > { %7091 = vmatprep.subr.mxu1 %v9790_v62  ;;  %7049 = vmatpush3.msra.mxu0 %v9693_v42  ;;  %v9807_v62 = vld [vmem:[#allocation12_spill] sm:$0xff] }
 0x342   : > { %7092 = vmatpush3.msra.mxu1 %v9791_v18  ;;  %7050 = vmatprep.subr.mxu0 %v9695_v55  ;;  %v9808_v18 = vld [vmem:[#allocation13_spill] sm:$0xff] }
 0x343   : > { %7093 = vmatprep.subr.mxu1 %v9792_v9  ;;  %7051 = vmatpush3.msra.mxu0 %v9697_v39  ;;  %v9810_v9 = vld [vmem:[#allocation17_spill] sm:$0xff] }
 0x344   : > { %7094 = vmatpush3.msra.mxu1 %v9793_v20  ;;  %7052 = vmatprep.subr.mxu0 %v9699_v32  ;;  %v9811_v20 = vld [vmem:[#allocation19_spill] sm:$0xff] }
 0x345   : > { %7095 = vmatprep.subr.mxu1 %v9794_v33  ;;  %7053 = vmatpush3.msra.mxu0 %v9701_v11  ;;  %v9812_v33 = vld [vmem:[#allocation22_spill] sm:$0xff] }
 0x346   : > { %7096 = vmatpush3.msra.mxu1 %v9795_v17  ;;  %7054 = vmatprep.subr.mxu0 %v9703_v61  ;;  %v9813_v17 = vld [vmem:[#allocation24_spill] sm:$0xff] }
 0x347   : > { %7097 = vmatprep.subr.mxu1 %v9796_v36  ;;  %7055 = vmatpush3.msra.mxu0 %v9705_v27  ;;  %v9814_v36 = vld [vmem:[#allocation35_spill] sm:$0xff] }
 0x348   : > { %7098 = vmatpush3.msra.mxu1 %v9797_v24  ;;  %7056 = vmatprep.subr.mxu0 %v9707_v60  ;;  %v9815_v24 = vld [vmem:[#allocation37_spill] sm:$0xff] }
 0x349   : > { %7099 = vmatprep.subr.mxu1 %v9798_v19  ;;  %7057 = vmatpush3.msra.mxu0 %v9709_v23  ;;  %v9816_v19 = vld [vmem:[#allocation38_spill] sm:$0xff] }
 0x34a   : > { %7100 = vmatpush3.msra.mxu1 %v9799_v0  ;;  %7058 = vmatprep.subr.mxu0 %v9711_v21  ;;  %v9817_v0 = vld [vmem:[#allocation54_spill] sm:$0xff] }
 0x34b   : > { %7101 = vmatprep.subr.mxu1 %v9800_v57  ;;  %7059 = vmatpush3.msra.mxu0 %v9713_v8  ;;  %v9818_v57 = vld [vmem:[#allocation56_spill] sm:$0xff] }
 0x34c   : > { %7102 = vmatpush3.msra.mxu1 %v9801_v13  ;;  %7060 = vmatprep.subr.mxu0 %v9715_v15  ;;  %v9819_v13 = vld [vmem:[#allocation59_spill] sm:$0xff] }
 0x34d   : > { %4678 = vmatmul.mubr.f32.vlgmr.msra.gmra.mxu1 %v8821_v2  ;;  %7141 = vmatprep.subr.mxu1 %v7474_v22 }
 0x34e   : > { %7061 = vmatpush3.msra.mxu0 %v9716_v26  ;;  %7142 = vmatpush3.msra.mxu1 %v7479_v25 }
 0x34f   : > { %4920 = vmatprep.mubr.f32.mxu1 %v4437_v34  ;;  %7062 = vmatprep.subr.mxu0 %v9718_v4  ;;  %v4445_v34 = vand.u32 4294901760, %v4444_v14  ;;  %v9820_v14 = vld [vmem:[#allocation62_spill] sm:$0xff] }
 0x350   : > { %7143 = vmatprep.subr.mxu1 %v7486_v28  ;;  %7063 = vmatpush3.msra.mxu0 %v9719_v48 }
 0x351   : > { %7144 = vmatpush3.msra.mxu1 %v7497_v35  ;;  %7064 = vmatprep.subr.mxu0 %v9720_v29 }
 0x352   : > { %7145 = vmatprep.subr.mxu1 %v7516_v45  ;;  %7065 = vmatpush3.msra.mxu0 %v9721_v53 }
 0x353   : > { %7146 = vmatpush3.msra.mxu1 %v7527_v49  ;;  %7066 = vmatprep.subr.mxu0 %v9722_v10 }
 0x354   : > { %7147 = vmatprep.subr.mxu1 %v7529_v50  ;;  %7067 = vmatpush3.msra.mxu0 %v9723_v12 }
 0x355   : > { %7148 = vmatpush3.msra.mxu1 %v7531_v51  ;;  %4446 = vmatmul.mubr.f32.vlgmr.msra.gmra.mxu0 %v4445_v34  ;;  %v9821_v34 = vld [vmem:[#allocation65_spill] sm:$0xff] }
 0x356   : > { %7106 = vmatprep.subr.mxu0 %v9802_v3  ;;  %7149 = vmatprep.subr.mxu1 %v7549_v58 }
 0x357   : > { %7107 = vmatpush3.msra.mxu0 %v9803_v7  ;;  %4813 = vmatprep.mubr.f32.mxu0 %v8760_v54  ;;  %v9809_v54 = vld [vmem:[#allocation15_spill] sm:$0xff]  ;;  %v9822_v7 = vld [vmem:[#allocation68_spill] sm:$0xff] }
 0x358   : > { %7150 = vmatpush3.msra.mxu1 %v7551_v59  ;;  %7108 = vmatprep.subr.mxu0 %v9804_v43  ;;  %v9823_v43 = vld [vmem:[#allocation72_spill] sm:$0xff] }
 0x359   : > { %7151 = vmatprep.subr.mxu1 %v7565_v1  ;;  %7109 = vmatpush3.msra.mxu0 %v9805_v38 }
 0x35a   : > { %7152 = vmatpush3.msra.mxu1 %v7576_v5  ;;  %7110 = vmatprep.subr.mxu0 %v9806_v46  ;;  %v9824_v46 = vld [vmem:[#allocation75_spill] sm:$0xff] }
 0x35b   : > { %7153 = vmatprep.subr.mxu1 %v9691_v63  ;;  %7111 = vmatpush3.msra.mxu0 %v9807_v62  ;;  %v9825_v62 = vld [vmem:[#allocation83_spill] sm:$0xff] }
 0x35c   : > { %7154 = vmatpush3.msra.mxu1 %v9693_v42  ;;  %7112 = vmatprep.subr.mxu0 %v9808_v18  ;;  %v9826_v18 = vld [vmem:[#allocation86_spill] sm:$0xff] }
 0x35d   : > { %7155 = vmatprep.subr.mxu1 %v9695_v55  ;;  %7113 = vmatpush3.msra.mxu0 %v9809_v54 }
 0x35e   : > { %7156 = vmatpush3.msra.mxu1 %v9697_v39  ;;  %7114 = vmatprep.subr.mxu0 %v9810_v9  ;;  %v9827_v9 = vld [vmem:[#allocation90_spill] sm:$0xff] }
 0x35f   : > { %7157 = vmatprep.subr.mxu1 %v9699_v32  ;;  %7115 = vmatpush3.msra.mxu0 %v9811_v20  ;;  %v9828_v20 = vld [vmem:[#allocation94_spill] sm:$0xff] }
 0x360   : > { %7158 = vmatpush3.msra.mxu1 %v9701_v11  ;;  %7116 = vmatprep.subr.mxu0 %v9812_v33 }
 0x361   : > { %7159 = vmatprep.subr.mxu1 %v9703_v61  ;;  %7117 = vmatpush3.msra.mxu0 %v9813_v17  ;;  %v9829_v17 = vld [vmem:[#allocation97_spill] sm:$0xff] }
 0x362   : > { %7160 = vmatpush3.msra.mxu1 %v9705_v27  ;;  %7118 = vmatprep.subr.mxu0 %v9814_v36 }
 0x363   : > { %7161 = vmatprep.subr.mxu1 %v9707_v60  ;;  %7119 = vmatpush3.msra.mxu0 %v9815_v24 }
 0x364   : > { %7162 = vmatpush3.msra.mxu1 %v9709_v23  ;;  %7120 = vmatprep.subr.mxu0 %v9816_v19 }
 0x365   : > { %7163 = vmatprep.subr.mxu1 %v9711_v21  ;;  %7121 = vmatpush3.msra.mxu0 %v9817_v0  ;;  %v9832_v0 = vld [vmem:[#allocation7_spill] sm:$0xff] }
 0x366   : > { %7164 = vmatpush3.msra.mxu1 %v9713_v8  ;;  %7122 = vmatprep.subr.mxu0 %v9818_v57  ;;  %v9835_v57 = vld [vmem:[#allocation14_spill] sm:$0xff] }
 0x367   : > { %7165 = vmatprep.subr.mxu1 %v9715_v15  ;;  %7123 = vmatpush3.msra.mxu0 %v9819_v13  ;;  %v9837_v13 = vld [vmem:[#allocation18_spill] sm:$0xff] }
 0x368   : > { %7166 = vmatpush3.msra.mxu1 %v9716_v26  ;;  %7124 = vmatprep.subr.mxu0 %v9820_v14  ;;  %v9838_v14 = vld [vmem:[#allocation21_spill] sm:$0xff] }
 0x369   : > { %7167 = vmatprep.subr.mxu1 %v9718_v4  ;;  %7125 = vmatpush3.msra.mxu0 %v9821_v34  ;;  %v2577_v3 = vpop.f32.mrf.mxu1 }
 0x36a   : > { %7168 = vmatpush3.msra.mxu1 %v9719_v48  ;;  %7126 = vmatprep.subr.mxu0 %v9822_v7  ;;  %v9840_v7 = vld [vmem:[#allocation26_spill] sm:$0xff] }
 0x36b   : > { %7169 = vmatprep.subr.mxu1 %v9720_v29  ;;  %7127 = vmatpush3.msra.mxu0 %v9823_v43  ;;  %v2579_v38 = vpop.f32.mrf.mxu1 }
 0x36c   : > { %7170 = vmatpush3.msra.mxu1 %v9721_v53  ;;  %7128 = vmatprep.subr.mxu0 %v9824_v46 }
 0x36d   : > { %7171 = vmatprep.subr.mxu1 %v9722_v10  ;;  %7129 = vmatpush3.msra.mxu0 %v9825_v62  ;;  %v2736_v54 = vpop.f32.mrf.mxu1 }
 0x36e   : > { %7172 = vmatpush3.msra.mxu1 %v9723_v12  ;;  %7130 = vmatprep.subr.mxu0 %v9826_v18  ;;  %v9844_v18 = vld [vmem:[#allocation40_spill] sm:$0xff] }
 0x36f   : > { %4924 = vmatmul.mubr.f32.vlgmr.msra.gmra.mxu1 %v4443_v16  ;;  %7211 = vmatprep.subr.mxu1 %v7474_v22  ;;  %v2738_v36 = vpop.f32.mrf.mxu1  ;;  %v9830_v16 = vld [vmem:[#allocation100_spill] sm:$0xff] }
 0x370   : > { %7131 = vmatpush3.msra.mxu0 %v9827_v9  ;;  %7212 = vmatpush3.msra.mxu1 %v7479_v25  ;;  %v9845_v9 = vld [vmem:[#allocation42_spill] sm:$0xff] }
 0x371   : > { %5194 = vmatprep.mubr.f32.mxu1 %v8747_v41  ;;  %7132 = vmatprep.subr.mxu0 %v9828_v20  ;;  %v2485_v33 = vpop.f32.mrf.mxu0  ;;  %v3401_v20 = vlaneseq }
 0x372   : > { %7213 = vmatprep.subr.mxu1 %v7486_v28  ;;  %7133 = vmatpush3.msra.mxu0 %v9829_v17  ;;  %v2578_v24 = vadd.f32 %v2577_v3, %v2485_v33  ;;  %v9831_v28 = vld [vmem:[#allocation114_spill] sm:$0xff]  ;;  %v2896_v19 = vpop.f32.mrf.mxu1  ;;  %v9846_v33 = vld [vmem:[#allocation43_spill] sm:$0xff] }
 0x373   : > { %7214 = vmatpush3.msra.mxu1 %v7497_v35  ;;  %7134 = vmatprep.subr.mxu0 %v9830_v16  ;;  %v2487_v22 = vpop.f32.mrf.mxu0  ;;  %v8984_v16 = vld [vmem:[%s421_s9] sm:$0xff] }
 0x374   : > { %7215 = vmatprep.subr.mxu1 %v7516_v45  ;;  %7135 = vmatpush3.msra.mxu0 %v9754_v40  ;;  %v2580_v25 = vadd.f32 %v2579_v38, %v2487_v22  ;;  %v9833_v40 = vld [vmem:[#allocation8_spill] sm:$0xff] }
 0x375   : > { %7216 = vmatpush3.msra.mxu1 %v7527_v49  ;;  %7136 = vmatprep.subr.mxu0 %v9755_v52 }
 0x376   : > { %7217 = vmatprep.subr.mxu1 %v7529_v50  ;;  %7137 = vmatpush3.msra.mxu0 %v9831_v28  ;;  %v9834_v50 = vld [vmem:[#allocation10_spill] sm:$0xff] }
 0x377   : > { %7218 = vmatpush3.msra.mxu1 %v7531_v51  ;;  %4816 = vmatmul.mubr.f32.vlgmr.msra.gmra.mxu0 %v8832_v6  ;;  %v2658_v35 = vpop.f32.mrf.mxu0  ;;  %v2898_v51 = vpop.f32.mrf.mxu1 }
 0x378   : > { %7176 = vmatprep.subr.mxu0 %v9832_v0  ;;  %7219 = vmatprep.subr.mxu1 %v7549_v58  ;;  %v2659_v45 = vadd.f32 %v2658_v35, %v2578_v24  ;;  %v9836_v58 = vld [vmem:[#allocation16_spill] sm:$0xff]  ;;  %v8980_v24 = vshrl.u32 %v3401_v20, 7 }
 0x379   : > { %7177 = vmatpush3.msra.mxu0 %v9833_v40  ;;  %5090 = vmatprep.mubr.f32.mxu0 %v8747_v41  ;;  %v2660_v49 = vpop.f32.mrf.mxu0  ;;  %v3071_v34 = vpop.f32.mrf.mxu1 }
 0x37a   : > { %7220 = vmatpush3.msra.mxu1 %v7551_v59  ;;  %7178 = vmatprep.subr.mxu0 %v9834_v50  ;;  %v2661_v52 = vadd.f32 %v2660_v49, %v2580_v25  ;;  %v2737_v6 = vadd.f32 %v2736_v54, %v2659_v45  ;;  %v3403_v45 = vsub.s32 0, %v8980_v24 }
 0x37b   : > { %7221 = vmatprep.subr.mxu1 %v7565_v1  ;;  %7179 = vmatpush3.msra.mxu0 %v9835_v57  ;;  %v9839_v1 = vld [vmem:[#allocation23_spill] sm:$0xff]  ;;  %v3073_v38 = vpop.f32.mrf.mxu1 }
 0x37c   : > { %7222 = vmatpush3.msra.mxu1 %v7576_v5  ;;  %7180 = vmatprep.subr.mxu0 %v9836_v58  ;;  %v2739_v41 = vadd.f32 %v2738_v36, %v2661_v52  ;;  %v9849_v36 = vld [vmem:[#allocation64_spill] sm:$0xff]  ;;  %v9856_v52 = vld [vmem:[#allocation93_spill] sm:$0xff] }
 0x37d   : > { %7223 = vmatprep.subr.mxu1 %v9691_v63  ;;  %7181 = vmatpush3.msra.mxu0 %v9837_v13  ;;  %v2820_v59 = vpop.f32.mrf.mxu0  ;;  %v9858_v13 = vld [vmem:[#allocation135_spill] sm:$0xff] }
 0x37e   : > { %7224 = vmatpush3.msra.mxu1 %v9693_v42  ;;  %7182 = vmatprep.subr.mxu0 %v9838_v14  ;;  %v2821_v3 = vadd.f32 %v2820_v59, %v2737_v6  ;;  %v9841_v42 = vld [vmem:[#allocation28_spill] sm:$0xff] }
 0x37f   : > { %7225 = vmatprep.subr.mxu1 %v9695_v55  ;;  %7183 = vmatpush3.msra.mxu0 %v9839_v1  ;;  %v2822_v5 = vpop.f32.mrf.mxu0  ;;  %v9842_v55 = vld [vmem:[#allocation30_spill] sm:$0xff] }
 0x380   : > { %7226 = vmatpush3.msra.mxu1 %v9697_v39  ;;  %7184 = vmatprep.subr.mxu0 %v9840_v7  ;;  %v2897_v43 = vadd.f32 %v2896_v19, %v2821_v3  ;;  %v2823_v63 = vadd.f32 %v2822_v5, %v2739_v41  ;;  %v9843_v39 = vld [vmem:[#allocation34_spill] sm:$0xff]  ;;  %v9857_v41 = vld [vmem:[#allocation99_spill] sm:$0xff]  ;;  %v9860_v3 = vld [vmem:[#allocation137_spill] sm:$0xff]  ;;  %v9862_v5 = vmov 0.0  }
 0x381   : > { %7227 = vmatprep.subr.mxu1 %v9699_v32  ;;  %7185 = vmatpush3.msra.mxu0 %v9841_v42  ;;  %v9861_v1 = vld [vmem:[#allocation138_spill] sm:$0xff]  ;;  %v9863_v7 = vld [vmem:[#allocation45_spill] sm:$0xff] }
 0x382   : > { %7228 = vmatpush3.msra.mxu1 %v9701_v11  ;;  %7186 = vmatprep.subr.mxu0 %v9842_v55  ;;  %v2899_v46 = vadd.f32 %v2898_v51, %v2823_v63  ;;  %v9864_v63 = vld [vmem:[#allocation124_spill] sm:$0xff] }
 0x383   : > { %7229 = vmatprep.subr.mxu1 %v9703_v61  ;;  %7187 = vmatpush3.msra.mxu0 %v9843_v39  ;;  %v2979_v62 = vpop.f32.mrf.mxu0  ;;  %v3230_v61 = vpop.f32.mrf.mxu1 }
 0x384   : > { %7230 = vmatpush3.msra.mxu1 %v9705_v27  ;;  %7188 = vmatprep.subr.mxu0 %v9844_v18  ;;  %v3397_v54 = vcombine.low %v2897_v43, %v2899_v46  ;;  %v3072_v32 = vadd.f32 %v3071_v34, %v2979_v62  ;;  %v9847_v27 = vld [vmem:[#allocation58_spill] sm:$0xff]  ;;  %v9859_v34 = vld [vmem:[#allocation136_spill] sm:$0xff]  ;;  %v3432_v43 = vsub.s32 2, %v8980_v24 }
 0x385   : > { %7231 = vmatprep.subr.mxu1 %v9707_v60  ;;  %7189 = vmatpush3.msra.mxu0 %v9845_v9  ;;  %v2981_v11 = vpop.f32.mrf.mxu0  ;;  %v9848_v60 = vld [vmem:[#allocation61_spill] sm:$0xff]  ;;  %v3232_v22 = vpop.f32.mrf.mxu1  ;;  %v9868_v62 = vld [vmem:[#allocation120_spill] sm:$0xff] }
 0x386   : > { %7232 = vmatpush3.msra.mxu1 %v9709_v23  ;;  %7190 = vmatprep.subr.mxu0 %v9846_v33  ;;  %v3074_v17 = vadd.f32 %v3073_v38, %v2981_v11  ;;  %v3399_v0 = vmul.f32 %v3397_v54, %v8984_v16  ;;  %v9866_v38 = vld [vmem:[#allocation126_spill] sm:$0xff]  ;;  %v9869_v54 = vld [vmem:[#allocation121_spill] sm:$0xff] }
 0x387   : > { %7233 = vmatprep.subr.mxu1 %v9711_v21  ;;  %7191 = vmatpush3.msra.mxu0 %v9847_v27  ;;  %v9850_v21 = vld [vmem:[#allocation67_spill] sm:$0xff]  ;;  %v3390_v40 = vpop.f32.mrf.mxu1 }
 0x388   : > { %7234 = vmatpush3.msra.mxu1 %v9713_v8  ;;  %7192 = vmatprep.subr.mxu0 %v9848_v60  ;;  %v9851_v8 = vld [vmem:[#allocation71_spill] sm:$0xff]  ;;  %v3404_v57 = vrot.slane %v3399_v0, %v3403_v45 }
 0x389   : > { %7235 = vmatprep.subr.mxu1 %v9715_v15  ;;  %7193 = vmatpush3.msra.mxu0 %v9849_v36  ;;  %v3152_v23 = vpop.f32.mrf.mxu0  ;;  %v9852_v15 = vld [vmem:[#allocation74_spill] sm:$0xff] }
 0x38a   : > { %7236 = vmatpush3.msra.mxu1 %v9716_v26  ;;  %7194 = vmatprep.subr.mxu0 %v9850_v21  ;;  %v3153_v25 = vadd.f32 %v3152_v23, %v3072_v32  ;;  %v9853_v26 = vld [vmem:[#allocation77_spill] sm:$0xff]  ;;  %v3422_v42 = vrot.slane %v3404_v57, %v3403_v45 }
 0x38b   : > { %7237 = vmatprep.subr.mxu1 %v9718_v4  ;;  %7195 = vmatpush3.msra.mxu0 %v9851_v8  ;;  %v3154_v28 = vpop.f32.mrf.mxu0  ;;  %v9854_v4 = vld [vmem:[#allocation80_spill] sm:$0xff] }
 0x38c   : > { %7238 = vmatpush3.msra.mxu1 %v9719_v48  ;;  %7196 = vmatprep.subr.mxu0 %v9852_v15  ;;  %v3155_v19 = vadd.f32 %v3154_v28, %v3074_v17  ;;  %v3231_v35 = vadd.f32 %v3230_v61, %v3153_v25  ;;  %v9855_v48 = vld [vmem:[#allocation89_spill] sm:$0xff]  ;;  %v3427_v18 = vmul.f32 %v3422_v42, %v9868_v62 }
 0x38d   : > { %7239 = vmatprep.subr.mxu1 %v9720_v29  ;;  %7197 = vmatpush3.msra.mxu0 %v9853_v26  ;;  %v3407_v29 = vsub.s32 4, %v8980_v24 }
 0x38e   : > { %7240 = vmatpush3.msra.mxu1 %v9721_v53  ;;  %7198 = vmatprep.subr.mxu0 %v9854_v4  ;;  %v3314_v49 = vpop.f32.mrf.mxu0  ;;  %v3233_v50 = vadd.f32 %v3232_v22, %v3155_v19 }
 0x38f   : > { %7241 = vmatprep.subr.mxu1 %v9722_v10  ;;  %7199 = vmatpush3.msra.mxu0 %v9855_v48  ;;  %v3315_v51 = vadd.f32 %v3314_v49, %v3231_v35  ;;  %v3392_v10 = vpop.f32.mrf.mxu1 }
 0x390   : > { %7242 = vmatpush3.msra.mxu1 %v9723_v12  ;;  %7200 = vmatprep.subr.mxu0 %v9856_v52  ;;  %v3316_v6 = vpop.f32.mrf.mxu0  ;;  %v3408_v12 = vrot.slane %v3399_v0, %v3407_v29 }
 0x391   : > { %5196 = vmatmul.mubr.f32.vlgmr.msra.gmra.mxu1 %v8821_v2  ;;  %7201 = vmatpush3.msra.mxu0 %v9782_v31  ;;  %v3391_v53 = vadd.f32 %v3390_v40, %v3315_v51  ;;  %v3317_v58 = vadd.f32 %v3316_v6, %v3233_v50 }
 0x392   : > { %7202 = vmatprep.subr.mxu0 %v9857_v41  ;;  %5322 = vmatprep.subr.mxu1 %v9858_v13  ;;  %v3426_v55 = vrot.slane %v3408_v12, %v3403_v45 }
 0x393   : > { %7203 = vmatpush3.msra.mxu0 %v9784_v30  ;;  %v3411_v59 = vmul.f32 %v3404_v57, %v3391_v53  ;;  %v3393_v14 = vadd.f32 %v3392_v10, %v3317_v58  ;;  %5328 = vmatpush1.msra.mxu1 %v9859_v34 }
 0x394   : > { %7204 = vmatprep.subr.mxu0 %v9785_v56  ;;  %5334 = vmatprep.subr.mxu1 %v9860_v3  ;;  %v3428_v32 = vmul.f32 %v3426_v55, %v9869_v54 }
 0x395   : > { %7205 = vmatpush3.msra.mxu0 %v9786_v47  ;;  %v3412_v31 = vmul.f32 %v3408_v12, %v3393_v14  ;;  %5340 = vmatpush1.msra.mxu1 %v9861_v1  ;;  %v3436_v47 = vsub.s32 6, %v8980_v24 }
 0x396   : > { %7206 = vmatprep.subr.mxu0 %v9787_v37  ;;  %5373 = vmatprep.mubr.f32.mxu1 %v9862_v5  ;;  %v9865_v37 = vld [vmem:[#allocation125_spill] sm:$0xff] }
 0x397   : > { %7207 = vmatpush3.msra.mxu0 %v9788_v44  ;;  %v3415_v30 = vcombine.low %v3411_v59, %v3412_v31  ;;  %5491 = vmatprep.subr.mxu1 %v9863_v7 }
 0x398   : > { %5092 = vmatmul.mubr.f32.vlgmr.msra.gmra.mxu0 %v8821_v2  ;;  %5238 = vmatprep.subr.mxu0 %v9863_v7  ;;  %v9867_v2 = vld [vmem:[#allocation127_spill] sm:$0xff] }
 0x399   : > { %v3416_v56 = vrot.slane %v3415_v30, 6  ;;  %5240 = vmatpush1.msra.mxu0 %v9864_v63  ;;  %5277 = vmatprep.mubr.f32.mxu0 %v9862_v5 }
 0x39a   : > { %5242 = vmatprep.subr.mxu0 %v9865_v37 }
 0x39b   : > { %v3418_v44 = vsub.f32 %v8984_v16, %v3416_v56  ;;  %5244 = vmatpush1.msra.mxu0 %v9866_v38 }
 0x39c   : > { %5411 = vmatprep.subr.mxu0 %v9867_v2 }
 0x39d   : > { %v3433_v46 = vrot.slane %v3418_v44, %v3432_v43  ;;  %v3437_v39 = vrot.slane %v3418_v44, %v3436_v47 }
 0x39f   : > { %v3443_v9 = vrot.slane %v3433_v46, %v3432_v43  ;;  %v3447_v11 = vrot.slane %v3437_v39, %v3432_v43 }
 0x3a1   : > { %v9027_v20 = vadd.f32 %v3443_v9, %v3427_v18  ;;  %v9029_v33 = vadd.f32 %v3447_v11, %v3428_v32 }
 0x3a7   : > { %v6893_v17 = vpop.f32.mrf.mxu1 }
 0x3a9   : > { %v6894_v36 = vpop.f32.mrf.mxu1 }
 0x3aa   : > { %v6895_v45 = vadd.f32 %v6894_v36, %v6893_v17 }
 0x3af   : > { %v6858_v61 = vpop.f32.mrf.mxu0 }
 0x3b1   : > { %v6859_v27 = vpop.f32.mrf.mxu0 }
 0x3b2   : > { %v6860_v35 = vadd.f32 %v6859_v27, %v6858_v61 }
 0x3b4   : > { %v3817_v49 = vadd.f32 %v6895_v45, %v6860_v35  ;;  %v9873_v35 = vld [vmem:[#allocation131_spill] sm:$0xff] }
 0x3c9   : > { %v6963_v23 = vpop.f32.mrf.mxu1 }
 0x3cb   : > { %v6964_v25 = vpop.f32.mrf.mxu1 }
 0x3cc   : > { %v6965_v52 = vadd.f32 %v6964_v25, %v6963_v23 }
 0x3d1   : > { %v6928_v60 = vpop.f32.mrf.mxu0 }
 0x3d3   : > { %v6929_v21 = vpop.f32.mrf.mxu0 }
 0x3d4   : > { %v6930_v4 = vadd.f32 %v6929_v21, %v6928_v60 }
 0x3d6   : > { %v3955_v48 = vadd.f32 %v6930_v4, %v3817_v49 }
 0x3d8   : > { %v4063_v57 = vadd.f32 %v6965_v52, %v3955_v48 }
 0x3eb   : > { %v7033_v8 = vpop.f32.mrf.mxu1 }
 0x3ed   : > { %v7034_v19 = vpop.f32.mrf.mxu1 }
 0x3ee   : > { %v7035_v31 = vadd.f32 %v7034_v19, %v7033_v8  ;;  %v9872_v19 = vld [vmem:[#allocation130_spill] sm:$0xff] }
 0x3f3   : > { %v6998_v22 = vpop.f32.mrf.mxu0 }
 0x3f5   : > { %v6999_v28 = vpop.f32.mrf.mxu0 }
 0x3f6   : > { %v7000_v6 = vadd.f32 %v6999_v28, %v6998_v22  ;;  %v9870_v28 = vld [vmem:[#allocation128_spill] sm:$0xff] }
 0x3f8   : > { %v4231_v59 = vadd.f32 %v7000_v6, %v4063_v57 }
 0x3fa   : > { %v4335_v43 = vadd.f32 %v7035_v31, %v4231_v59 }
 0x3fc   : > { %v4338_v39 = vmul.f32 0.0078125, %v4335_v43 }
 0x3fe   : > { %v5202_v32 = vmul.f32 %v4338_v39, %v4338_v39  ;;  %v5701_v22 = vsel %vm2406_vm1, %v4338_v39, 0 }
 0x3ff   : > { %v5772_v8 = vand.u32 4294901760, %v5701_v22 }
 0x40d   : > { %v7103_v26 = vpop.f32.mrf.mxu1 }
 0x40f   : > { %v7104_v50 = vpop.f32.mrf.mxu1 }
 0x410   : > { %v7105_v58 = vadd.f32 %v7104_v50, %v7103_v26  ;;  %v5773_v26 = vsub.f32 %v5701_v22, %v5772_v8 }
 0x415   : > { %v7068_v15 = vpop.f32.mrf.mxu0 }
 0x417   : > { %v7069_v0 = vpop.f32.mrf.mxu0 }
 0x418   : > { %v7070_v53 = vadd.f32 %v7069_v0, %v7068_v15  ;;  %v9871_v15 = vld [vmem:[#allocation129_spill] sm:$0xff]  ;;  %v9876_v0 = vld [vmem:[#allocation134_spill] sm:$0xff] }
 0x41a   : > { %v4680_v14 = vadd.f32 %v7105_v58, %v7070_v53 }
 0x42f   : > { %v7173_v51 = vpop.f32.mrf.mxu1 }
 0x431   : > { %v7174_v10 = vpop.f32.mrf.mxu1 }
 0x432   : > { %v7175_v47 = vadd.f32 %v7174_v10, %v7173_v51 }
 0x437   : > { %v7138_v40 = vpop.f32.mrf.mxu0 }
 0x439   : > { %v7139_v29 = vpop.f32.mrf.mxu0 }
 0x43a   : > { %v7140_v41 = vadd.f32 %v7139_v29, %v7138_v40 }
 0x43c   : > { %v4818_v30 = vadd.f32 %v7140_v41, %v4680_v14 }
 0x43e   : > { %v4926_v55 = vadd.f32 %v7175_v47, %v4818_v30 }
 0x451   : > { %v7243_v12 = vpop.f32.mrf.mxu1 }
 0x453   : > { %v7244_v42 = vpop.f32.mrf.mxu1 }
 0x454   : > { %v7245_v62 = vadd.f32 %v7244_v42, %v7243_v12 }
 0x458   : > { %v7208_v56 = vpop.f32.mrf.mxu0 }
 0x45a   : > { %v7209_v44 = vpop.f32.mrf.mxu0 }
 0x45b   : > { %v7210_v46 = vadd.f32 %v7209_v44, %v7208_v56 }
 0x45d   : > { %v5094_v18 = vadd.f32 %v7210_v46, %v4926_v55 }
 0x45f   : > { %v5198_v54 = vadd.f32 %v7245_v62, %v5094_v18 }
 0x461   : > { %v5201_v9 = vmul.f32 0.0078125, %v5198_v54 }
 0x463   : > { %v5203_v11 = vsub.f32 %v5201_v9, %v5202_v32 }
 0x465   : > { %v5204_v61 = vadd.f32 1e-05, %v5203_v11 }
 0x467   : > { %7314 = vrsqrt.f32 %v5204_v61  ;;  %v6203_v61 = vsub.s32 1, %v8980_v24 }
 0x474   : > { %v7315_v17 = vpop.eup %7314 }
 0x475   : > { %v5207_v27 = vsel %vm2406_vm1, %v7315_v17, 0 }
 0x476   : > { %v5278_v60 = vand.u32 4294901760, %v5207_v27 }
 0x478   : > { %v5279_v36 = vsub.f32 %v5207_v27, %v5278_v60  ;;  %5375 = vmatmul.mubr.f32.vlgmr.msra.gmra.mxu1 %v5278_v60 }
 0x479   : > { %5493 = vmatpush1.msra.mxu1 %v9864_v63  ;;  %5530 = vmatprep.mubr.f32.mxu1 %v9862_v5 }
 0x47a   : > { %5495 = vmatprep.subr.mxu1 %v9865_v37  ;;  %v5280_v23 = vand.u32 4294901760, %v5279_v36 }
 0x47b   : > { %5497 = vmatpush1.msra.mxu1 %v9866_v38 }
 0x47c   : > { %5534 = vmatmul.mubr.f32.vlgmr.msra.gmra.mxu1 %v5280_v23  ;;  %5653 = vmatprep.subr.mxu1 %v9863_v7  ;;  %v5281_v21 = vsub.f32 %v5279_v36, %v5280_v23 }
 0x47d   : > { %5655 = vmatpush1.msra.mxu1 %v9864_v63  ;;  %5692 = vmatprep.mubr.f32.mxu1 %v9862_v5 }
 0x47e   : > { %5657 = vmatprep.subr.mxu1 %v9865_v37  ;;  %v5282_v25 = vand.u32 4294901760, %v5281_v21 }
 0x47f   : > { %5659 = vmatpush1.msra.mxu1 %v9866_v38 }
 0x480   : > { %5283 = vmatmul.mubr.f32.vlgmr.msra.gmra.mxu0 %v5282_v25  ;;  %5694 = vmatmul.mubr.f32.vlgmr.msra.gmra.mxu1 %v5278_v60 }
 0x481   : > { %5414 = vmatpush1.msra.mxu0 %v9870_v28  ;;  %5816 = vmatprep.subr.mxu1 %v9858_v13  ;;  %v9874_v13 = vld [vmem:[#allocation132_spill] sm:$0xff] }
 0x482   : > { %5417 = vmatprep.subr.mxu0 %v9871_v15  ;;  %5822 = vmatpush1.msra.mxu1 %v9859_v34  ;;  %v9875_v34 = vld [vmem:[#allocation133_spill] sm:$0xff] }
 0x483   : > { %5420 = vmatpush1.msra.mxu0 %v9872_v19  ;;  %5828 = vmatprep.subr.mxu1 %v9860_v3  ;;  %v5774_v3 = vand.u32 4294901760, %v5773_v26 }
 0x484   : > { %5453 = vmatprep.mubr.f32.mxu0 %v9862_v5  ;;  %5571 = vmatprep.subr.mxu0 %v9873_v35 }
 0x485   : > { %5834 = vmatpush1.msra.mxu1 %v9861_v1  ;;  %5867 = vmatprep.mubr.f32.mxu1 %v9862_v5  ;;  %v5775_v1 = vsub.f32 %v5773_v26, %v5774_v3 }
 0x486   : > { %5456 = vmatmul.mubr.f32.vlgmr.msra.gmra.mxu0 %v5279_v36  ;;  %5869 = vmatmul.mubr.f32.vlgmr.msra.gmra.mxu1 %v5772_v8  ;;  %v6207_v36 = vsub.s32 5, %v8980_v24 }
 0x487   : > { %5575 = vmatpush1.msra.mxu0 %v9874_v13  ;;  %5985 = vmatprep.subr.mxu1 %v9863_v7  ;;  %v5776_v45 = vand.u32 4294901760, %v5775_v1 }
 0x488   : > { %5579 = vmatprep.subr.mxu0 %v9875_v34  ;;  %5987 = vmatpush1.msra.mxu1 %v9864_v63 }
 0x489   : > { %5583 = vmatpush1.msra.mxu0 %v9876_v0  ;;  %5989 = vmatprep.subr.mxu1 %v9865_v37 }
 0x48a   : > { %5616 = vmatprep.mubr.f32.mxu0 %v9862_v5  ;;  %5732 = vmatprep.subr.mxu0 %v9863_v7 }
 0x48b   : > { %5991 = vmatpush1.msra.mxu1 %v9866_v38  ;;  %6024 = vmatprep.mubr.f32.mxu1 %v9862_v5 }
 0x48c   : > { %5618 = vmatmul.mubr.f32.vlgmr.msra.gmra.mxu0 %v5278_v60  ;;  %6028 = vmatmul.mubr.f32.vlgmr.msra.gmra.mxu1 %v5774_v3  ;;  %v6236_v3 = vsub.s32 7, %v8980_v24 }
 0x48d   : > { %5734 = vmatpush1.msra.mxu0 %v9864_v63  ;;  %6147 = vmatprep.subr.mxu1 %v9863_v7 }
 0x48e   : > { %5736 = vmatprep.subr.mxu0 %v9865_v37  ;;  %6149 = vmatpush1.msra.mxu1 %v9864_v63 }
 0x48f   : > { %5738 = vmatpush1.msra.mxu0 %v9866_v38  ;;  %6151 = vmatprep.subr.mxu1 %v9865_v37 }
 0x490   : > { %5771 = vmatprep.mubr.f32.mxu0 %v9862_v5  ;;  %5905 = vmatprep.subr.mxu0 %v9867_v2 }
 0x491   : > { %6153 = vmatpush1.msra.mxu1 %v9866_v38  ;;  %6186 = vmatprep.mubr.f32.mxu1 %v9862_v5 }
 0x492   : > { %5777 = vmatmul.mubr.f32.vlgmr.msra.gmra.mxu0 %v5776_v45  ;;  %6188 = vmatmul.mubr.f32.vlgmr.msra.gmra.mxu1 %v5772_v8 }
 0x493   : > { %5908 = vmatpush1.msra.mxu0 %v9870_v28  ;;  %5947 = vmatprep.mubr.f32.mxu0 %v9862_v5 }
 0x494   : > { %5911 = vmatprep.subr.mxu0 %v9871_v15 }
 0x495   : > { %5914 = vmatpush1.msra.mxu0 %v9872_v19 }
 0x496   : > { %6065 = vmatprep.subr.mxu0 %v9873_v35  ;;  %5950 = vmatmul.mubr.f32.vlgmr.msra.gmra.mxu0 %v5773_v26 }
 0x497   : > { %6069 = vmatpush1.msra.mxu0 %v9874_v13  ;;  %6110 = vmatprep.mubr.f32.mxu0 %v9862_v5 }
 0x498   : > { %6073 = vmatprep.subr.mxu0 %v9875_v34  ;;  %v6232_v34 = vsub.s32 3, %v8980_v24 }
 0x499   : > { %6077 = vmatpush1.msra.mxu0 %v9876_v0 }
 0x49a   : > { %6112 = vmatmul.mubr.f32.vlgmr.msra.gmra.mxu0 %v5772_v8 }
 0x538   : > { %v5376_v7 = vpop.f32.mrf.mxu1 }
 0x53a   : > { %v5378_v63 = vpop.f32.mrf.mxu1 }
 0x53c   : > { %v5535_v37 = vpop.f32.mrf.mxu1 }
 0x53e   : > { %v5537_v38 = vpop.f32.mrf.mxu1 }
 0x540   : > { %v5284_v2 = vpop.f32.mrf.mxu0  ;;  %v5695_v4 = vpop.f32.mrf.mxu1 }
 0x541   : > { %v5377_v49 = vadd.f32 %v5376_v7, %v5284_v2  ;;  %v9878_v2 = vld [vmem:[#allocation123_spill] sm:$0xff] }
 0x542   : > { %v5286_v40 = vpop.f32.mrf.mxu0  ;;  %v5697_v50 = vpop.f32.mrf.mxu1 }
 0x543   : > { %v5379_v51 = vadd.f32 %v5378_v63, %v5286_v40 }
 0x546   : > { %v5457_v48 = vpop.f32.mrf.mxu0  ;;  %v5870_v53 = vpop.f32.mrf.mxu1 }
 0x547   : > { %v5458_v29 = vadd.f32 %v5457_v48, %v5377_v49 }
 0x548   : > { %v5459_v52 = vpop.f32.mrf.mxu0  ;;  %v5872_v10 = vpop.f32.mrf.mxu1 }
 0x549   : > { %v5460_v6 = vadd.f32 %v5459_v52, %v5379_v51  ;;  %v5536_v5 = vadd.f32 %v5535_v37, %v5458_v29  ;;  %v9877_v37 = vld [vmem:[#allocation122_spill] sm:$0xff] }
 0x54b   : > { %v5538_v57 = vadd.f32 %v5537_v38, %v5460_v6 }
 0x54c   : > { %v5619_v58 = vpop.f32.mrf.mxu0  ;;  %v6029_v30 = vpop.f32.mrf.mxu1 }
 0x54d   : > { %v5620_v41 = vadd.f32 %v5619_v58, %v5536_v5 }
 0x54e   : > { %v5621_v59 = vpop.f32.mrf.mxu0  ;;  %v6031_v44 = vpop.f32.mrf.mxu1 }
 0x54f   : > { %v5622_v14 = vadd.f32 %v5621_v59, %v5538_v57  ;;  %v5696_v12 = vadd.f32 %v5695_v4, %v5620_v41 }
 0x551   : > { %v5698_v31 = vadd.f32 %v5697_v50, %v5622_v14 }
 0x552   : > { %v5778_v56 = vpop.f32.mrf.mxu0  ;;  %v6189_v9 = vpop.f32.mrf.mxu1 }
 0x553   : > { %v6196_v43 = vcombine.low %v5696_v12, %v5698_v31  ;;  %v5871_v42 = vadd.f32 %v5870_v53, %v5778_v56 }
 0x554   : > { %v5780_v47 = vpop.f32.mrf.mxu0  ;;  %v6191_v25 = vpop.f32.mrf.mxu1 }
 0x555   : > { %v6197_v46 = vrot.slane %v6196_v43, 7  ;;  %v5873_v39 = vadd.f32 %v5872_v10, %v5780_v47 }
 0x556   : > { %v5951_v55 = vpop.f32.mrf.mxu0 }
 0x557   : > { %v5952_v62 = vadd.f32 %v5951_v55, %v5871_v42  ;;  %v6199_v17 = vmul.f32 %v6197_v46, %v8984_v16 }
 0x558   : > { %v5953_v18 = vpop.f32.mrf.mxu0 }
 0x559   : > { %v5954_v54 = vadd.f32 %v5953_v18, %v5873_v39  ;;  %v6030_v32 = vadd.f32 %v6029_v30, %v5952_v62  ;;  %v6204_v8 = vrot.slane %v6199_v17, %v6203_v61  ;;  %v6208_v15 = vrot.slane %v6199_v17, %v6207_v36 }
 0x55a   : > { %v6113_v11 = vpop.f32.mrf.mxu0 }
 0x55b   : > { %v6114_v27 = vadd.f32 %v6113_v11, %v6030_v32  ;;  %v6032_v60 = vadd.f32 %v6031_v44, %v5954_v54  ;;  %v6222_v0 = vrot.slane %v6204_v8, %v6203_v61  ;;  %v6226_v45 = vrot.slane %v6208_v15, %v6203_v61 }
 0x55c   : > { %v6115_v23 = vpop.f32.mrf.mxu0 }
 0x55d   : > { %v6190_v21 = vadd.f32 %v6189_v9, %v6114_v27  ;;  %v6116_v22 = vadd.f32 %v6115_v23, %v6032_v60  ;;  %v6227_v38 = vmul.f32 %v6222_v0, %v9877_v37  ;;  %v6228_v4 = vmul.f32 %v6226_v45, %v9878_v2 }
 0x55f   : > { %v6192_v28 = vadd.f32 %v6191_v25, %v6116_v22  ;;  %v6211_v19 = vmul.f32 %v6204_v8, %v6190_v21 }
 0x561   : > { %v6212_v35 = vmul.f32 %v6208_v15, %v6192_v28 }
 0x563   : > { %v6215_v26 = vcombine.low %v6211_v19, %v6212_v35 }
 0x565   : > { %v6216_v13 = vrot.slane %v6215_v26, 5 }
 0x567   : > { %v6218_v1 = vsub.f32 %v8984_v16, %v6216_v13 }
 0x569   : > { %v6233_v7 = vrot.slane %v6218_v1, %v6232_v34  ;;  %v6237_v63 = vrot.slane %v6218_v1, %v6236_v3 }
 0x56b   : > { %v6243_v40 = vrot.slane %v6233_v7, %v6232_v34  ;;  %v6247_v49 = vrot.slane %v6237_v63, %v6232_v34 }
 0x56d   : > { %v6248_v50 = vadd.f32 %v6243_v40, %v6227_v38  ;;  %v6249_v48 = vadd.f32 %v6247_v49, %v6228_v4 }
 0x56f   : > { %v6401_v51 = vmul.f32 -1.442695, %v6248_v50  ;;  %v6402_v29 = vmul.f32 -1.442695, %v6249_v48 }
 0x571   : > { %7316 = vpow2.f32 %v6401_v51 }
 0x572   : > { %7318 = vpow2.f32 %v6402_v29 }
 0x57e   : > { %v7317_v24 = vpop.eup %7316 }
 0x57f   : > { %v7319_v52 = vpop.eup %7318  ;;  %v6256_v6 = vadd.f32 1.0, %v7317_v24 }
 0x580   : > { %v6257_v16 = vadd.f32 1.0, %v7319_v52 }
 0x581   : > { %7320 = vrcp.f32 %v6256_v6 }
 0x582   : > { %7322 = vrcp.f32 %v6257_v16 }
 0x58e   : > { %v7321_v5 = vpop.eup %7320 }
 0x58f   : > { %v7323_v53 = vpop.eup %7322  ;;  %v6262_v57 = vmul.f32 %v7321_v5, %v9027_v20 }
 0x590   : > { %v6263_v58 = vmul.f32 %v7323_v53, %v9029_v33 }
 0x591   : > { %6264 = vst [vmem:[%s427_s13] sm:$0xff] %v6262_v57 }
 0x592   : > { %6265 = vst [vmem:[%s427_s13 + $0x8] sm:$0xff] %v6263_v58 }
 0x593 PF: > { %p13_p12 = scmp.ge.s32.totalorder %s7428_s27, 6   ;;  %s9879_s21 = smov %s7350_s22 }
 0x594   : > { %s9880_s22 = smov %s7445_s11  ;;  %s9881_s23 = smov %s7358_s24 }
 0x595   : > { %s9882_s24 = smov %s7438_s7  ;;  %s9883_s25 = smov %s7428_s27 }
 0x596   :  { %15 = sbr.rel (!%p13_p12) target bundleno = 3 (0x3), region = 166 }

</bundles_post_ra>
